<compile_context>
chip_gen: v7x
topology: tpu7x:2x2x1
jax: 0.10.0
libtpu: 0.0.40
codegen_flags: <defaults>
</compile_context>

<pallas_src>
from functools import partial

import jax
import jax.numpy as jnp
from jax.experimental import pallas as pl
from jax.experimental.pallas import tpu as pltpu

N_ACTIONS = 6          # Pong action space
FC_K = 3136            # 64 * 7 * 7 conv output size
FC_K_PAD = 3200        # K padded to a multiple of 128 (25 * 128)
FC_TK = 640            # K tile: multiple of 128, divides 3200 -> 5 grid steps
FC_N = 512
HEAD_N = 128           # pi(n_actions) + vf(1) padded to a lane-dense width


# ----------------------------------------------------------------------------
# Kernel 1: conv-as-GEMM.  relu(x @ w + b)
#   x: (tm, K) bf16, w: (K, N) bf16, b: (1, N) f32, out: (tm, N) bf16.
#   bf16 x bf16 -> f32 MXU accumulation; bias/ReLU epilogue in f32.
# ----------------------------------------------------------------------------
def _conv_gemm_kernel(x_ref, w_ref, b_ref, o_ref):
    acc = jnp.dot(x_ref[...], w_ref[...], preferred_element_type=jnp.float32)
    acc = jnp.maximum(acc + b_ref[...], 0.0)
    o_ref[...] = acc.astype(o_ref.dtype)


def _pick_tm(m, target=512):
    # Single block when small/awkward; otherwise tile M so the grid axis can
    # be sharded across TensorCores (v7x megacore) and pipelined.
    if m <= target or m % 8 != 0:
        return m
    return target


def conv_gemm(patches, w, b):
    """relu(patches @ w + b) on the MXU.  patches:(M,K) bf16, w:(K,N) bf16."""
    M, K = patches.shape
    N = w.shape[1]
    tm = _pick_tm(M)
    return pl.pallas_call(
        _conv_gemm_kernel,
        out_shape=jax.ShapeDtypeStruct((M, N), jnp.bfloat16),
        grid_spec=pltpu.PrefetchScalarGridSpec(
            num_scalar_prefetch=0,
            grid=(pl.cdiv(M, tm),),
            in_specs=[
                pl.BlockSpec((tm, K), lambda i: (i, 0)),
                pl.BlockSpec((K, N), lambda i: (0, 0)),
                pl.BlockSpec((1, N), lambda i: (0, 0)),
            ],
            out_specs=pl.BlockSpec((tm, N), lambda i: (i, 0)),
        ),
        compiler_params=pltpu.CompilerParams(
            dimension_semantics=("parallel",)),
    )(patches, w, b)


# ----------------------------------------------------------------------------
# Kernel 2: fused FC(3136->512)+ReLU and combined pi/vf head GEMM.
#   Grid over K tiles of the FC weight (reduction axis, "arbitrary") with a
#   VMEM f32 accumulator; on the last step the heads are computed from the
#   VMEM-resident hidden activation and only (B, 128) f32 is written out.
# ----------------------------------------------------------------------------
def _fc_heads_kernel(flat_ref, fcw_ref, fcb_ref, hw_ref, hb_ref,
                     out_ref, acc_ref):
    k = pl.program_id(0)

    @pl.when(k == 0)
    def _():
        acc_ref[...] = jnp.zeros_like(acc_ref)

    acc_ref[...] += jnp.dot(flat_ref[...], fcw_ref[...],
                            preferred_element_type=jnp.float32)

    @pl.when(k == pl.num_programs(0) - 1)
    def _():
        hidden = jnp.maximum(acc_ref[...] + fcb_ref[...], 0.0)   # f32 epilogue
        heads = jnp.dot(hidden.astype(hw_ref.dtype), hw_ref[...],
                        preferred_element_type=jnp.float32) + hb_ref[...]
        out_ref[...] = heads


def fc_heads(flat_pad, fcw, fcb, headw, headb):
    B = flat_pad.shape[0]
    n_k = FC_K_PAD // FC_TK
    return pl.pallas_call(
        _fc_heads_kernel,
        out_shape=jax.ShapeDtypeStruct((B, HEAD_N), jnp.float32),
        grid_spec=pltpu.PrefetchScalarGridSpec(
            num_scalar_prefetch=0,
            grid=(n_k,),
            in_specs=[
                pl.BlockSpec((B, FC_TK), lambda k: (0, k)),        # activations
                pl.BlockSpec((FC_TK, FC_N), lambda k: (k, 0)),     # FC weight stream
                pl.BlockSpec((1, FC_N), lambda k: (0, 0)),         # FC bias (resident)
                pl.BlockSpec((FC_N, HEAD_N), lambda k: (0, 0)),    # fused head weight
                pl.BlockSpec((1, HEAD_N), lambda k: (0, 0)),       # fused head bias
            ],
            out_specs=pl.BlockSpec((B, HEAD_N), lambda k: (0, 0)),
            scratch_shapes=[pltpu.VMEM((B, FC_N), jnp.float32)],
        ),
        compiler_params=pltpu.CompilerParams(
            dimension_semantics=("arbitrary",)),
    )(flat_pad, fcw, fcb, headw, headb)


# ----------------------------------------------------------------------------
# im2col glue (plain JAX strided slices; XLA-fused, small at these sizes).
# ----------------------------------------------------------------------------
def _im2col_nhwc(x_nhwc, kh, kw, stride):
    B, H, W, C = x_nhwc.shape
    oh = (H - kh) // stride + 1
    ow = (W - kw) // stride + 1
    cols = []
    for i in range(kh):
        for j in range(kw):
            cols.append(
                x_nhwc[:, i:i + stride * oh:stride, j:j + stride * ow:stride, :]
            )
    # (B, oh, ow, kh*kw, C): column index = (i*kw + j)*C + c (matches weights)
    patches = jnp.stack(cols, axis=3)
    return patches.reshape(B * oh * ow, kh * kw * C), oh, ow


# ----------------------------------------------------------------------------
# Full forward pass (matches CNNPolicy.forward: returns (logits, value)).
# ----------------------------------------------------------------------------
def cnn_policy_forward(x_nchw, params, n_actions=N_ACTIONS):
    B = x_nchw.shape[0]
    # uint8 NCHW -> bf16 NHWC (0..255 is exact in bf16); /255 is folded into
    # the conv1 weight at init, so no per-call scaling pass.
    x = jnp.transpose(x_nchw, (0, 2, 3, 1)).astype(jnp.bfloat16)

    p1, oh1, ow1 = _im2col_nhwc(x, 8, 8, 4)
    h = conv_gemm(p1, params["c1w"], params["c1b"]).reshape(B, oh1, ow1, 32)

    p2, oh2, ow2 = _im2col_nhwc(h, 4, 4, 2)
    h = conv_gemm(p2, params["c2w"], params["c2b"]).reshape(B, oh2, ow2, 64)

    p3, _, _ = _im2col_nhwc(h, 3, 3, 1)
    h = conv_gemm(p3, params["c3w"], params["c3b"])            # (B*49, 64) bf16

    # Zero-copy flatten in NHWC order (fcw rows were permuted to match at
    # init, so PyTorch's NCHW flatten semantics are preserved without a
    # per-call transpose).  Pad K 3136 -> 3200 so the FC weight streams in
    # 128-aligned K tiles; the padded fcw rows are zero so results match.
    flat = h.reshape(B, FC_K)
    flat = jnp.pad(flat, ((0, 0), (0, FC_K_PAD - FC_K)))

    out = fc_heads(flat, params["fcw"], params["fcb"],
                   params["headw"], params["headb"])           # (B, 128) f32
    logits = out[:, :n_actions]
    value = out[:, n_actions:n_actions + 1]
    return logits, value


# ----------------------------------------------------------------------------
# Parameters: generate in original PyTorch layouts, then convert ONCE into
# the kernel layouts (bf16 GEMM weights, f32 biases).  With real checkpoints
# the same `prepare_params` conversion applies.
# ----------------------------------------------------------------------------
def init_torch_params(key, n_actions=N_ACTIONS):
    ks = jax.random.split(key, 12)
    s = 0.05
    return {
        "c1w": s * jax.random.normal(ks[0], (32, 1, 8, 8), jnp.float32),
        "c1b": s * jax.random.normal(ks[1], (32,), jnp.float32),
        "c2w": s * jax.random.normal(ks[2], (64, 32, 4, 4), jnp.float32),
        "c2b": s * jax.random.normal(ks[3], (64,), jnp.float32),
        "c3w": s * jax.random.normal(ks[4], (64, 64, 3, 3), jnp.float32),
        "c3b": s * jax.random.normal(ks[5], (64,), jnp.float32),
        "fcw": s * jax.random.normal(ks[6], (512, 3136), jnp.float32),
        "fcb": s * jax.random.normal(ks[7], (512,), jnp.float32),
        "piw": s * jax.random.normal(ks[8], (n_actions, 512), jnp.float32),
        "pib": s * jax.random.normal(ks[9], (n_actions,), jnp.float32),
        "vfw": s * jax.random.normal(ks[10], (1, 512), jnp.float32),
        "vfb": s * jax.random.normal(ks[11], (1,), jnp.float32),
    }


def _conv_w_to_gemm(w_oihw):
    # w[o, c, i, j] -> w2[(i*kw + j)*C + c, o]  (matches im2col column order)
    _, C, kh, kw = w_oihw.shape
    return jnp.transpose(w_oihw, (2, 3, 1, 0)).reshape(kh * kw * C, -1)


def prepare_params(tp, n_actions=N_ACTIONS):
    """One-time layout/dtype conversion (runs outside the per-call graph)."""
    c1w = (_conv_w_to_gemm(tp["c1w"]) / 255.0).astype(jnp.bfloat16)  # fold /255
    c2w = _conv_w_to_gemm(tp["c2w"]).astype(jnp.bfloat16)
    c3w = _conv_w_to_gemm(tp["c3w"]).astype(jnp.bfloat16)

    # FC weight: PyTorch columns are NCHW flatten order (c*49 + h*7 + w).
    # Permute to NHWC order (h*7*64 + w*64 + c), pre-transpose to (K, 512),
    # zero-pad K to 3200, cast bf16.
    fcw = tp["fcw"].reshape(512, 64, 7, 7)                  # (out, c, h, w)
    fcw = jnp.transpose(fcw, (0, 2, 3, 1)).reshape(512, FC_K).T   # (3136, 512)
    fcw = jnp.pad(fcw, ((0, FC_K_PAD - FC_K), (0, 0))).astype(jnp.bfloat16)

    # pi + vf fused into one lane-dense (512, 128) head GEMM (zero-padded).
    n_head = n_actions + 1
    headw = jnp.concatenate([tp["piw"], tp["vfw"]], axis=0).T       # (512, n+1)
    headw = jnp.pad(headw, ((0, 0), (0, HEAD_N - n_head))).astype(jnp.bfloat16)
    headb = jnp.concatenate([tp["pib"], tp["vfb"]], axis=0)
    headb = jnp.pad(headb, (0, HEAD_N - n_head)).reshape(1, HEAD_N)

    return {
        "c1w": c1w, "c1b": tp["c1b"].reshape(1, 32).astype(jnp.float32),
        "c2w": c2w, "c2b": tp["c2b"].reshape(1, 64).astype(jnp.float32),
        "c3w": c3w, "c3b": tp["c3b"].reshape(1, 64).astype(jnp.float32),
        "fcw": fcw, "fcb": tp["fcb"].reshape(1, FC_N).astype(jnp.float32),
        "headw": headw, "headb": headb.astype(jnp.float32),
    }


if __name__ == "__main__":
    key = jax.random.PRNGKey(0)
    pkey, xkey = jax.random.split(key)

    params = prepare_params(init_torch_params(pkey))

    # Spatial size fixed to 84x84 by the module's FC sizing; batch kept small.
    batch = 2
    x = jax.random.randint(xkey, (batch, 1, 84, 84), 0, 256, dtype=jnp.uint8)

    fwd = jax.jit(partial(cnn_policy_forward, n_actions=N_ACTIONS))
    logits, value = fwd(x, params)
    jax.block_until_ready((logits, value))

    assert logits.shape == (batch, N_ACTIONS) and logits.dtype == jnp.float32
    assert value.shape == (batch, 1) and value.dtype == jnp.float32
    assert bool(jnp.all(jnp.isfinite(logits))) and bool(jnp.all(jnp.isfinite(value)))

    print("KERNEL_OK")
</pallas_src>

<mosaic_0001>
module attributes {stable_mosaic.version = 11 : i64} {
  func.func @_conv_gemm_kernel(%arg0: i32, %arg1: memref<512x64xbf16, #tpu.memory_space<vmem>>, %arg2: memref<64x32xbf16, #tpu.memory_space<vmem>>, %arg3: memref<1x32xf32, #tpu.memory_space<vmem>>, %arg4: memref<512x32xbf16, #tpu.memory_space<vmem>>) attributes {dimension_semantics = [#tpu.dimension_semantics<parallel>], iteration_bounds = array<i64: 2>, scalar_prefetch = 0 : i64, scratch_operands = 0 : i64, tpu.core_type = #tpu.core_type<tc>, window_params = [{transform_indices = @transform_0, window_bounds = array<i64: 512, 64>}, {pipeline_mode = #tpu.pipeline_mode<synchronous>, transform_indices = @transform_1, window_bounds = array<i64: 64, 32>}, {pipeline_mode = #tpu.pipeline_mode<synchronous>, transform_indices = @transform_2, window_bounds = array<i64: 1, 32>}, {transform_indices = @transform_3, window_bounds = array<i64: 512, 32>}]} {
    %c0 = arith.constant 0 : index
    %c0_0 = arith.constant 0 : index
    %0 = vector.load %arg1[%c0, %c0_0] : memref<512x64xbf16, #tpu.memory_space<vmem>>, vector<512x64xbf16>
    %c0_1 = arith.constant 0 : index
    %c0_2 = arith.constant 0 : index
    %1 = vector.load %arg2[%c0_1, %c0_2] : memref<64x32xbf16, #tpu.memory_space<vmem>>, vector<64x32xbf16>
    %cst = arith.constant dense<0.000000e+00> : vector<512x32xf32>
    %2 = tpu.matmul %0, %1, %cst {dimension_numbers = #tpu.dot_dimension_numbers<[1], [0], [0], [1], [0, 0, 1, 1], [], []>} : vector<512x64xbf16>, vector<64x32xbf16>, vector<512x32xf32> -> vector<512x32xf32>
    %c0_3 = arith.constant 0 : index
    %c0_4 = arith.constant 0 : index
    %3 = vector.load %arg3[%c0_3, %c0_4] : memref<1x32xf32, #tpu.memory_space<vmem>>, vector<1x32xf32>
    %4 = vector.broadcast %3 : vector<1x32xf32> to vector<512x32xf32>
    %5 = arith.addf %2, %4 : vector<512x32xf32>
    %cst_5 = arith.constant 0.000000e+00 : f32
    %6 = vector.broadcast %cst_5 : f32 to vector<512x32xf32>
    %7 = arith.maximumf %5, %6 : vector<512x32xf32>
    %8 = arith.truncf %7 : vector<512x32xf32> to vector<512x32xbf16>
    %c0_6 = arith.constant 0 : index
    %c0_7 = arith.constant 0 : index
    %9 = vector.load %arg4[%c0_6, %c0_7] : memref<512x32xbf16, #tpu.memory_space<vmem>>, vector<512x32xbf16>
    tpu.vector_store %arg4[%c0_6, %c0_7], %8 {strides = array<i32>} : memref<512x32xbf16, #tpu.memory_space<vmem>>, vector<512x32xbf16>,
    return
  }
  func.func @transform_0(%arg0: i32) -> (i32, i32) {
    %c0_i32 = arith.constant 0 : i32
    %c0_i32_0 = arith.constant 0 : i32
    return %arg0, %c0_i32 : i32, i32
  }
  func.func @transform_1(%arg0: i32) -> (i32, i32) {
    %c0_i32 = arith.constant 0 : i32
    %c0_i32_0 = arith.constant 0 : i32
    %c0_i32_1 = arith.constant 0 : i32
    return %c0_i32, %c0_i32_0 : i32, i32
  }
  func.func @transform_2(%arg0: i32) -> (i32, i32) {
    %c0_i32 = arith.constant 0 : i32
    %c0_i32_0 = arith.constant 0 : i32
    %c0_i32_1 = arith.constant 0 : i32
    return %c0_i32, %c0_i32_0 : i32, i32
  }
  func.func @transform_3(%arg0: i32) -> (i32, i32) {
    %c0_i32 = arith.constant 0 : i32
    %c0_i32_0 = arith.constant 0 : i32
    return %arg0, %c0_i32 : i32, i32
  }
}

module attributes {stable_mosaic.version = 11 : i64} {
  func.func @_conv_gemm_kernel(%arg0: i32, %arg1: memref<162x512xbf16, #tpu.memory_space<vmem>>, %arg2: memref<512x64xbf16, #tpu.memory_space<vmem>>, %arg3: memref<1x64xf32, #tpu.memory_space<vmem>>, %arg4: memref<162x64xbf16, #tpu.memory_space<vmem>>) attributes {dimension_semantics = [#tpu.dimension_semantics<parallel>], iteration_bounds = array<i64: 1>, scalar_prefetch = 0 : i64, scratch_operands = 0 : i64, tpu.core_type = #tpu.core_type<tc>, window_params = [{transform_indices = @transform_0, window_bounds = array<i64: 162, 512>}, {pipeline_mode = #tpu.pipeline_mode<synchronous>, transform_indices = @transform_1, window_bounds = array<i64: 512, 64>}, {pipeline_mode = #tpu.pipeline_mode<synchronous>, transform_indices = @transform_2, window_bounds = array<i64: 1, 64>}, {transform_indices = @transform_3, window_bounds = array<i64: 162, 64>}]} {
    %c0 = arith.constant 0 : index
    %c0_0 = arith.constant 0 : index
    %0 = vector.load %arg1[%c0, %c0_0] : memref<162x512xbf16, #tpu.memory_space<vmem>>, vector<162x512xbf16>
    %c0_1 = arith.constant 0 : index
    %c0_2 = arith.constant 0 : index
    %1 = vector.load %arg2[%c0_1, %c0_2] : memref<512x64xbf16, #tpu.memory_space<vmem>>, vector<512x64xbf16>
    %cst = arith.constant dense<0.000000e+00> : vector<162x64xf32>
    %2 = tpu.matmul %0, %1, %cst {dimension_numbers = #tpu.dot_dimension_numbers<[1], [0], [0], [1], [0, 0, 1, 1], [], []>} : vector<162x512xbf16>, vector<512x64xbf16>, vector<162x64xf32> -> vector<162x64xf32>
    %c0_3 = arith.constant 0 : index
    %c0_4 = arith.constant 0 : index
    %3 = vector.load %arg3[%c0_3, %c0_4] : memref<1x64xf32, #tpu.memory_space<vmem>>, vector<1x64xf32>
    %4 = vector.broadcast %3 : vector<1x64xf32> to vector<162x64xf32>
    %5 = arith.addf %2, %4 : vector<162x64xf32>
    %cst_5 = arith.constant 0.000000e+00 : f32
    %6 = vector.broadcast %cst_5 : f32 to vector<162x64xf32>
    %7 = arith.maximumf %5, %6 : vector<162x64xf32>
    %8 = arith.truncf %7 : vector<162x64xf32> to vector<162x64xbf16>
    %c0_6 = arith.constant 0 : index
    %c0_7 = arith.constant 0 : index
    %9 = vector.load %arg4[%c0_6, %c0_7] : memref<162x64xbf16, #tpu.memory_space<vmem>>, vector<162x64xbf16>
    tpu.vector_store %arg4[%c0_6, %c0_7], %8 {strides = array<i32>} : memref<162x64xbf16, #tpu.memory_space<vmem>>, vector<162x64xbf16>,
    return
  }
  func.func @transform_0(%arg0: i32) -> (i32, i32) {
    %c0_i32 = arith.constant 0 : i32
    %c0_i32_0 = arith.constant 0 : i32
    return %arg0, %c0_i32 : i32, i32
  }
  func.func @transform_1(%arg0: i32) -> (i32, i32) {
    %c0_i32 = arith.constant 0 : i32
    %c0_i32_0 = arith.constant 0 : i32
    %c0_i32_1 = arith.constant 0 : i32
    return %c0_i32, %c0_i32_0 : i32, i32
  }
  func.func @transform_2(%arg0: i32) -> (i32, i32) {
    %c0_i32 = arith.constant 0 : i32
    %c0_i32_0 = arith.constant 0 : i32
    %c0_i32_1 = arith.constant 0 : i32
    return %c0_i32, %c0_i32_0 : i32, i32
  }
  func.func @transform_3(%arg0: i32) -> (i32, i32) {
    %c0_i32 = arith.constant 0 : i32
    %c0_i32_0 = arith.constant 0 : i32
    return %arg0, %c0_i32 : i32, i32
  }
}

module attributes {stable_mosaic.version = 11 : i64} {
  func.func @_conv_gemm_kernel(%arg0: i32, %arg1: memref<98x576xbf16, #tpu.memory_space<vmem>>, %arg2: memref<576x64xbf16, #tpu.memory_space<vmem>>, %arg3: memref<1x64xf32, #tpu.memory_space<vmem>>, %arg4: memref<98x64xbf16, #tpu.memory_space<vmem>>) attributes {dimension_semantics = [#tpu.dimension_semantics<parallel>], iteration_bounds = array<i64: 1>, scalar_prefetch = 0 : i64, scratch_operands = 0 : i64, tpu.core_type = #tpu.core_type<tc>, window_params = [{transform_indices = @transform_0, window_bounds = array<i64: 98, 576>}, {pipeline_mode = #tpu.pipeline_mode<synchronous>, transform_indices = @transform_1, window_bounds = array<i64: 576, 64>}, {pipeline_mode = #tpu.pipeline_mode<synchronous>, transform_indices = @transform_2, window_bounds = array<i64: 1, 64>}, {transform_indices = @transform_3, window_bounds = array<i64: 98, 64>}]} {
    %c0 = arith.constant 0 : index
    %c0_0 = arith.constant 0 : index
    %0 = vector.load %arg1[%c0, %c0_0] : memref<98x576xbf16, #tpu.memory_space<vmem>>, vector<98x576xbf16>
    %c0_1 = arith.constant 0 : index
    %c0_2 = arith.constant 0 : index
    %1 = vector.load %arg2[%c0_1, %c0_2] : memref<576x64xbf16, #tpu.memory_space<vmem>>, vector<576x64xbf16>
    %cst = arith.constant dense<0.000000e+00> : vector<98x64xf32>
    %2 = tpu.matmul %0, %1, %cst {dimension_numbers = #tpu.dot_dimension_numbers<[1], [0], [0], [1], [0, 0, 1, 1], [], []>} : vector<98x576xbf16>, vector<576x64xbf16>, vector<98x64xf32> -> vector<98x64xf32>
    %c0_3 = arith.constant 0 : index
    %c0_4 = arith.constant 0 : index
    %3 = vector.load %arg3[%c0_3, %c0_4] : memref<1x64xf32, #tpu.memory_space<vmem>>, vector<1x64xf32>
    %4 = vector.broadcast %3 : vector<1x64xf32> to vector<98x64xf32>
    %5 = arith.addf %2, %4 : vector<98x64xf32>
    %cst_5 = arith.constant 0.000000e+00 : f32
    %6 = vector.broadcast %cst_5 : f32 to vector<98x64xf32>
    %7 = arith.maximumf %5, %6 : vector<98x64xf32>
    %8 = arith.truncf %7 : vector<98x64xf32> to vector<98x64xbf16>
    %c0_6 = arith.constant 0 : index
    %c0_7 = arith.constant 0 : index
    %9 = vector.load %arg4[%c0_6, %c0_7] : memref<98x64xbf16, #tpu.memory_space<vmem>>, vector<98x64xbf16>
    tpu.vector_store %arg4[%c0_6, %c0_7], %8 {strides = array<i32>} : memref<98x64xbf16, #tpu.memory_space<vmem>>, vector<98x64xbf16>,
    return
  }
  func.func @transform_0(%arg0: i32) -> (i32, i32) {
    %c0_i32 = arith.constant 0 : i32
    %c0_i32_0 = arith.constant 0 : i32
    return %arg0, %c0_i32 : i32, i32
  }
  func.func @transform_1(%arg0: i32) -> (i32, i32) {
    %c0_i32 = arith.constant 0 : i32
    %c0_i32_0 = arith.constant 0 : i32
    %c0_i32_1 = arith.constant 0 : i32
    return %c0_i32, %c0_i32_0 : i32, i32
  }
  func.func @transform_2(%arg0: i32) -> (i32, i32) {
    %c0_i32 = arith.constant 0 : i32
    %c0_i32_0 = arith.constant 0 : i32
    %c0_i32_1 = arith.constant 0 : i32
    return %c0_i32, %c0_i32_0 : i32, i32
  }
  func.func @transform_3(%arg0: i32) -> (i32, i32) {
    %c0_i32 = arith.constant 0 : i32
    %c0_i32_0 = arith.constant 0 : i32
    return %arg0, %c0_i32 : i32, i32
  }
}

module attributes {stable_mosaic.version = 11 : i64} {
  func.func @_fc_heads_kernel(%arg0: i32, %arg1: memref<2x640xbf16, #tpu.memory_space<vmem>>, %arg2: memref<640x512xbf16, #tpu.memory_space<vmem>>, %arg3: memref<1x512xf32, #tpu.memory_space<vmem>>, %arg4: memref<512x128xbf16, #tpu.memory_space<vmem>>, %arg5: memref<1x128xf32, #tpu.memory_space<vmem>>, %arg6: memref<2x128xf32, #tpu.memory_space<vmem>>, %arg7: memref<2x512xf32, #tpu.memory_space<vmem>>) attributes {dimension_semantics = [#tpu.dimension_semantics<arbitrary>], iteration_bounds = array<i64: 5>, scalar_prefetch = 0 : i64, scratch_operands = 1 : i64, tpu.core_type = #tpu.core_type<tc>, window_params = [{transform_indices = @transform_0, window_bounds = array<i64: 2, 640>}, {transform_indices = @transform_1, window_bounds = array<i64: 640, 512>}, {pipeline_mode = #tpu.pipeline_mode<synchronous>, transform_indices = @transform_2, window_bounds = array<i64: 1, 512>}, {pipeline_mode = #tpu.pipeline_mode<synchronous>, transform_indices = @transform_3, window_bounds = array<i64: 512, 128>}, {pipeline_mode = #tpu.pipeline_mode<synchronous>, transform_indices = @transform_4, window_bounds = array<i64: 1, 128>}, {pipeline_mode = #tpu.pipeline_mode<synchronous>, transform_indices = @transform_5, window_bounds = array<i64: 2, 128>}]} {
    %c0_i32 = arith.constant 0 : i32
    %0 = arith.cmpi eq, %arg0, %c0_i32 : i32
    %1 = arith.extui %0 : i1 to i32
    %c0_i32_0 = arith.constant 0 : i32
    %2 = arith.cmpi ne, %1, %c0_i32_0 : i32
    scf.if %2 {
      %cst_9 = arith.constant 0.000000e+00 : f32
      %12 = vector.broadcast %cst_9 : f32 to vector<2x512xf32>
      %c0_10 = arith.constant 0 : index
      %c0_11 = arith.constant 0 : index
      %13 = vector.load %arg7[%c0_10, %c0_11] : memref<2x512xf32, #tpu.memory_space<vmem>>, vector<2x512xf32>
      tpu.vector_store %arg7[%c0_10, %c0_11], %12 {strides = array<i32>} : memref<2x512xf32, #tpu.memory_space<vmem>>, vector<2x512xf32>,
    } else {
    }
    %c0 = arith.constant 0 : index
    %c0_1 = arith.constant 0 : index
    %3 = vector.load %arg7[%c0, %c0_1] : memref<2x512xf32, #tpu.memory_space<vmem>>, vector<2x512xf32>
    %c0_2 = arith.constant 0 : index
    %c0_3 = arith.constant 0 : index
    %4 = vector.load %arg1[%c0_2, %c0_3] : memref<2x640xbf16, #tpu.memory_space<vmem>>, vector<2x640xbf16>
    %c0_4 = arith.constant 0 : index
    %c0_5 = arith.constant 0 : index
    %5 = vector.load %arg2[%c0_4, %c0_5] : memref<640x512xbf16, #tpu.memory_space<vmem>>, vector<640x512xbf16>
    %cst = arith.constant dense<0.000000e+00> : vector<2x512xf32>
    %6 = tpu.matmul %4, %5, %cst {dimension_numbers = #tpu.dot_dimension_numbers<[1], [0], [0], [1], [0, 0, 1, 1], [], []>} : vector<2x640xbf16>, vector<640x512xbf16>, vector<2x512xf32> -> vector<2x512xf32>
    %7 = arith.addf %3, %6 : vector<2x512xf32>
    %c0_6 = arith.constant 0 : index
    %c0_7 = arith.constant 0 : index
    %8 = vector.load %arg7[%c0_6, %c0_7] : memref<2x512xf32, #tpu.memory_space<vmem>>, vector<2x512xf32>
    tpu.vector_store %arg7[%c0_6, %c0_7], %7 {strides = array<i32>} : memref<2x512xf32, #tpu.memory_space<vmem>>, vector<2x512xf32>,
    %c4_i32 = arith.constant 4 : i32
    %9 = arith.cmpi eq, %arg0, %c4_i32 : i32
    %10 = arith.extui %9 : i1 to i32
    %c0_i32_8 = arith.constant 0 : i32
    %11 = arith.cmpi ne, %10, %c0_i32_8 : i32
    scf.if %11 {
      %c0_9 = arith.constant 0 : index
      %c0_10 = arith.constant 0 : index
      %12 = vector.load %arg7[%c0_9, %c0_10] : memref<2x512xf32, #tpu.memory_space<vmem>>, vector<2x512xf32>
      %c0_11 = arith.constant 0 : index
      %c0_12 = arith.constant 0 : index
      %13 = vector.load %arg3[%c0_11, %c0_12] : memref<1x512xf32, #tpu.memory_space<vmem>>, vector<1x512xf32>
      %14 = vector.broadcast %13 : vector<1x512xf32> to vector<2x512xf32>
      %15 = arith.addf %12, %14 : vector<2x512xf32>
      %cst_13 = arith.constant 0.000000e+00 : f32
      %16 = vector.broadcast %cst_13 : f32 to vector<2x512xf32>
      %17 = arith.maximumf %15, %16 : vector<2x512xf32>
      %18 = arith.truncf %17 : vector<2x512xf32> to vector<2x512xbf16>
      %c0_14 = arith.constant 0 : index
      %c0_15 = arith.constant 0 : index
      %19 = vector.load %arg4[%c0_14, %c0_15] : memref<512x128xbf16, #tpu.memory_space<vmem>>, vector<512x128xbf16>
      %cst_16 = arith.constant dense<0.000000e+00> : vector<2x128xf32>
      %20 = tpu.matmul %18, %19, %cst_16 {dimension_numbers = #tpu.dot_dimension_numbers<[1], [0], [0], [1], [0, 0, 1, 1], [], []>} : vector<2x512xbf16>, vector<512x128xbf16>, vector<2x128xf32> -> vector<2x128xf32>
      %c0_17 = arith.constant 0 : index
      %c0_18 = arith.constant 0 : index
      %21 = vector.load %arg5[%c0_17, %c0_18] : memref<1x128xf32, #tpu.memory_space<vmem>>, vector<1x128xf32>
      %22 = vector.broadcast %21 : vector<1x128xf32> to vector<2x128xf32>
      %23 = arith.addf %20, %22 : vector<2x128xf32>
      %c0_19 = arith.constant 0 : index
      %c0_20 = arith.constant 0 : index
      %24 = vector.load %arg6[%c0_19, %c0_20] : memref<2x128xf32, #tpu.memory_space<vmem>>, vector<2x128xf32>
      tpu.vector_store %arg6[%c0_19, %c0_20], %23 {strides = array<i32>} : memref<2x128xf32, #tpu.memory_space<vmem>>, vector<2x128xf32>,
    } else {
    }
    return
  }
  func.func @transform_0(%arg0: i32) -> (i32, i32) {
    %c0_i32 = arith.constant 0 : i32
    %c0_i32_0 = arith.constant 0 : i32
    return %c0_i32, %arg0 : i32, i32
  }
  func.func @transform_1(%arg0: i32) -> (i32, i32) {
    %c0_i32 = arith.constant 0 : i32
    %c0_i32_0 = arith.constant 0 : i32
    return %arg0, %c0_i32 : i32, i32
  }
  func.func @transform_2(%arg0: i32) -> (i32, i32) {
    %c0_i32 = arith.constant 0 : i32
    %c0_i32_0 = arith.constant 0 : i32
    %c0_i32_1 = arith.constant 0 : i32
    return %c0_i32, %c0_i32_0 : i32, i32
  }
  func.func @transform_3(%arg0: i32) -> (i32, i32) {
    %c0_i32 = arith.constant 0 : i32
    %c0_i32_0 = arith.constant 0 : i32
    %c0_i32_1 = arith.constant 0 : i32
    return %c0_i32, %c0_i32_0 : i32, i32
  }
  func.func @transform_4(%arg0: i32) -> (i32, i32) {
    %c0_i32 = arith.constant 0 : i32
    %c0_i32_0 = arith.constant 0 : i32
    %c0_i32_1 = arith.constant 0 : i32
    return %c0_i32, %c0_i32_0 : i32, i32
  }
  func.func @transform_5(%arg0: i32) -> (i32, i32) {
    %c0_i32 = arith.constant 0 : i32
    %c0_i32_0 = arith.constant 0 : i32
    %c0_i32_1 = arith.constant 0 : i32
    return %c0_i32, %c0_i32_0 : i32, i32
  }
}

</mosaic_0001>

<bundles_post_ra>
// kernel: cnn_policy_forward.4
= control target key start
LH: loop header
LB: loop body
LE: loop exit
PB: predicated region body
PF: predicated region fallthrough
CT: control target
= control target key end

     0   :  { %s2265_s12 = smov 0   ;;  %s2267_s13 = smov 0   ;;  %s2779_s0 = inlined_call_operand.vmem [shape: bf16[800,64], index: 0, kind: input, shape index: {}]   ;;  %s2780_s1 = inlined_call_operand.vmem [shape: bf16[64,32], index: 1, kind: input, shape index: {}]   ;;  %s2781_s2 = inlined_call_operand.vmem [shape: f32[1,32], index: 2, kind: input, shape index: {}]   ;;  %s2782_s3 = inlined_call_operand.vmem [shape: bf16[800,32], index: 3, kind: output, shape index: {}]  }
   0x1   :  { %s2269_s14 = smov 0  }
   0x2 LB: > { %s2278_s15 = sadd.s32 4294967295, %s2211_s14   ;;  %s2280_s16 = sadd.s32 1, %s2211_s14   ;;  %s2211_s14 = sphi %s2269_s14, %s2789_s14   ;;  %s2207_s13 = sphi %s2267_s13, %s2788_s13   ;;  %s2203_s12 = sphi %s2265_s12, %s2787_s12  }
   0x3   : > { %s85_s17 = ssub.s32 %s2211_s14, %s2280_s16  ;;  %s88_s18 = sadd.s32 1, %s2207_s13 }
   0x4   : > { %p86_p0 = scmp.eq.s32.totalorder %s85_s17, 0  ;;  %p98_p1 = scmp.ne.s32.totalorder %s2207_s13, %s2203_s12 }
   0x5   : > { %p99_p2 = scmp.eq.s32.totalorder %s2278_s15, 1  ;;  %p1696_p3 = scmp.ge.s32.totalorder %s2211_s14, 1 }
   0x6   : > { %s2288_s19 = scalar_select %p86_p0, %s2207_s13, %s88_s18  }
   0x7   : > { %p2290_p4 = por %p99_p2, %p98_p1  ;;  %p146_p5 = scmp.lt.s32.totalorder %s2211_s14, 3 }
   0x9   : > { %p147_p6 = pnand %p1696_p3, %p146_p5 }
   0xa   : > { %v2121_v0 = vld [vmem:[%s2780_s1] sm:$0xff] (!%p147_p6)   ;;  %s2298_s23 = sshll.u32 (!%p147_p6), %s2278_s15, 6  ;;  %v2122_v1 = vld [vmem:[%s2780_s1 + $0x8] sm:$0xff] (!%p147_p6)   ;;  %v2123_v2 = vld [vmem:[%s2780_s1 + $0x10] sm:$0xff] (!%p147_p6)   ;;  %vm456_vm0 = vcmask (!%p147_p6), 523264   ;;  %s170_s8 = sand.u32 (!%p147_p6), 1, %s2203_s12  }
   0xb   : > { %150 = sbr.rel (%p147_p6) target bundleno = 397 (0x18d), region = 32  ;;  %p178_p7 = scmp.lt.s32.totalorder (!%p147_p6), %s2298_s23, 99  ;;  %1953 = vmatprep.subr.bf16.mxu0 (!%p147_p6), %v2121_v0  ;;  %2025 = vmatprep.subr.bf16.mxu1 (!%p147_p6), %v2121_v0  ;;  %v2124_v3 = vld [vmem:[%s2780_s1 + $0x18] sm:$0xff] (!%p147_p6)   ;;  %v2384_v36 = vld [vmem:[%s2781_s2] ss:$0 sm:$0xff] (!%p147_p6)  ;;  %vm1162_vm1 = vcmask (!%p147_p6), 257024  }
   0xc   : > { %1954 = vmatpush3.bf16.msra.mxu0 (!%p147_p6), %v2121_v0  ;;  %2029 = vmatpush3.bf16.msra.mxu1 (!%p147_p6), %v2121_v0  ;;  %s1697_s11 = sshll.u32 (!%p147_p6), %s170_s8, 8 }
   0xd   : > { %1955 = vmatprep.subr.bf16.mxu0 (!%p147_p6), %v2122_v1  ;;  %2026 = vmatprep.subr.bf16.mxu1 (!%p147_p6), %v2122_v1  ;;  %s2394_s12 = scalar_lea.vmem (!%p147_p6), [#allocation2], %s1697_s11  }
  0x10   : > { %1956 = vmatpush3.bf16.msra.mxu0 (!%p147_p6), %v2122_v1  ;;  %2030 = vmatpush3.bf16.msra.mxu1 (!%p147_p6), %v2122_v1 }
  0x11   : > { %1957 = vmatprep.subr.bf16.mxu0 (!%p147_p6), %v2123_v2  ;;  %2027 = vmatprep.subr.bf16.mxu1 (!%p147_p6), %v2123_v2 }
  0x12   : > { %s179_s26 = scalar_select %p178_p7, %s2298_s23, 99 }
  0x13   : > { %s1235_s14 = ssub.s32 (%p2290_p4), 100, %s2298_s23  ;;  %s1914_s17 = sshll.u32 (%p2290_p4), %s2278_s15, 8 }
  0x14   : > { %s1699_s29 = sshll.u32 %s179_s26, 2  ;;  %1958 = vmatpush3.bf16.msra.mxu0 %v2123_v2  ;;  %2031 = vmatpush3.bf16.msra.mxu1 %v2123_v2  ;;  %p1236_p8 = scmp.lt.s32.totalorder (%p2290_p4), %s1235_s14, 64 }
  0x15   : > { %s2314_s7 = scalar_lea.vmem %s2779_s0, %s1699_s29  ;;  %1959 = vmatprep.subr.bf16.mxu0 %v2124_v3  ;;  %2028 = vmatprep.subr.bf16.mxu1 %v2124_v3  ;;  %s2587_s22 = scalar_lea.vmem (%p2290_p4), %s2782_s3, %s1914_s17  }
  0x16   : > { %v2125_v4 = vld [vmem:[%s2314_s7] sm:$0xff]   ;;  %v2127_v6 = vld [vmem:[%s2314_s7 + $0x8] sm:$0xff]   ;;  %v2129_v8 = vld [vmem:[%s2314_s7 + $0x10] sm:$0xff]  }
  0x17   : > { %v2126_v5 = vld [vmem:[%s2314_s7 + $0x80] sm:$0xff]   ;;  %1961 = vmatprep.mubr.msk.bf16.mxu0 %vm456_vm0, %v2125_v4  ;;  %v2128_v7 = vld [vmem:[%s2314_s7 + $0x88] sm:$0xff]   ;;  %v2130_v9 = vld [vmem:[%s2314_s7 + $0x90] sm:$0xff]  }
  0x18   : > { %1993 = vmatprep.mubr.msk.bf16.mxu1 %vm456_vm0, %v2126_v5  ;;  %1960 = vmatpush3.bf16.msra.mxu0 %v2124_v3  ;;  %v2131_v10 = vld [vmem:[%s2314_s7 + $0x18] sm:$0xff]   ;;  %v2133_v12 = vld [vmem:[%s2314_s7 + $0x20] sm:$0xff]   ;;  %v2135_v14 = vld [vmem:[%s2314_s7 + $0x28] sm:$0xff]  }
  0x19   : > { %2032 = vmatpush3.bf16.msra.mxu1 %v2124_v3  ;;  %v2132_v11 = vld [vmem:[%s2314_s7 + $0x98] sm:$0xff]   ;;  %v2134_v13 = vld [vmem:[%s2314_s7 + $0xa0] sm:$0xff]   ;;  %v2136_v15 = vld [vmem:[%s2314_s7 + $0xa8] sm:$0xff]  }
  0x1a   : > { %v2137_v16 = vld [vmem:[%s2314_s7 + $0x30] sm:$0xff]   ;;  %v2139_v18 = vld [vmem:[%s2314_s7 + $0x38] sm:$0xff]   ;;  %v2141_v20 = vld [vmem:[%s2314_s7 + $0x40] sm:$0xff]  }
  0x1b   : > { %1962 = vmatmul.mubr.msk.bf16.vlgmr.msra.gmra.mrb[0].mxu0 %vm456_vm0, %v2127_v6  ;;  %v2138_v17 = vld [vmem:[%s2314_s7 + $0xb0] sm:$0xff]   ;;  %v2140_v19 = vld [vmem:[%s2314_s7 + $0xb8] sm:$0xff]   ;;  %v2142_v21 = vld [vmem:[%s2314_s7 + $0xc0] sm:$0xff]  }
  0x1c   : > { %1994 = vmatmul.mubr.msk.bf16.vlgmr.msra.gmra.mrb[0].mxu1 %vm456_vm0, %v2128_v7  ;;  %1965 = vmatprep.mubr.msk.bf16.mxu0 %vm456_vm0, %v2129_v8  ;;  %v2143_v22 = vld [vmem:[%s2314_s7 + $0x48] sm:$0xff]   ;;  %v2145_v24 = vld [vmem:[%s2314_s7 + $0x50] sm:$0xff]   ;;  %v2147_v26 = vld [vmem:[%s2314_s7 + $0x58] sm:$0xff]  }
  0x1d   : > { %1997 = vmatprep.mubr.msk.bf16.mxu1 %vm456_vm0, %v2130_v9  ;;  %v2144_v23 = vld [vmem:[%s2314_s7 + $0xc8] sm:$0xff]   ;;  %v2146_v25 = vld [vmem:[%s2314_s7 + $0xd0] sm:$0xff]   ;;  %v2148_v27 = vld [vmem:[%s2314_s7 + $0xd8] sm:$0xff]  }
  0x1e   : > { %v2149_v28 = vld [vmem:[%s2314_s7 + $0x60] sm:$0xff]   ;;  %v2151_v30 = vld [vmem:[%s2314_s7 + $0x68] sm:$0xff]   ;;  %v2153_v32 = vld [vmem:[%s2314_s7 + $0x70] sm:$0xff]  }
  0x1f   : > { %v2150_v29 = vld [vmem:[%s2314_s7 + $0xe0] sm:$0xff]   ;;  %v2152_v31 = vld [vmem:[%s2314_s7 + $0xe8] sm:$0xff]   ;;  %v2154_v33 = vld [vmem:[%s2314_s7 + $0xf0] sm:$0xff]  }
  0x20   : > { %v2155_v34 = vld [vmem:[%s2314_s7 + $0x78] sm:$0xff]  }
  0x21   : > { %v2156_v35 = vld [vmem:[%s2314_s7 + $0xf8] sm:$0xff]  }
  0x23   : > { %1966 = vmatmul.mubr.msk.bf16.gmra.mrb[4].mxu0 %vm456_vm0, %v2131_v10 }
  0x24   : > { %1998 = vmatmul.mubr.msk.bf16.gmra.mrb[4].mxu1 %vm456_vm0, %v2132_v11  ;;  %1969 = vmatprep.mubr.msk.bf16.mxu0 %vm456_vm0, %v2133_v12 }
  0x25   : > { %2001 = vmatprep.mubr.msk.bf16.mxu1 %vm456_vm0, %v2134_v13 }
  0x2b   : > { %1970 = vmatmul.mubr.msk.bf16.gmra.mrb[8].mxu0 %vm456_vm0, %v2135_v14 }
  0x2c   : > { %2002 = vmatmul.mubr.msk.bf16.gmra.mrb[8].mxu1 %vm456_vm0, %v2136_v15  ;;  %1973 = vmatprep.mubr.msk.bf16.mxu0 %vm456_vm0, %v2137_v16 }
  0x2d   : > { %2005 = vmatprep.mubr.msk.bf16.mxu1 %vm456_vm0, %v2138_v17 }
  0x33   : > { %1974 = vmatmul.mubr.msk.bf16.gmra.mrb[12].mxu0 %vm456_vm0, %v2139_v18 }
  0x34   : > { %2006 = vmatmul.mubr.msk.bf16.gmra.mrb[12].mxu1 %vm456_vm0, %v2140_v19  ;;  %1977 = vmatprep.mubr.msk.bf16.mxu0 %vm456_vm0, %v2141_v20 }
  0x35   : > { %2009 = vmatprep.mubr.msk.bf16.mxu1 %vm456_vm0, %v2142_v21 }
  0x3b   : > { %1978 = vmatmul.mubr.msk.bf16.gmra.mrb[16].mxu0 %vm456_vm0, %v2143_v22 }
  0x3c   : > { %2010 = vmatmul.mubr.msk.bf16.gmra.mrb[16].mxu1 %vm456_vm0, %v2144_v23  ;;  %1981 = vmatprep.mubr.msk.bf16.mxu0 %vm456_vm0, %v2145_v24 }
  0x3d   : > { %2013 = vmatprep.mubr.msk.bf16.mxu1 %vm456_vm0, %v2146_v25 }
  0x43   : > { %1982 = vmatmul.mubr.msk.bf16.gmra.mrb[20].mxu0 %vm456_vm0, %v2147_v26 }
  0x44   : > { %2014 = vmatmul.mubr.msk.bf16.gmra.mrb[20].mxu1 %vm456_vm0, %v2148_v27  ;;  %1985 = vmatprep.mubr.msk.bf16.mxu0 %vm456_vm0, %v2149_v28 }
  0x45   : > { %2017 = vmatprep.mubr.msk.bf16.mxu1 %vm456_vm0, %v2150_v29 }
  0x4b   : > { %1986 = vmatmul.mubr.msk.bf16.gmra.mrb[24].mxu0 %vm456_vm0, %v2151_v30 }
  0x4c   : > { %2018 = vmatmul.mubr.msk.bf16.gmra.mrb[24].mxu1 %vm456_vm0, %v2152_v31  ;;  %1989 = vmatprep.mubr.msk.bf16.mxu0 %vm456_vm0, %v2153_v32 }
  0x4d   : > { %2021 = vmatprep.mubr.msk.bf16.mxu1 %vm456_vm0, %v2154_v33 }
  0x53   : > { %1990 = vmatmul.mubr.msk.bf16.gmra.mrb[28].mxu0 %vm456_vm0, %v2155_v34 }
  0x54   : > { %2022 = vmatmul.mubr.msk.bf16.gmra.mrb[28].mxu1 %vm456_vm0, %v2156_v35 }
  0xee   : > { %v1963_v37 = vpop.f32.mrb[0].mxu0 }
  0xef   : > { %v1995_v38 = vpop.f32.mrb[0].mxu1  ;;  %v596_v39 = vadd.f32 %v1963_v37, %v2384_v36  ;;  %v587_v41 = vpop.f32.mrb[1].mxu0 }
  0xf0   : > { %v724_v40 = vadd.f32 %v1995_v38, %v2384_v36  ;;  %v715_v42 = vpop.f32.mrb[1].mxu1  ;;  %v588_v43 = vadd.f32 %v2384_v36, %v587_v41  ;;  %v1964_v45 = vpop.f32.mrb[2].mxu0 }
  0xf1   : > { %v716_v44 = vadd.f32 %v2384_v36, %v715_v42  ;;  %v1996_v46 = vpop.f32.mrb[2].mxu1  ;;  %v844_v47 = vmax.f32 %v596_v39, 0.0  ;;  %v599_v49 = vadd.f32 %v1964_v45, %v2384_v36  ;;  %v590_v51 = vpop.f32.mrb[3].mxu0 }
  0xf2   : > { %v876_v48 = vmax.f32 %v724_v40, 0.0  ;;  %v727_v50 = vadd.f32 %v1996_v46, %v2384_v36  ;;  %v718_v52 = vpop.f32.mrb[3].mxu1  ;;  %v842_v53 = vmax.f32 %v588_v43, 0.0  ;;  %v591_v55 = vadd.f32 %v2384_v36, %v590_v51 }
  0xf3   : > { %v874_v54 = vmax.f32 %v716_v44, 0.0  ;;  %v719_v56 = vadd.f32 %v2384_v36, %v718_v52  ;;  %v1852_v57 = vpack.c.bf16 %v844_v47, %v844_v47  ;;  %v845_v59 = vmax.f32 %v599_v49, 0.0 }
  0xf4   : > { %v1884_v58 = vpack.c.bf16 %v876_v48, %v876_v48  ;;  %v877_v60 = vmax.f32 %v727_v50, 0.0  ;;  %v1850_v61 = vpack.c.bf16 %v842_v53, %v842_v53  ;;  %v843_v63 = vmax.f32 %v591_v55, 0.0 }
  0xf5   : > { %v1882_v62 = vpack.c.bf16 %v874_v54, %v874_v54  ;;  %v875_v0 = vmax.f32 %v719_v56, 0.0  ;;  %1165 = vst.msk [vmem:[%s2394_s12 + $0x8] sm:$0xf] %vm1162_vm1, %v1852_v57  ;;  %v1853_v1 = vpack.c.bf16 %v845_v59, %v845_v59 }
  0xf6   : > { %1197 = vst.msk [vmem:[%s2394_s12 + $0x88] sm:$0xf] %vm1162_vm1, %v1884_v58  ;;  %v1885_v2 = vpack.c.bf16 %v877_v60, %v877_v60  ;;  %1163 = vst.msk [vmem:[%s2394_s12] sm:$0xf] %vm1162_vm1, %v1850_v61  ;;  %v1851_v3 = vpack.c.bf16 %v843_v63, %v843_v63  ;;  %v1967_v5 = vpop.f32.mrb[4].mxu0 }
  0xf7   : > { %1195 = vst.msk [vmem:[%s2394_s12 + $0x80] sm:$0xf] %vm1162_vm1, %v1882_v62  ;;  %v1883_v4 = vpack.c.bf16 %v875_v0, %v875_v0  ;;  %v1999_v6 = vpop.f32.mrb[4].mxu1  ;;  %1166 = vst.msk [vmem:[%s2394_s12 + $0xc] sm:$0xf] %vm1162_vm1, %v1853_v1  ;;  %v612_v7 = vadd.f32 %v1967_v5, %v2384_v36  ;;  %v603_v9 = vpop.f32.mrb[5].mxu0 }
  0xf8   : > { %1198 = vst.msk [vmem:[%s2394_s12 + $0x8c] sm:$0xf] %vm1162_vm1, %v1885_v2  ;;  %v740_v8 = vadd.f32 %v1999_v6, %v2384_v36  ;;  %v731_v10 = vpop.f32.mrb[5].mxu1  ;;  %1164 = vst.msk [vmem:[%s2394_s12 + $0x4] sm:$0xf] %vm1162_vm1, %v1851_v3  ;;  %v604_v11 = vadd.f32 %v2384_v36, %v603_v9  ;;  %v1968_v13 = vpop.f32.mrb[6].mxu0 }
  0xf9   : > { %1196 = vst.msk [vmem:[%s2394_s12 + $0x84] sm:$0xf] %vm1162_vm1, %v1883_v4  ;;  %v732_v12 = vadd.f32 %v2384_v36, %v731_v10  ;;  %v2000_v14 = vpop.f32.mrb[6].mxu1  ;;  %v848_v15 = vmax.f32 %v612_v7, 0.0  ;;  %v615_v17 = vadd.f32 %v1968_v13, %v2384_v36  ;;  %v606_v19 = vpop.f32.mrb[7].mxu0 }
  0xfa   : > { %v880_v16 = vmax.f32 %v740_v8, 0.0  ;;  %v743_v18 = vadd.f32 %v2000_v14, %v2384_v36  ;;  %v734_v20 = vpop.f32.mrb[7].mxu1  ;;  %v846_v21 = vmax.f32 %v604_v11, 0.0  ;;  %v607_v23 = vadd.f32 %v2384_v36, %v606_v19 }
  0xfb   : > { %v878_v22 = vmax.f32 %v732_v12, 0.0  ;;  %v735_v24 = vadd.f32 %v2384_v36, %v734_v20  ;;  %v1856_v25 = vpack.c.bf16 %v848_v15, %v848_v15  ;;  %v849_v27 = vmax.f32 %v615_v17, 0.0 }
  0xfc   : > { %v1888_v26 = vpack.c.bf16 %v880_v16, %v880_v16  ;;  %v881_v28 = vmax.f32 %v743_v18, 0.0  ;;  %v1854_v29 = vpack.c.bf16 %v846_v21, %v846_v21  ;;  %v847_v31 = vmax.f32 %v607_v23, 0.0 }
  0xfd   : > { %v1886_v30 = vpack.c.bf16 %v878_v22, %v878_v22  ;;  %v879_v32 = vmax.f32 %v735_v24, 0.0  ;;  %1169 = vst.msk [vmem:[%s2394_s12 + $0x18] sm:$0xf] %vm1162_vm1, %v1856_v25  ;;  %v1857_v33 = vpack.c.bf16 %v849_v27, %v849_v27 }
  0xfe   : > { %1201 = vst.msk [vmem:[%s2394_s12 + $0x98] sm:$0xf] %vm1162_vm1, %v1888_v26  ;;  %v1889_v34 = vpack.c.bf16 %v881_v28, %v881_v28  ;;  %1167 = vst.msk [vmem:[%s2394_s12 + $0x10] sm:$0xf] %vm1162_vm1, %v1854_v29  ;;  %v1855_v35 = vpack.c.bf16 %v847_v31, %v847_v31  ;;  %v1971_v38 = vpop.f32.mrb[8].mxu0 }
  0xff   : > { %1199 = vst.msk [vmem:[%s2394_s12 + $0x90] sm:$0xf] %vm1162_vm1, %v1886_v30  ;;  %v1887_v37 = vpack.c.bf16 %v879_v32, %v879_v32  ;;  %v2003_v39 = vpop.f32.mrb[8].mxu1  ;;  %1170 = vst.msk [vmem:[%s2394_s12 + $0x1c] sm:$0xf] %vm1162_vm1, %v1857_v33  ;;  %v628_v40 = vadd.f32 %v1971_v38, %v2384_v36  ;;  %v619_v42 = vpop.f32.mrb[9].mxu0 }
 0x100   : > { %1202 = vst.msk [vmem:[%s2394_s12 + $0x9c] sm:$0xf] %vm1162_vm1, %v1889_v34  ;;  %v756_v41 = vadd.f32 %v2003_v39, %v2384_v36  ;;  %v747_v43 = vpop.f32.mrb[9].mxu1  ;;  %1168 = vst.msk [vmem:[%s2394_s12 + $0x14] sm:$0xf] %vm1162_vm1, %v1855_v35  ;;  %v620_v44 = vadd.f32 %v2384_v36, %v619_v42  ;;  %v1972_v46 = vpop.f32.mrb[10].mxu0 }
 0x101   : > { %1200 = vst.msk [vmem:[%s2394_s12 + $0x94] sm:$0xf] %vm1162_vm1, %v1887_v37  ;;  %v748_v45 = vadd.f32 %v2384_v36, %v747_v43  ;;  %v2004_v47 = vpop.f32.mrb[10].mxu1  ;;  %v852_v48 = vmax.f32 %v628_v40, 0.0  ;;  %v631_v50 = vadd.f32 %v1972_v46, %v2384_v36  ;;  %v622_v52 = vpop.f32.mrb[11].mxu0 }
 0x102   : > { %v884_v49 = vmax.f32 %v756_v41, 0.0  ;;  %v759_v51 = vadd.f32 %v2004_v47, %v2384_v36  ;;  %v750_v53 = vpop.f32.mrb[11].mxu1  ;;  %v850_v54 = vmax.f32 %v620_v44, 0.0  ;;  %v623_v56 = vadd.f32 %v2384_v36, %v622_v52 }
 0x103   : > { %v882_v55 = vmax.f32 %v748_v45, 0.0  ;;  %v751_v57 = vadd.f32 %v2384_v36, %v750_v53  ;;  %v1860_v58 = vpack.c.bf16 %v852_v48, %v852_v48  ;;  %v853_v60 = vmax.f32 %v631_v50, 0.0 }
 0x104   : > { %v1892_v59 = vpack.c.bf16 %v884_v49, %v884_v49  ;;  %v885_v61 = vmax.f32 %v759_v51, 0.0  ;;  %v1858_v62 = vpack.c.bf16 %v850_v54, %v850_v54  ;;  %v851_v0 = vmax.f32 %v623_v56, 0.0 }
 0x105   : > { %v1890_v63 = vpack.c.bf16 %v882_v55, %v882_v55  ;;  %v883_v1 = vmax.f32 %v751_v57, 0.0  ;;  %1173 = vst.msk [vmem:[%s2394_s12 + $0x28] sm:$0xf] %vm1162_vm1, %v1860_v58  ;;  %v1861_v2 = vpack.c.bf16 %v853_v60, %v853_v60 }
 0x106   : > { %1205 = vst.msk [vmem:[%s2394_s12 + $0xa8] sm:$0xf] %vm1162_vm1, %v1892_v59  ;;  %v1893_v3 = vpack.c.bf16 %v885_v61, %v885_v61  ;;  %1171 = vst.msk [vmem:[%s2394_s12 + $0x20] sm:$0xf] %vm1162_vm1, %v1858_v62  ;;  %v1859_v4 = vpack.c.bf16 %v851_v0, %v851_v0  ;;  %v1975_v6 = vpop.f32.mrb[12].mxu0 }
 0x107   : > { %1203 = vst.msk [vmem:[%s2394_s12 + $0xa0] sm:$0xf] %vm1162_vm1, %v1890_v63  ;;  %v1891_v5 = vpack.c.bf16 %v883_v1, %v883_v1  ;;  %v2007_v7 = vpop.f32.mrb[12].mxu1  ;;  %1174 = vst.msk [vmem:[%s2394_s12 + $0x2c] sm:$0xf] %vm1162_vm1, %v1861_v2  ;;  %v644_v8 = vadd.f32 %v1975_v6, %v2384_v36  ;;  %v635_v10 = vpop.f32.mrb[13].mxu0 }
 0x108   : > { %1206 = vst.msk [vmem:[%s2394_s12 + $0xac] sm:$0xf] %vm1162_vm1, %v1893_v3  ;;  %v772_v9 = vadd.f32 %v2007_v7, %v2384_v36  ;;  %v763_v11 = vpop.f32.mrb[13].mxu1  ;;  %1172 = vst.msk [vmem:[%s2394_s12 + $0x24] sm:$0xf] %vm1162_vm1, %v1859_v4  ;;  %v636_v12 = vadd.f32 %v2384_v36, %v635_v10  ;;  %v1976_v14 = vpop.f32.mrb[14].mxu0 }
 0x109   : > { %1204 = vst.msk [vmem:[%s2394_s12 + $0xa4] sm:$0xf] %vm1162_vm1, %v1891_v5  ;;  %v764_v13 = vadd.f32 %v2384_v36, %v763_v11  ;;  %v2008_v15 = vpop.f32.mrb[14].mxu1  ;;  %v856_v16 = vmax.f32 %v644_v8, 0.0  ;;  %v647_v18 = vadd.f32 %v1976_v14, %v2384_v36  ;;  %v638_v20 = vpop.f32.mrb[15].mxu0 }
 0x10a   : > { %v888_v17 = vmax.f32 %v772_v9, 0.0  ;;  %v775_v19 = vadd.f32 %v2008_v15, %v2384_v36  ;;  %v766_v21 = vpop.f32.mrb[15].mxu1  ;;  %v854_v22 = vmax.f32 %v636_v12, 0.0  ;;  %v639_v24 = vadd.f32 %v2384_v36, %v638_v20 }
 0x10b   : > { %v886_v23 = vmax.f32 %v764_v13, 0.0  ;;  %v767_v25 = vadd.f32 %v2384_v36, %v766_v21  ;;  %v1864_v26 = vpack.c.bf16 %v856_v16, %v856_v16  ;;  %v857_v28 = vmax.f32 %v647_v18, 0.0 }
 0x10c   : > { %v1896_v27 = vpack.c.bf16 %v888_v17, %v888_v17  ;;  %v889_v29 = vmax.f32 %v775_v19, 0.0  ;;  %v1862_v30 = vpack.c.bf16 %v854_v22, %v854_v22  ;;  %v855_v32 = vmax.f32 %v639_v24, 0.0 }
 0x10d   : > { %v1894_v31 = vpack.c.bf16 %v886_v23, %v886_v23  ;;  %v887_v33 = vmax.f32 %v767_v25, 0.0  ;;  %1177 = vst.msk [vmem:[%s2394_s12 + $0x38] sm:$0xf] %vm1162_vm1, %v1864_v26  ;;  %v1865_v34 = vpack.c.bf16 %v857_v28, %v857_v28 }
 0x10e   : > { %1209 = vst.msk [vmem:[%s2394_s12 + $0xb8] sm:$0xf] %vm1162_vm1, %v1896_v27  ;;  %v1897_v35 = vpack.c.bf16 %v889_v29, %v889_v29  ;;  %1175 = vst.msk [vmem:[%s2394_s12 + $0x30] sm:$0xf] %vm1162_vm1, %v1862_v30  ;;  %v1863_v37 = vpack.c.bf16 %v855_v32, %v855_v32  ;;  %v1979_v39 = vpop.f32.mrb[16].mxu0 }
 0x10f   : > { %1207 = vst.msk [vmem:[%s2394_s12 + $0xb0] sm:$0xf] %vm1162_vm1, %v1894_v31  ;;  %v1895_v38 = vpack.c.bf16 %v887_v33, %v887_v33  ;;  %v2011_v40 = vpop.f32.mrb[16].mxu1  ;;  %1178 = vst.msk [vmem:[%s2394_s12 + $0x3c] sm:$0xf] %vm1162_vm1, %v1865_v34  ;;  %v660_v41 = vadd.f32 %v1979_v39, %v2384_v36  ;;  %v651_v43 = vpop.f32.mrb[17].mxu0 }
 0x110   : > { %1210 = vst.msk [vmem:[%s2394_s12 + $0xbc] sm:$0xf] %vm1162_vm1, %v1897_v35  ;;  %v788_v42 = vadd.f32 %v2011_v40, %v2384_v36  ;;  %v779_v44 = vpop.f32.mrb[17].mxu1  ;;  %1176 = vst.msk [vmem:[%s2394_s12 + $0x34] sm:$0xf] %vm1162_vm1, %v1863_v37  ;;  %v652_v45 = vadd.f32 %v2384_v36, %v651_v43  ;;  %v1980_v47 = vpop.f32.mrb[18].mxu0 }
 0x111   : > { %1208 = vst.msk [vmem:[%s2394_s12 + $0xb4] sm:$0xf] %vm1162_vm1, %v1895_v38  ;;  %v780_v46 = vadd.f32 %v2384_v36, %v779_v44  ;;  %v2012_v48 = vpop.f32.mrb[18].mxu1  ;;  %v860_v49 = vmax.f32 %v660_v41, 0.0  ;;  %v663_v51 = vadd.f32 %v1980_v47, %v2384_v36  ;;  %v654_v53 = vpop.f32.mrb[19].mxu0 }
 0x112   : > { %v892_v50 = vmax.f32 %v788_v42, 0.0  ;;  %v791_v52 = vadd.f32 %v2012_v48, %v2384_v36  ;;  %v782_v54 = vpop.f32.mrb[19].mxu1  ;;  %v858_v55 = vmax.f32 %v652_v45, 0.0  ;;  %v655_v57 = vadd.f32 %v2384_v36, %v654_v53 }
 0x113   : > { %v890_v56 = vmax.f32 %v780_v46, 0.0  ;;  %v783_v58 = vadd.f32 %v2384_v36, %v782_v54  ;;  %v1868_v59 = vpack.c.bf16 %v860_v49, %v860_v49  ;;  %v861_v61 = vmax.f32 %v663_v51, 0.0 }
 0x114   : > { %v1900_v60 = vpack.c.bf16 %v892_v50, %v892_v50  ;;  %v893_v62 = vmax.f32 %v791_v52, 0.0  ;;  %v1866_v63 = vpack.c.bf16 %v858_v55, %v858_v55  ;;  %v859_v1 = vmax.f32 %v655_v57, 0.0 }
 0x115   : > { %v1898_v0 = vpack.c.bf16 %v890_v56, %v890_v56  ;;  %v891_v2 = vmax.f32 %v783_v58, 0.0  ;;  %1181 = vst.msk [vmem:[%s2394_s12 + $0x48] sm:$0xf] %vm1162_vm1, %v1868_v59  ;;  %v1869_v3 = vpack.c.bf16 %v861_v61, %v861_v61 }
 0x116   : > { %1213 = vst.msk [vmem:[%s2394_s12 + $0xc8] sm:$0xf] %vm1162_vm1, %v1900_v60  ;;  %v1901_v4 = vpack.c.bf16 %v893_v62, %v893_v62  ;;  %1179 = vst.msk [vmem:[%s2394_s12 + $0x40] sm:$0xf] %vm1162_vm1, %v1866_v63  ;;  %v1867_v5 = vpack.c.bf16 %v859_v1, %v859_v1  ;;  %v1983_v7 = vpop.f32.mrb[20].mxu0 }
 0x117   : > { %1211 = vst.msk [vmem:[%s2394_s12 + $0xc0] sm:$0xf] %vm1162_vm1, %v1898_v0  ;;  %v1899_v6 = vpack.c.bf16 %v891_v2, %v891_v2  ;;  %v2015_v8 = vpop.f32.mrb[20].mxu1  ;;  %1182 = vst.msk [vmem:[%s2394_s12 + $0x4c] sm:$0xf] %vm1162_vm1, %v1869_v3  ;;  %v676_v9 = vadd.f32 %v1983_v7, %v2384_v36  ;;  %v667_v11 = vpop.f32.mrb[21].mxu0 }
 0x118   : > { %1214 = vst.msk [vmem:[%s2394_s12 + $0xcc] sm:$0xf] %vm1162_vm1, %v1901_v4  ;;  %v804_v10 = vadd.f32 %v2015_v8, %v2384_v36  ;;  %v795_v12 = vpop.f32.mrb[21].mxu1  ;;  %1180 = vst.msk [vmem:[%s2394_s12 + $0x44] sm:$0xf] %vm1162_vm1, %v1867_v5  ;;  %v668_v13 = vadd.f32 %v2384_v36, %v667_v11  ;;  %v1984_v15 = vpop.f32.mrb[22].mxu0 }
 0x119   : > { %1212 = vst.msk [vmem:[%s2394_s12 + $0xc4] sm:$0xf] %vm1162_vm1, %v1899_v6  ;;  %v796_v14 = vadd.f32 %v2384_v36, %v795_v12  ;;  %v2016_v16 = vpop.f32.mrb[22].mxu1  ;;  %v864_v17 = vmax.f32 %v676_v9, 0.0  ;;  %v679_v19 = vadd.f32 %v1984_v15, %v2384_v36  ;;  %v670_v21 = vpop.f32.mrb[23].mxu0 }
 0x11a   : > { %v896_v18 = vmax.f32 %v804_v10, 0.0  ;;  %v807_v20 = vadd.f32 %v2016_v16, %v2384_v36  ;;  %v798_v22 = vpop.f32.mrb[23].mxu1  ;;  %v862_v23 = vmax.f32 %v668_v13, 0.0  ;;  %v671_v25 = vadd.f32 %v2384_v36, %v670_v21 }
 0x11b   : > { %v894_v24 = vmax.f32 %v796_v14, 0.0  ;;  %v799_v26 = vadd.f32 %v2384_v36, %v798_v22  ;;  %v1872_v27 = vpack.c.bf16 %v864_v17, %v864_v17  ;;  %v865_v29 = vmax.f32 %v679_v19, 0.0 }
 0x11c   : > { %v1904_v28 = vpack.c.bf16 %v896_v18, %v896_v18  ;;  %v897_v30 = vmax.f32 %v807_v20, 0.0  ;;  %v1870_v31 = vpack.c.bf16 %v862_v23, %v862_v23  ;;  %v863_v33 = vmax.f32 %v671_v25, 0.0 }
 0x11d   : > { %v1902_v32 = vpack.c.bf16 %v894_v24, %v894_v24  ;;  %v895_v34 = vmax.f32 %v799_v26, 0.0  ;;  %1185 = vst.msk [vmem:[%s2394_s12 + $0x58] sm:$0xf] %vm1162_vm1, %v1872_v27  ;;  %v1873_v35 = vpack.c.bf16 %v865_v29, %v865_v29 }
 0x11e   : > { %1217 = vst.msk [vmem:[%s2394_s12 + $0xd8] sm:$0xf] %vm1162_vm1, %v1904_v28  ;;  %v1905_v37 = vpack.c.bf16 %v897_v30, %v897_v30  ;;  %1183 = vst.msk [vmem:[%s2394_s12 + $0x50] sm:$0xf] %vm1162_vm1, %v1870_v31  ;;  %v1871_v38 = vpack.c.bf16 %v863_v33, %v863_v33  ;;  %v1987_v40 = vpop.f32.mrb[24].mxu0 }
 0x11f   : > { %1215 = vst.msk [vmem:[%s2394_s12 + $0xd0] sm:$0xf] %vm1162_vm1, %v1902_v32  ;;  %v1903_v39 = vpack.c.bf16 %v895_v34, %v895_v34  ;;  %v2019_v41 = vpop.f32.mrb[24].mxu1  ;;  %1186 = vst.msk [vmem:[%s2394_s12 + $0x5c] sm:$0xf] %vm1162_vm1, %v1873_v35  ;;  %v692_v42 = vadd.f32 %v1987_v40, %v2384_v36  ;;  %v683_v44 = vpop.f32.mrb[25].mxu0 }
 0x120   : > { %1218 = vst.msk [vmem:[%s2394_s12 + $0xdc] sm:$0xf] %vm1162_vm1, %v1905_v37  ;;  %v820_v43 = vadd.f32 %v2019_v41, %v2384_v36  ;;  %v811_v45 = vpop.f32.mrb[25].mxu1  ;;  %1184 = vst.msk [vmem:[%s2394_s12 + $0x54] sm:$0xf] %vm1162_vm1, %v1871_v38  ;;  %v684_v46 = vadd.f32 %v2384_v36, %v683_v44  ;;  %v1988_v48 = vpop.f32.mrb[26].mxu0 }
 0x121   : > { %1216 = vst.msk [vmem:[%s2394_s12 + $0xd4] sm:$0xf] %vm1162_vm1, %v1903_v39  ;;  %v812_v47 = vadd.f32 %v2384_v36, %v811_v45  ;;  %v2020_v49 = vpop.f32.mrb[26].mxu1  ;;  %v868_v50 = vmax.f32 %v692_v42, 0.0  ;;  %v695_v52 = vadd.f32 %v1988_v48, %v2384_v36  ;;  %v686_v54 = vpop.f32.mrb[27].mxu0 }
 0x122   : > { %v900_v51 = vmax.f32 %v820_v43, 0.0  ;;  %v823_v53 = vadd.f32 %v2020_v49, %v2384_v36  ;;  %v814_v55 = vpop.f32.mrb[27].mxu1  ;;  %v866_v56 = vmax.f32 %v684_v46, 0.0  ;;  %v687_v58 = vadd.f32 %v2384_v36, %v686_v54 }
 0x123   : > { %v898_v57 = vmax.f32 %v812_v47, 0.0  ;;  %v815_v59 = vadd.f32 %v2384_v36, %v814_v55  ;;  %v1876_v60 = vpack.c.bf16 %v868_v50, %v868_v50  ;;  %v869_v62 = vmax.f32 %v695_v52, 0.0 }
 0x124   : > { %v1908_v61 = vpack.c.bf16 %v900_v51, %v900_v51  ;;  %v901_v63 = vmax.f32 %v823_v53, 0.0  ;;  %v1874_v0 = vpack.c.bf16 %v866_v56, %v866_v56  ;;  %v867_v2 = vmax.f32 %v687_v58, 0.0 }
 0x125   : > { %v1906_v1 = vpack.c.bf16 %v898_v57, %v898_v57  ;;  %v899_v3 = vmax.f32 %v815_v59, 0.0  ;;  %1189 = vst.msk [vmem:[%s2394_s12 + $0x68] sm:$0xf] %vm1162_vm1, %v1876_v60  ;;  %v1877_v4 = vpack.c.bf16 %v869_v62, %v869_v62 }
 0x126   : > { %1221 = vst.msk [vmem:[%s2394_s12 + $0xe8] sm:$0xf] %vm1162_vm1, %v1908_v61  ;;  %v1909_v5 = vpack.c.bf16 %v901_v63, %v901_v63  ;;  %1187 = vst.msk [vmem:[%s2394_s12 + $0x60] sm:$0xf] %vm1162_vm1, %v1874_v0  ;;  %v1875_v6 = vpack.c.bf16 %v867_v2, %v867_v2  ;;  %v1991_v8 = vpop.f32.mrb[28].mxu0 }
 0x127   : > { %1219 = vst.msk [vmem:[%s2394_s12 + $0xe0] sm:$0xf] %vm1162_vm1, %v1906_v1  ;;  %v1907_v7 = vpack.c.bf16 %v899_v3, %v899_v3  ;;  %v2023_v9 = vpop.f32.mrb[28].mxu1  ;;  %1190 = vst.msk [vmem:[%s2394_s12 + $0x6c] sm:$0xf] %vm1162_vm1, %v1877_v4  ;;  %v708_v10 = vadd.f32 %v1991_v8, %v2384_v36  ;;  %v699_v12 = vpop.f32.mrb[29].mxu0 }
 0x128   : > { %1222 = vst.msk [vmem:[%s2394_s12 + $0xec] sm:$0xf] %vm1162_vm1, %v1909_v5  ;;  %v836_v11 = vadd.f32 %v2023_v9, %v2384_v36  ;;  %v827_v13 = vpop.f32.mrb[29].mxu1  ;;  %1188 = vst.msk [vmem:[%s2394_s12 + $0x64] sm:$0xf] %vm1162_vm1, %v1875_v6  ;;  %v700_v14 = vadd.f32 %v2384_v36, %v699_v12  ;;  %v1992_v16 = vpop.f32.mrb[30].mxu0 }
 0x129   : > { %1220 = vst.msk [vmem:[%s2394_s12 + $0xe4] sm:$0xf] %vm1162_vm1, %v1907_v7  ;;  %v828_v15 = vadd.f32 %v2384_v36, %v827_v13  ;;  %v2024_v17 = vpop.f32.mrb[30].mxu1  ;;  %v872_v18 = vmax.f32 %v708_v10, 0.0  ;;  %v711_v20 = vadd.f32 %v1992_v16, %v2384_v36  ;;  %v702_v22 = vpop.f32.mrb[31].mxu0 }
 0x12a   : > { %v904_v19 = vmax.f32 %v836_v11, 0.0  ;;  %v839_v21 = vadd.f32 %v2024_v17, %v2384_v36  ;;  %v830_v23 = vpop.f32.mrb[31].mxu1  ;;  %v870_v24 = vmax.f32 %v700_v14, 0.0  ;;  %v703_v26 = vadd.f32 %v2384_v36, %v702_v22 }
 0x12b   : > { %v902_v25 = vmax.f32 %v828_v15, 0.0  ;;  %v831_v27 = vadd.f32 %v2384_v36, %v830_v23  ;;  %v1880_v28 = vpack.c.bf16 %v872_v18, %v872_v18  ;;  %v873_v30 = vmax.f32 %v711_v20, 0.0  ;;  %1233 = sbr.rel (!%p2290_p4) target bundleno = 397 (0x18d), region = 36 }
 0x12c   : > { %v1912_v29 = vpack.c.bf16 %v904_v19, %v904_v19  ;;  %v905_v31 = vmax.f32 %v839_v21, 0.0  ;;  %v1878_v32 = vpack.c.bf16 %v870_v24, %v870_v24  ;;  %v871_v34 = vmax.f32 %v703_v26, 0.0 }
 0x12d   : > { %v1910_v33 = vpack.c.bf16 %v902_v25, %v902_v25  ;;  %v903_v35 = vmax.f32 %v831_v27, 0.0  ;;  %1193 = vst.msk [vmem:[%s2394_s12 + $0x78] sm:$0xf] %vm1162_vm1, %v1880_v28  ;;  %v1881_v37 = vpack.c.bf16 %v873_v30, %v873_v30 }
 0x12e   : > { %1225 = vst.msk [vmem:[%s2394_s12 + $0xf8] sm:$0xf] %vm1162_vm1, %v1912_v29  ;;  %v1913_v38 = vpack.c.bf16 %v905_v31, %v905_v31  ;;  %1191 = vst.msk [vmem:[%s2394_s12 + $0x70] sm:$0xf] %vm1162_vm1, %v1878_v32  ;;  %v1879_v36 = vpack.c.bf16 %v871_v34, %v871_v34 }
 0x12f   : > { %1223 = vst.msk [vmem:[%s2394_s12 + $0xf0] sm:$0xf] %vm1162_vm1, %v1910_v33  ;;  %v1911_v39 = vpack.c.bf16 %v903_v35, %v903_v35  ;;  %1194 = vst.msk [vmem:[%s2394_s12 + $0x7c] sm:$0xf] %vm1162_vm1, %v1881_v37 }
 0x130   : > { %1226 = vst.msk [vmem:[%s2394_s12 + $0xfc] sm:$0xf] %vm1162_vm1, %v1913_v38  ;;  %1192 = vst.msk [vmem:[%s2394_s12 + $0x74] sm:$0xf] %vm1162_vm1, %v1879_v36 }
 0x131   : > { %1224 = vst.msk [vmem:[%s2394_s12 + $0xf4] sm:$0xf] %vm1162_vm1, %v1911_v39 }
 0x132   : > { %s2791_s14 = smov (!%p1236_p8, %s1235_s14), 64 }
 0x133   : > { %s1835_s24 = sshll.u32 %s2791_s14, 6 }
 0x134   : > { %p1838_p9 = scmp.eq.s32.totalorder %s1835_s24, 0 }
 0x135   : > { %s2593_s25 = sshrl.u32 (!%p1838_p9), %s2791_s14, 6 }
 0x136   : > { %1244 = sbr.rel (%p1838_p9) target bundleno = 397 (0x18d), region = 40  ;;  %p1839_p10 = scmp.le.s32.totalorder (!%p1838_p9), %s2593_s25, 0 }
 0x13d   : > { %1649 = sbr.rel (%p1839_p10) target bundleno = 376 (0x178), region = 112  ;;  %s2784_s15 = smov (!%p1839_p10), %s2587_s22 }
 0x13e   : > { %s2785_s20 = smov (!%p1839_p10), %s2394_s12  ;;  %s2602_s23 = smov (!%p1839_p10), 0  }
 0x13f   : > { %s2604_s26 = smov (!%p1839_p10), 0  }
 0x144 LB: >> { %v1260_v40 = vld [vmem:[%s2219_s20] sm:$0xf]  ;;  %v1262_v41 = vld [vmem:[%s2219_s20 + $0x4] sm:$0xf]  ;;  %v1264_v42 = vld [vmem:[%s2219_s20 + $0x8] sm:$0xf]  ;;  %s2227_s26 = sphi %s2604_s26, %s1254_s26   ;;  %s2223_s23 = sphi %s2602_s23, %s2786_s23   ;;  %s2219_s20 = sphi %s2785_s20, %s1393_s20   ;;  %s2215_s15 = sphi %s2784_s15, %s1394_s15  }
 0x145   : >> { %1261 = vst [vmem:[%s2215_s15] sm:$0xf] %v1260_v40  ;;  %1263 = vst [vmem:[%s2215_s15 + $0x4] sm:$0xf] %v1262_v41  ;;  %v1266_v43 = vld [vmem:[%s2219_s20 + $0xc] sm:$0xf]  ;;  %s1388_s27 = sadd.s32 1, %s2223_s23 }
 0x146   : >> { %1265 = vst [vmem:[%s2215_s15 + $0x8] sm:$0xf] %v1264_v42  ;;  %v1268_v44 = vld [vmem:[%s2219_s20 + $0x10] sm:$0xf]  ;;  %v1270_v45 = vld [vmem:[%s2219_s20 + $0x14] sm:$0xf]  ;;  %p1389_p11 = scmp.ge.s32.totalorder %s1388_s27, %s2593_s25 }
 0x147   : >> { %1267 = vst [vmem:[%s2215_s15 + $0xc] sm:$0xf] %v1266_v43  ;;  %1269 = vst [vmem:[%s2215_s15 + $0x10] sm:$0xf] %v1268_v44  ;;  %v1272_v46 = vld [vmem:[%s2219_s20 + $0x18] sm:$0xf] }
 0x148   : >> { %1271 = vst [vmem:[%s2215_s15 + $0x14] sm:$0xf] %v1270_v45  ;;  %v1274_v47 = vld [vmem:[%s2219_s20 + $0x1c] sm:$0xf]  ;;  %v1276_v48 = vld [vmem:[%s2219_s20 + $0x20] sm:$0xf] }
 0x149   : >> { %1273 = vst [vmem:[%s2215_s15 + $0x18] sm:$0xf] %v1272_v46  ;;  %1275 = vst [vmem:[%s2215_s15 + $0x1c] sm:$0xf] %v1274_v47  ;;  %v1278_v49 = vld [vmem:[%s2219_s20 + $0x24] sm:$0xf] }
 0x14a   : >> { %1277 = vst [vmem:[%s2215_s15 + $0x20] sm:$0xf] %v1276_v48  ;;  %v1280_v50 = vld [vmem:[%s2219_s20 + $0x28] sm:$0xf]  ;;  %v1282_v51 = vld [vmem:[%s2219_s20 + $0x2c] sm:$0xf] }
 0x14b   : >> { %1279 = vst [vmem:[%s2215_s15 + $0x24] sm:$0xf] %v1278_v49  ;;  %1281 = vst [vmem:[%s2215_s15 + $0x28] sm:$0xf] %v1280_v50  ;;  %v1284_v52 = vld [vmem:[%s2219_s20 + $0x30] sm:$0xf] }
 0x14c   : >> { %1283 = vst [vmem:[%s2215_s15 + $0x2c] sm:$0xf] %v1282_v51  ;;  %v1286_v53 = vld [vmem:[%s2219_s20 + $0x34] sm:$0xf]  ;;  %v1288_v54 = vld [vmem:[%s2219_s20 + $0x38] sm:$0xf] }
 0x14d   : >> { %1285 = vst [vmem:[%s2215_s15 + $0x30] sm:$0xf] %v1284_v52  ;;  %1287 = vst [vmem:[%s2215_s15 + $0x34] sm:$0xf] %v1286_v53  ;;  %v1290_v55 = vld [vmem:[%s2219_s20 + $0x3c] sm:$0xf] }
 0x14e   : >> { %1289 = vst [vmem:[%s2215_s15 + $0x38] sm:$0xf] %v1288_v54  ;;  %v1292_v56 = vld [vmem:[%s2219_s20 + $0x40] sm:$0xf]  ;;  %v1294_v57 = vld [vmem:[%s2219_s20 + $0x44] sm:$0xf] }
 0x14f   : >> { %1291 = vst [vmem:[%s2215_s15 + $0x3c] sm:$0xf] %v1290_v55  ;;  %1293 = vst [vmem:[%s2215_s15 + $0x40] sm:$0xf] %v1292_v56  ;;  %v1296_v58 = vld [vmem:[%s2219_s20 + $0x48] sm:$0xf] }
 0x150   : >> { %1295 = vst [vmem:[%s2215_s15 + $0x44] sm:$0xf] %v1294_v57  ;;  %v1298_v59 = vld [vmem:[%s2219_s20 + $0x4c] sm:$0xf]  ;;  %v1300_v60 = vld [vmem:[%s2219_s20 + $0x50] sm:$0xf] }
 0x151   : >> { %1297 = vst [vmem:[%s2215_s15 + $0x48] sm:$0xf] %v1296_v58  ;;  %1299 = vst [vmem:[%s2215_s15 + $0x4c] sm:$0xf] %v1298_v59  ;;  %v1302_v61 = vld [vmem:[%s2219_s20 + $0x54] sm:$0xf] }
 0x152   : >> { %1301 = vst [vmem:[%s2215_s15 + $0x50] sm:$0xf] %v1300_v60  ;;  %v1304_v62 = vld [vmem:[%s2219_s20 + $0x58] sm:$0xf]  ;;  %v1306_v63 = vld [vmem:[%s2219_s20 + $0x5c] sm:$0xf] }
 0x153   : >> { %1303 = vst [vmem:[%s2215_s15 + $0x54] sm:$0xf] %v1302_v61  ;;  %1305 = vst [vmem:[%s2215_s15 + $0x58] sm:$0xf] %v1304_v62  ;;  %v1308_v0 = vld [vmem:[%s2219_s20 + $0x60] sm:$0xf] }
 0x154   : >> { %1307 = vst [vmem:[%s2215_s15 + $0x5c] sm:$0xf] %v1306_v63  ;;  %v1310_v1 = vld [vmem:[%s2219_s20 + $0x64] sm:$0xf]  ;;  %v1312_v2 = vld [vmem:[%s2219_s20 + $0x68] sm:$0xf] }
 0x155   : >> { %1309 = vst [vmem:[%s2215_s15 + $0x60] sm:$0xf] %v1308_v0  ;;  %1311 = vst [vmem:[%s2215_s15 + $0x64] sm:$0xf] %v1310_v1  ;;  %v1314_v3 = vld [vmem:[%s2219_s20 + $0x6c] sm:$0xf] }
 0x156   : >> { %1313 = vst [vmem:[%s2215_s15 + $0x68] sm:$0xf] %v1312_v2  ;;  %v1316_v4 = vld [vmem:[%s2219_s20 + $0x70] sm:$0xf]  ;;  %v1318_v5 = vld [vmem:[%s2219_s20 + $0x74] sm:$0xf] }
 0x157   : >> { %1315 = vst [vmem:[%s2215_s15 + $0x6c] sm:$0xf] %v1314_v3  ;;  %1317 = vst [vmem:[%s2215_s15 + $0x70] sm:$0xf] %v1316_v4  ;;  %v1320_v6 = vld [vmem:[%s2219_s20 + $0x78] sm:$0xf] }
 0x158   : >> { %1319 = vst [vmem:[%s2215_s15 + $0x74] sm:$0xf] %v1318_v5  ;;  %v1322_v7 = vld [vmem:[%s2219_s20 + $0x7c] sm:$0xf]  ;;  %v1324_v8 = vld [vmem:[%s2219_s20 + $0x80] sm:$0xf] }
 0x159   : >> { %1321 = vst [vmem:[%s2215_s15 + $0x78] sm:$0xf] %v1320_v6  ;;  %1323 = vst [vmem:[%s2215_s15 + $0x7c] sm:$0xf] %v1322_v7  ;;  %v1326_v9 = vld [vmem:[%s2219_s20 + $0x84] sm:$0xf] }
 0x15a   : >> { %1325 = vst [vmem:[%s2215_s15 + $0x80] sm:$0xf] %v1324_v8  ;;  %v1328_v10 = vld [vmem:[%s2219_s20 + $0x88] sm:$0xf]  ;;  %v1330_v11 = vld [vmem:[%s2219_s20 + $0x8c] sm:$0xf] }
 0x15b   : >> { %1327 = vst [vmem:[%s2215_s15 + $0x84] sm:$0xf] %v1326_v9  ;;  %1329 = vst [vmem:[%s2215_s15 + $0x88] sm:$0xf] %v1328_v10  ;;  %v1332_v12 = vld [vmem:[%s2219_s20 + $0x90] sm:$0xf] }
 0x15c   : >> { %1331 = vst [vmem:[%s2215_s15 + $0x8c] sm:$0xf] %v1330_v11  ;;  %v1334_v13 = vld [vmem:[%s2219_s20 + $0x94] sm:$0xf]  ;;  %v1336_v14 = vld [vmem:[%s2219_s20 + $0x98] sm:$0xf] }
 0x15d   : >> { %1333 = vst [vmem:[%s2215_s15 + $0x90] sm:$0xf] %v1332_v12  ;;  %1335 = vst [vmem:[%s2215_s15 + $0x94] sm:$0xf] %v1334_v13  ;;  %v1338_v15 = vld [vmem:[%s2219_s20 + $0x9c] sm:$0xf] }
 0x15e   : >> { %1337 = vst [vmem:[%s2215_s15 + $0x98] sm:$0xf] %v1336_v14  ;;  %v1340_v16 = vld [vmem:[%s2219_s20 + $0xa0] sm:$0xf]  ;;  %v1342_v17 = vld [vmem:[%s2219_s20 + $0xa4] sm:$0xf] }
 0x15f   : >> { %1339 = vst [vmem:[%s2215_s15 + $0x9c] sm:$0xf] %v1338_v15  ;;  %1341 = vst [vmem:[%s2215_s15 + $0xa0] sm:$0xf] %v1340_v16  ;;  %v1344_v18 = vld [vmem:[%s2219_s20 + $0xa8] sm:$0xf] }
 0x160   : >> { %1343 = vst [vmem:[%s2215_s15 + $0xa4] sm:$0xf] %v1342_v17  ;;  %v1346_v19 = vld [vmem:[%s2219_s20 + $0xac] sm:$0xf]  ;;  %v1348_v20 = vld [vmem:[%s2219_s20 + $0xb0] sm:$0xf] }
 0x161   : >> { %1345 = vst [vmem:[%s2215_s15 + $0xa8] sm:$0xf] %v1344_v18  ;;  %1347 = vst [vmem:[%s2215_s15 + $0xac] sm:$0xf] %v1346_v19  ;;  %v1350_v21 = vld [vmem:[%s2219_s20 + $0xb4] sm:$0xf] }
 0x162   : >> { %1349 = vst [vmem:[%s2215_s15 + $0xb0] sm:$0xf] %v1348_v20  ;;  %v1352_v22 = vld [vmem:[%s2219_s20 + $0xb8] sm:$0xf]  ;;  %v1354_v23 = vld [vmem:[%s2219_s20 + $0xbc] sm:$0xf] }
 0x163   : >> { %1351 = vst [vmem:[%s2215_s15 + $0xb4] sm:$0xf] %v1350_v21  ;;  %1353 = vst [vmem:[%s2215_s15 + $0xb8] sm:$0xf] %v1352_v22  ;;  %v1356_v24 = vld [vmem:[%s2219_s20 + $0xc0] sm:$0xf] }
 0x164   : >> { %1355 = vst [vmem:[%s2215_s15 + $0xbc] sm:$0xf] %v1354_v23  ;;  %v1358_v25 = vld [vmem:[%s2219_s20 + $0xc4] sm:$0xf]  ;;  %v1360_v26 = vld [vmem:[%s2219_s20 + $0xc8] sm:$0xf] }
 0x165   : >> { %1357 = vst [vmem:[%s2215_s15 + $0xc0] sm:$0xf] %v1356_v24  ;;  %1359 = vst [vmem:[%s2215_s15 + $0xc4] sm:$0xf] %v1358_v25  ;;  %v1362_v27 = vld [vmem:[%s2219_s20 + $0xcc] sm:$0xf] }
 0x166   : >> { %1361 = vst [vmem:[%s2215_s15 + $0xc8] sm:$0xf] %v1360_v26  ;;  %v1364_v28 = vld [vmem:[%s2219_s20 + $0xd0] sm:$0xf]  ;;  %v1366_v29 = vld [vmem:[%s2219_s20 + $0xd4] sm:$0xf] }
 0x167   : >> { %1363 = vst [vmem:[%s2215_s15 + $0xcc] sm:$0xf] %v1362_v27  ;;  %1365 = vst [vmem:[%s2215_s15 + $0xd0] sm:$0xf] %v1364_v28  ;;  %v1368_v30 = vld [vmem:[%s2219_s20 + $0xd8] sm:$0xf] }
 0x168   : >> { %1367 = vst [vmem:[%s2215_s15 + $0xd4] sm:$0xf] %v1366_v29  ;;  %v1370_v31 = vld [vmem:[%s2219_s20 + $0xdc] sm:$0xf]  ;;  %v1372_v32 = vld [vmem:[%s2219_s20 + $0xe0] sm:$0xf] }
 0x169   : >> { %1369 = vst [vmem:[%s2215_s15 + $0xd8] sm:$0xf] %v1368_v30  ;;  %1371 = vst [vmem:[%s2215_s15 + $0xdc] sm:$0xf] %v1370_v31  ;;  %v1374_v33 = vld [vmem:[%s2219_s20 + $0xe4] sm:$0xf] }
 0x16a   : >> { %1373 = vst [vmem:[%s2215_s15 + $0xe0] sm:$0xf] %v1372_v32  ;;  %v1376_v34 = vld [vmem:[%s2219_s20 + $0xe8] sm:$0xf]  ;;  %v1378_v35 = vld [vmem:[%s2219_s20 + $0xec] sm:$0xf] }
 0x16b   : >> { %1375 = vst [vmem:[%s2215_s15 + $0xe4] sm:$0xf] %v1374_v33  ;;  %1377 = vst [vmem:[%s2215_s15 + $0xe8] sm:$0xf] %v1376_v34  ;;  %v1380_v37 = vld [vmem:[%s2219_s20 + $0xf0] sm:$0xf] }
 0x16c   : >> { %1379 = vst [vmem:[%s2215_s15 + $0xec] sm:$0xf] %v1378_v35  ;;  %v1382_v38 = vld [vmem:[%s2219_s20 + $0xf4] sm:$0xf]  ;;  %v1384_v36 = vld [vmem:[%s2219_s20 + $0xf8] sm:$0xf] }
 0x16d   : >> { %1381 = vst [vmem:[%s2215_s15 + $0xf0] sm:$0xf] %v1380_v37  ;;  %1383 = vst [vmem:[%s2215_s15 + $0xf4] sm:$0xf] %v1382_v38  ;;  %v1386_v39 = vld [vmem:[%s2219_s20 + $0xfc] sm:$0xf] }
 0x16e   : >> { %1385 = vst [vmem:[%s2215_s15 + $0xf8] sm:$0xf] %v1384_v36  ;;  %1387 = vst [vmem:[%s2215_s15 + $0xfc] sm:$0xf] %v1386_v39  ;;  %s2793_s27 = smov (%p1389_p11, %s1388_s27), 0  ;;  %s1254_s26 = sadd.s32 1, %s2227_s26  }
 0x16f   : >> { %s1840_s28 = sshll.u32 %s2793_s27, 8  ;;  %p1253_p12 = scmp.ge.s32.totalorder %s1254_s26, %s2593_s25 }
 0x170   : >> { %s1393_s20 = scalar_lea.vmem %s2394_s12, %s1840_s28 [#allocation2]   ;;  %s1394_s15 = scalar_lea.vmem %s2587_s22, %s1840_s28  }
 0x171   : >> { %s2786_s23 = smov %s2793_s27  ;;  %1256 = sbr.rel (!%p1253_p12) target bundleno = 324 (0x144), region = 118 }
 0x178 PF: > { %s2761_s29 = sand.u32 63, %s2791_s14   ;;  %s1915_s30 = sshll.u32 %s2593_s25, 8 }
 0x179   : > { %s1399_s4 = scalar_lea.vmem %s2394_s12, %s1915_s30 [#allocation2]   ;;  %s1401_s5 = scalar_lea.vmem %s2587_s22, %s1915_s30  }
 0x17a   : > { %p1845_p13 = scmp.le.s32.totalorder %s2761_s29, 0 }
 0x17b   : > { %s2229_s6 = smov (!%p1845_p13), %s1401_s5   ;;  %s2233_s7 = smov (!%p1845_p13), %s1399_s4  }
 0x17c   : > { %1663 = sbr.rel (%p1845_p13) target bundleno = 397 (0x18d), region = 123  ;;  %s2237_s8 = smov (!%p1845_p13), 0  }
 0x17d   : > { %s2241_s9 = smov (!%p1845_p13), 0  }
 0x183 LB: >> { %v1411_v40 = vld [vmem:[%s2235_s7] sm:$0xf]  ;;  %s1413_s10 = sadd.s32 1, %s2239_s8  ;;  %s1405_s9 = sadd.s32 1, %s2243_s9   ;;  %s2243_s9 = sphi %s2241_s9, %s1405_s9   ;;  %s2239_s8 = sphi %s2237_s8, %s2238_s8   ;;  %s2235_s7 = sphi %s2233_s7, %s1418_s7   ;;  %s2231_s6 = sphi %s2229_s6, %s1419_s6  }
 0x184   : >> { %1412 = vst [vmem:[%s2231_s6] sm:$0xf] %v1411_v40  ;;  %p1414_p0 = scmp.ge.s32.totalorder %s1413_s10, %s2761_s29  ;;  %p1404_p1 = scmp.ge.s32.totalorder %s1405_s9, %s2761_s29 }
 0x186   : >> { %s2795_s10 = smov (%p1414_p0, %s1413_s10), 0  ;;  %1407 = sbr.rel (!%p1404_p1) target bundleno = 387 (0x183), region = 129 }
 0x187   : >> { %s1846_s11 = sshll.u32 %s2795_s10, 2  ;;  %s2238_s8 = smov %s2795_s10  }
 0x188   : >> { %s1418_s7 = scalar_lea.vmem %s1399_s4, %s1846_s11 [#allocation2]   ;;  %s1419_s6 = scalar_lea.vmem %s1401_s5, %s1846_s11  }
 0x18d PF: > { %p10_p2 = scmp.ge.s32.totalorder %s2280_s16, 4   ;;  %s2787_s12 = smov %s2207_s13 }
 0x18e   : > { %s2788_s13 = smov %s2288_s19  ;;  %s2789_s14 = smov %s2280_s16 }
 0x18f   :  { %12 = sbr.rel (!%p10_p2) target bundleno = 2 (0x2), region = 140 }

// kernel: cnn_policy_forward.5
= control target key start
LH: loop header
LB: loop body
LE: loop exit
PB: predicated region body
PF: predicated region fallthrough
CT: control target
= control target key end

     0   :  { %vm880_vm0 = vcmask 519168   ;;  %vm901_vm1 = vcmask 516096   ;;  %s1637_s1 = inlined_call_operand.vmem [shape: bf16[512,64], index: 1, kind: input, shape index: {}]   ;;  %s1638_s0 = inlined_call_operand.vmem [shape: bf16[162,512], index: 0, kind: input, shape index: {}]   ;;  %s1639_s2 = inlined_call_operand.vmem [shape: f32[1,64], index: 2, kind: input, shape index: {}]   ;;  %s1640_s3 = inlined_call_operand.vmem [shape: bf16[162,64], index: 3, kind: output, shape index: {}]  }
   0x1   :  { %v1190_v0 = vld [vmem:[%s1637_s1 + $0x40] sm:$0xff]   ;;  %v1194_v4 = vld [vmem:[%s1637_s1 + $0x48] sm:$0xff]   ;;  %v1198_v8 = vld [vmem:[%s1637_s1 + $0x50] sm:$0xff]  }
   0x2   :  { %v1191_v1 = vld [vmem:[%s1637_s1 + $0xc0] sm:$0xff]   ;;  %1026 = vmatprep.subr.bf16.mxu0 %v1190_v0  ;;  %v1195_v5 = vld [vmem:[%s1637_s1 + $0xc8] sm:$0xff]   ;;  %v1199_v9 = vld [vmem:[%s1637_s1 + $0xd0] sm:$0xff]  }
   0x3   :  { %v1192_v2 = vld [vmem:[%s1637_s1] sm:$0xff]   ;;  %1108 = vmatprep.subr.bf16.mxu1 %v1191_v1  ;;  %v1196_v6 = vld [vmem:[%s1637_s1 + $0x8] sm:$0xff]   ;;  %v1200_v10 = vld [vmem:[%s1637_s1 + $0x10] sm:$0xff]  }
   0x4   :  { %v1193_v3 = vld [vmem:[%s1637_s1 + $0x80] sm:$0xff]   ;;  %1027 = vmatpush3.bf16.msra.mxu0 %v1192_v2  ;;  %v1197_v7 = vld [vmem:[%s1637_s1 + $0x88] sm:$0xff]   ;;  %v1201_v11 = vld [vmem:[%s1637_s1 + $0x90] sm:$0xff]  }
   0x5   :  { %1109 = vmatpush3.bf16.msra.mxu1 %v1193_v3  ;;  %1028 = vmatprep.subr.bf16.mxu0 %v1194_v4  ;;  %v1202_v12 = vld [vmem:[%s1637_s1 + $0x58] sm:$0xff]   ;;  %v1206_v16 = vld [vmem:[%s1637_s1 + $0x60] sm:$0xff]   ;;  %v1210_v20 = vld [vmem:[%s1637_s1 + $0x68] sm:$0xff]  }
   0x6   :  { %1110 = vmatprep.subr.bf16.mxu1 %v1195_v5  ;;  %v1203_v13 = vld [vmem:[%s1637_s1 + $0xd8] sm:$0xff]   ;;  %v1207_v17 = vld [vmem:[%s1637_s1 + $0xe0] sm:$0xff]   ;;  %v1211_v21 = vld [vmem:[%s1637_s1 + $0xe8] sm:$0xff]  }
   0x7   :  { %v1204_v14 = vld [vmem:[%s1637_s1 + $0x18] sm:$0xff]   ;;  %v1208_v18 = vld [vmem:[%s1637_s1 + $0x20] sm:$0xff]   ;;  %v1212_v22 = vld [vmem:[%s1637_s1 + $0x28] sm:$0xff]  }
   0x8   :  { %1029 = vmatpush3.bf16.msra.mxu0 %v1196_v6  ;;  %v1205_v15 = vld [vmem:[%s1637_s1 + $0x98] sm:$0xff]   ;;  %v1209_v19 = vld [vmem:[%s1637_s1 + $0xa0] sm:$0xff]   ;;  %v1213_v23 = vld [vmem:[%s1637_s1 + $0xa8] sm:$0xff]  }
   0x9   :  { %1111 = vmatpush3.bf16.msra.mxu1 %v1197_v7  ;;  %1030 = vmatprep.subr.bf16.mxu0 %v1198_v8  ;;  %v1214_v24 = vld [vmem:[%s1637_s1 + $0x70] sm:$0xff]   ;;  %v1218_v28 = vld [vmem:[%s1637_s1 + $0x78] sm:$0xff]   ;;  %v55_v6 = vld [vmem:[%s1638_s0 + $0x140] sm:$0x11] }
   0xa   :  { %1112 = vmatprep.subr.bf16.mxu1 %v1199_v9  ;;  %v1215_v25 = vld [vmem:[%s1637_s1 + $0xf0] sm:$0xff]   ;;  %v1219_v29 = vld [vmem:[%s1637_s1 + $0xf8] sm:$0xff]   ;;  %v56_v7 = vld [vmem:[%s1638_s0 + $0x148] sm:$0x11] }
   0xb   :  { %v1216_v26 = vld [vmem:[%s1637_s1 + $0x30] sm:$0xff]   ;;  %v1220_v30 = vld [vmem:[%s1637_s1 + $0x38] sm:$0xff]  }
   0xc   :  { %1031 = vmatpush3.bf16.msra.mxu0 %v1200_v10  ;;  %v1217_v27 = vld [vmem:[%s1637_s1 + $0xb0] sm:$0xff]   ;;  %v1221_v31 = vld [vmem:[%s1637_s1 + $0xb8] sm:$0xff]   ;;  %v949_v10 = vcombine.high %v55_v6, %v55_v6 }
   0xd   :  { %1113 = vmatpush3.bf16.msra.mxu1 %v1201_v11  ;;  %1032 = vmatprep.subr.bf16.mxu0 %v1202_v12  ;;  %v1222_v32 = vld [vmem:[%s1638_s0] ss:$16 sps:$4 sm:$0xff]   ;;  %v1224_v33 = vld [vmem:[%s1638_s0 + $0x4] ss:$16 sps:$4 sm:$0xff]   ;;  %v1225_v34 = vld [vmem:[%s1638_s0 + $0x8] ss:$16 sps:$4 sm:$0xff]   ;;  %v951_v11 = vcombine.high %v56_v7, %v56_v7  ;;  %v948_v12 = vcombine.low %v55_v6, %v55_v6 }
   0xe   :  { %1114 = vmatprep.subr.bf16.mxu1 %v1203_v13  ;;  %v1227_v35 = vld [vmem:[%s1638_s0 + $0xc] ss:$16 sps:$4 sm:$0xff]   ;;  %566 = vmatprep.mubr.bf16.mxu0 %v1224_v33  ;;  %v1228_v36 = vld [vmem:[%s1638_s0 + $0x24] ss:$16 sps:$4 sm:$0xff]   ;;  %v1232_v38 = vld [vmem:[%s1638_s0 + $0x20] ss:$16 sps:$4 sm:$0xff]   ;;  %v950_v13 = vcombine.low %v56_v7, %v56_v7 }
   0xf   :  { %686 = vmatprep.mubr.bf16.mxu1 %v1227_v35  ;;  %v1230_v37 = vld [vmem:[%s1638_s0 + $0x2c] ss:$16 sps:$4 sm:$0xff]   ;;  %v1233_v39 = vld [vmem:[%s1638_s0 + $0x28] ss:$16 sps:$4 sm:$0xff]   ;;  %v1234_v40 = vld [vmem:[%s1638_s0 + $0x44] ss:$16 sps:$4 sm:$0xff]  }
  0x10   :  { %1033 = vmatpush3.bf16.msra.mxu0 %v1204_v14  ;;  %v1236_v41 = vld [vmem:[%s1638_s0 + $0x4c] ss:$16 sps:$4 sm:$0xff]   ;;  %v1238_v42 = vld [vmem:[%s1638_s0 + $0x40] ss:$16 sps:$4 sm:$0xff]   ;;  %v1239_v43 = vld [vmem:[%s1638_s0 + $0x48] ss:$16 sps:$4 sm:$0xff]  }
  0x11   :  { %1115 = vmatpush3.bf16.msra.mxu1 %v1205_v15  ;;  %1034 = vmatprep.subr.bf16.mxu0 %v1206_v16  ;;  %v1240_v44 = vld [vmem:[%s1638_s0 + $0x64] ss:$16 sps:$4 sm:$0xff]   ;;  %v1242_v45 = vld [vmem:[%s1638_s0 + $0x6c] ss:$16 sps:$4 sm:$0xff]   ;;  %v1244_v46 = vld [vmem:[%s1638_s0 + $0x60] ss:$16 sps:$4 sm:$0xff]  }
  0x12   :  { %1116 = vmatprep.subr.bf16.mxu1 %v1207_v17  ;;  %v1245_v47 = vld [vmem:[%s1638_s0 + $0x68] ss:$16 sps:$4 sm:$0xff]   ;;  %v1246_v48 = vld [vmem:[%s1638_s0 + $0x84] ss:$16 sps:$4 sm:$0xff]   ;;  %v1248_v49 = vld [vmem:[%s1638_s0 + $0x8c] ss:$16 sps:$4 sm:$0xff]  }
  0x13   :  { %v1250_v50 = vld [vmem:[%s1638_s0 + $0x80] ss:$16 sps:$4 sm:$0xff]   ;;  %v1251_v51 = vld [vmem:[%s1638_s0 + $0x88] ss:$16 sps:$4 sm:$0xff]   ;;  %v1252_v52 = vld [vmem:[%s1638_s0 + $0xa4] ss:$16 sps:$4 sm:$0xff]  }
  0x14   :  { %1035 = vmatpush3.bf16.msra.mxu0 %v1208_v18  ;;  %v1254_v53 = vld [vmem:[%s1638_s0 + $0xac] ss:$16 sps:$4 sm:$0xff]   ;;  %v1256_v54 = vld [vmem:[%s1638_s0 + $0xa0] ss:$16 sps:$4 sm:$0xff]   ;;  %v1257_v55 = vld [vmem:[%s1638_s0 + $0xa8] ss:$16 sps:$4 sm:$0xff]  }
  0x15   :  { %1117 = vmatpush3.bf16.msra.mxu1 %v1209_v19  ;;  %1036 = vmatprep.subr.bf16.mxu0 %v1210_v20  ;;  %v1258_v56 = vld [vmem:[%s1638_s0 + $0xc4] ss:$16 sps:$4 sm:$0xff]   ;;  %v1260_v57 = vld [vmem:[%s1638_s0 + $0xcc] ss:$16 sps:$4 sm:$0xff]   ;;  %v1262_v58 = vld [vmem:[%s1638_s0 + $0xc0] ss:$16 sps:$4 sm:$0xff]  }
  0x16   :  { %1118 = vmatprep.subr.bf16.mxu1 %v1211_v21  ;;  %v1263_v59 = vld [vmem:[%s1638_s0 + $0xc8] ss:$16 sps:$4 sm:$0xff]   ;;  %v1264_v60 = vld [vmem:[%s1638_s0 + $0xe4] ss:$16 sps:$4 sm:$0xff]   ;;  %v1266_v61 = vld [vmem:[%s1638_s0 + $0xec] ss:$16 sps:$4 sm:$0xff]  }
  0x17   :  { %v1268_v62 = vld [vmem:[%s1638_s0 + $0xe0] ss:$16 sps:$4 sm:$0xff]   ;;  %v1269_v63 = vld [vmem:[%s1638_s0 + $0xe8] ss:$16 sps:$4 sm:$0xff]   ;;  %v1270_v0 = vld [vmem:[%s1638_s0 + $0x104] ss:$16 sps:$4 sm:$0xff]  }
  0x18   :  { %1037 = vmatpush3.bf16.msra.mxu0 %v1212_v22  ;;  %v1272_v1 = vld [vmem:[%s1638_s0 + $0x10c] ss:$16 sps:$4 sm:$0xff]   ;;  %v1274_v2 = vld [vmem:[%s1638_s0 + $0x100] ss:$16 sps:$4 sm:$0xff]   ;;  %v1275_v3 = vld [vmem:[%s1638_s0 + $0x108] ss:$16 sps:$4 sm:$0xff]  }
  0x19   :  { %1119 = vmatpush3.bf16.msra.mxu1 %v1213_v23  ;;  %1038 = vmatprep.subr.bf16.mxu0 %v1214_v24  ;;  %v1276_v4 = vld [vmem:[%s1638_s0 + $0x124] ss:$16 sps:$4 sm:$0xff]   ;;  %v1278_v5 = vld [vmem:[%s1638_s0 + $0x12c] ss:$16 sps:$4 sm:$0xff]   ;;  %v1280_v8 = vld [vmem:[%s1638_s0 + $0x120] ss:$16 sps:$4 sm:$0xff]  }
  0x1a   :  { %1120 = vmatprep.subr.bf16.mxu1 %v1215_v25  ;;  %v1281_v9 = vld [vmem:[%s1638_s0 + $0x128] ss:$16 sps:$4 sm:$0xff]   ;;  %v1531_v16 = vld [vmem:[%s1639_s2] ss:$0 sm:$0xff] }
  0x1c   :  { %1039 = vmatpush3.bf16.msra.mxu0 %v1216_v26 }
  0x1d   :  { %1121 = vmatpush3.bf16.msra.mxu1 %v1217_v27  ;;  %1040 = vmatprep.subr.bf16.mxu0 %v1218_v28 }
  0x1e   :  { %1122 = vmatprep.subr.bf16.mxu1 %v1219_v29 }
  0x20   :  { %1041 = vmatpush3.bf16.msra.mxu0 %v1220_v30 }
  0x21   :  { %1123 = vmatpush3.bf16.msra.mxu1 %v1221_v31 }
  0x23   :  { %567 = vmatmul.mubr.bf16.vlgmr.msra.gmra.mrb[0].mxu0 %v1222_v32 }
  0x24   :  { %687 = vmatmul.mubr.bf16.vlgmr.msra.gmra.mrb[0].mxu1 %v1225_v34  ;;  %574 = vmatprep.mubr.bf16.mxu0 %v1228_v36 }
  0x25   :  { %694 = vmatprep.mubr.bf16.mxu1 %v1230_v37 }
  0x2b   :  { %575 = vmatmul.mubr.bf16.gmra.mrb[4].mxu0 %v1232_v38 }
  0x2c   :  { %695 = vmatmul.mubr.bf16.gmra.mrb[4].mxu1 %v1233_v39  ;;  %582 = vmatprep.mubr.bf16.mxu0 %v1234_v40 }
  0x2d   :  { %702 = vmatprep.mubr.bf16.mxu1 %v1236_v41 }
  0x33   :  { %583 = vmatmul.mubr.bf16.gmra.mrb[8].mxu0 %v1238_v42 }
  0x34   :  { %703 = vmatmul.mubr.bf16.gmra.mrb[8].mxu1 %v1239_v43  ;;  %590 = vmatprep.mubr.bf16.mxu0 %v1240_v44 }
  0x35   :  { %710 = vmatprep.mubr.bf16.mxu1 %v1242_v45 }
  0x3b   :  { %591 = vmatmul.mubr.bf16.gmra.mrb[12].mxu0 %v1244_v46 }
  0x3c   :  { %711 = vmatmul.mubr.bf16.gmra.mrb[12].mxu1 %v1245_v47  ;;  %598 = vmatprep.mubr.bf16.mxu0 %v1246_v48 }
  0x3d   :  { %718 = vmatprep.mubr.bf16.mxu1 %v1248_v49 }
  0x43   :  { %599 = vmatmul.mubr.bf16.gmra.mrb[16].mxu0 %v1250_v50 }
  0x44   :  { %719 = vmatmul.mubr.bf16.gmra.mrb[16].mxu1 %v1251_v51  ;;  %606 = vmatprep.mubr.bf16.mxu0 %v1252_v52 }
  0x45   :  { %726 = vmatprep.mubr.bf16.mxu1 %v1254_v53 }
  0x4b   :  { %607 = vmatmul.mubr.bf16.gmra.mrb[20].mxu0 %v1256_v54 }
  0x4c   :  { %727 = vmatmul.mubr.bf16.gmra.mrb[20].mxu1 %v1257_v55  ;;  %614 = vmatprep.mubr.bf16.mxu0 %v1258_v56 }
  0x4d   :  { %734 = vmatprep.mubr.bf16.mxu1 %v1260_v57 }
  0x53   :  { %615 = vmatmul.mubr.bf16.gmra.mrb[24].mxu0 %v1262_v58 }
  0x54   :  { %735 = vmatmul.mubr.bf16.gmra.mrb[24].mxu1 %v1263_v59  ;;  %622 = vmatprep.mubr.bf16.mxu0 %v1264_v60 }
  0x55   :  { %742 = vmatprep.mubr.bf16.mxu1 %v1266_v61 }
  0x5b   :  { %623 = vmatmul.mubr.bf16.gmra.mrb[28].mxu0 %v1268_v62 }
  0x5c   :  { %743 = vmatmul.mubr.bf16.gmra.mrb[28].mxu1 %v1269_v63  ;;  %630 = vmatprep.mubr.bf16.mxu0 %v1270_v0 }
  0x5d   :  { %750 = vmatprep.mubr.bf16.mxu1 %v1272_v1 }
  0x63   :  { %631 = vmatmul.mubr.bf16.gmra.mrb[32].mxu0 %v1274_v2 }
  0x64   :  { %751 = vmatmul.mubr.bf16.gmra.mrb[32].mxu1 %v1275_v3  ;;  %638 = vmatprep.mubr.bf16.mxu0 %v1276_v4 }
  0x65   :  { %758 = vmatprep.mubr.bf16.mxu1 %v1278_v5 }
  0x6b   :  { %639 = vmatmul.mubr.bf16.gmra.mrb[36].mxu0 %v1280_v8 }
  0x6c   :  { %759 = vmatmul.mubr.bf16.gmra.mrb[36].mxu1 %v1281_v9  ;;  %646 = vmatprep.mubr.bf16.mxu0 %v949_v10 }
  0x6d   :  { %766 = vmatprep.mubr.bf16.mxu1 %v951_v11 }
  0x73   :  { %647 = vmatmul.mubr.bf16.gmra.mrb[40].mxu0 %v948_v12 }
  0x74   :  { %767 = vmatmul.mubr.bf16.gmra.mrb[40].mxu1 %v950_v13 }
  0xf6   :  { %v1042_v14 = vpop.f32.mrb[0].mxu0 }
  0xf7   :  { %v1124_v15 = vpop.f32.mrb[0].mxu1  ;;  %v1043_v17 = vpop.f32.mrb[1].mxu0 }
  0xf8   :  { %v1044_v18 = vadd.f32 %v1043_v17, %v1042_v14  ;;  %v1125_v19 = vpop.f32.mrb[1].mxu1  ;;  %v1045_v20 = vpop.f32.mrb[2].mxu0 }
  0xf9   :  { %v1126_v21 = vadd.f32 %v1125_v19, %v1124_v15  ;;  %v1127_v22 = vpop.f32.mrb[2].mxu1  ;;  %v1046_v23 = vpop.f32.mrb[3].mxu0 }
  0xfa   :  { %v569_v24 = vadd.f32 %v1044_v18, %v1531_v16  ;;  %v1047_v25 = vadd.f32 %v1046_v23, %v1045_v20  ;;  %v1128_v26 = vpop.f32.mrb[3].mxu1 }
  0xfb   :  { %v1129_v27 = vadd.f32 %v1128_v26, %v1127_v22 }
  0xfc   :  { %v689_v28 = vadd.f32 %v1126_v21, %v569_v24  ;;  %v572_v29 = vadd.f32 %v1047_v25, %v1531_v16 }
  0xfe   :  { %v774_v30 = vmax.f32 %v689_v28, 0.0  ;;  %v692_v31 = vadd.f32 %v1129_v27, %v572_v29  ;;  %v1048_v32 = vpop.f32.mrb[4].mxu0 }
  0xff   :  { %v1130_v33 = vpop.f32.mrb[4].mxu1  ;;  %v1049_v34 = vpop.f32.mrb[5].mxu0 }
 0x100   :  { %v1005_v35 = vpack.c.bf16 %v774_v30, %v774_v30  ;;  %v775_v36 = vmax.f32 %v692_v31, 0.0  ;;  %v1050_v37 = vadd.f32 %v1049_v34, %v1048_v32  ;;  %v1131_v38 = vpop.f32.mrb[5].mxu1  ;;  %v1051_v39 = vpop.f32.mrb[6].mxu0 }
 0x101   :  { %v1132_v40 = vadd.f32 %v1131_v38, %v1130_v33  ;;  %v1133_v41 = vpop.f32.mrb[6].mxu1  ;;  %v1052_v42 = vpop.f32.mrb[7].mxu0 }
 0x102   :  { %881 = vst.msk [vmem:[%s1640_s3] sm:$0xf] %vm880_vm0, %v1005_v35  ;;  %v1006_v43 = vpack.c.bf16 %v775_v36, %v775_v36  ;;  %v577_v44 = vadd.f32 %v1050_v37, %v1531_v16  ;;  %v1053_v45 = vadd.f32 %v1052_v42, %v1051_v39  ;;  %v1134_v46 = vpop.f32.mrb[7].mxu1 }
 0x103   :  { %v1135_v47 = vadd.f32 %v1134_v46, %v1133_v41 }
 0x104   :  { %882 = vst.msk [vmem:[%s1640_s3 + $0x4] sm:$0xf] %vm880_vm0, %v1006_v43  ;;  %v697_v48 = vadd.f32 %v1132_v40, %v577_v44  ;;  %v580_v49 = vadd.f32 %v1053_v45, %v1531_v16 }
 0x106   :  { %v776_v50 = vmax.f32 %v697_v48, 0.0  ;;  %v700_v51 = vadd.f32 %v1135_v47, %v580_v49  ;;  %v1054_v52 = vpop.f32.mrb[8].mxu0 }
 0x107   :  { %v1136_v53 = vpop.f32.mrb[8].mxu1  ;;  %v1055_v54 = vpop.f32.mrb[9].mxu0 }
 0x108   :  { %v1007_v55 = vpack.c.bf16 %v776_v50, %v776_v50  ;;  %v777_v56 = vmax.f32 %v700_v51, 0.0  ;;  %v1056_v57 = vadd.f32 %v1055_v54, %v1054_v52  ;;  %v1137_v58 = vpop.f32.mrb[9].mxu1  ;;  %v1057_v59 = vpop.f32.mrb[10].mxu0 }
 0x109   :  { %v1138_v60 = vadd.f32 %v1137_v58, %v1136_v53  ;;  %v1139_v61 = vpop.f32.mrb[10].mxu1  ;;  %v1058_v62 = vpop.f32.mrb[11].mxu0 }
 0x10a   :  { %883 = vst.msk [vmem:[%s1640_s3 + $0x8] sm:$0xf] %vm880_vm0, %v1007_v55  ;;  %v1008_v63 = vpack.c.bf16 %v777_v56, %v777_v56  ;;  %v585_v0 = vadd.f32 %v1056_v57, %v1531_v16  ;;  %v1059_v1 = vadd.f32 %v1058_v62, %v1057_v59  ;;  %v1140_v2 = vpop.f32.mrb[11].mxu1 }
 0x10b   :  { %v1141_v3 = vadd.f32 %v1140_v2, %v1139_v61 }
 0x10c   :  { %884 = vst.msk [vmem:[%s1640_s3 + $0xc] sm:$0xf] %vm880_vm0, %v1008_v63  ;;  %v705_v4 = vadd.f32 %v1138_v60, %v585_v0  ;;  %v588_v5 = vadd.f32 %v1059_v1, %v1531_v16 }
 0x10e   :  { %v778_v6 = vmax.f32 %v705_v4, 0.0  ;;  %v708_v7 = vadd.f32 %v1141_v3, %v588_v5  ;;  %v1060_v8 = vpop.f32.mrb[12].mxu0 }
 0x10f   :  { %v1142_v9 = vpop.f32.mrb[12].mxu1  ;;  %v1061_v10 = vpop.f32.mrb[13].mxu0 }
 0x110   :  { %v1009_v11 = vpack.c.bf16 %v778_v6, %v778_v6  ;;  %v779_v12 = vmax.f32 %v708_v7, 0.0  ;;  %v1062_v13 = vadd.f32 %v1061_v10, %v1060_v8  ;;  %v1143_v14 = vpop.f32.mrb[13].mxu1  ;;  %v1063_v15 = vpop.f32.mrb[14].mxu0 }
 0x111   :  { %v1144_v17 = vadd.f32 %v1143_v14, %v1142_v9  ;;  %v1145_v18 = vpop.f32.mrb[14].mxu1  ;;  %v1064_v19 = vpop.f32.mrb[15].mxu0 }
 0x112   :  { %885 = vst.msk [vmem:[%s1640_s3 + $0x10] sm:$0xf] %vm880_vm0, %v1009_v11  ;;  %v1010_v20 = vpack.c.bf16 %v779_v12, %v779_v12  ;;  %v593_v21 = vadd.f32 %v1062_v13, %v1531_v16  ;;  %v1065_v22 = vadd.f32 %v1064_v19, %v1063_v15  ;;  %v1146_v23 = vpop.f32.mrb[15].mxu1 }
 0x113   :  { %v1147_v24 = vadd.f32 %v1146_v23, %v1145_v18 }
 0x114   :  { %886 = vst.msk [vmem:[%s1640_s3 + $0x14] sm:$0xf] %vm880_vm0, %v1010_v20  ;;  %v713_v25 = vadd.f32 %v1144_v17, %v593_v21  ;;  %v596_v26 = vadd.f32 %v1065_v22, %v1531_v16 }
 0x116   :  { %v780_v27 = vmax.f32 %v713_v25, 0.0  ;;  %v716_v28 = vadd.f32 %v1147_v24, %v596_v26  ;;  %v1066_v29 = vpop.f32.mrb[16].mxu0 }
 0x117   :  { %v1148_v30 = vpop.f32.mrb[16].mxu1  ;;  %v1067_v31 = vpop.f32.mrb[17].mxu0 }
 0x118   :  { %v1011_v32 = vpack.c.bf16 %v780_v27, %v780_v27  ;;  %v781_v33 = vmax.f32 %v716_v28, 0.0  ;;  %v1068_v34 = vadd.f32 %v1067_v31, %v1066_v29  ;;  %v1149_v35 = vpop.f32.mrb[17].mxu1  ;;  %v1069_v36 = vpop.f32.mrb[18].mxu0 }
 0x119   :  { %v1150_v37 = vadd.f32 %v1149_v35, %v1148_v30  ;;  %v1151_v38 = vpop.f32.mrb[18].mxu1  ;;  %v1070_v39 = vpop.f32.mrb[19].mxu0 }
 0x11a   :  { %887 = vst.msk [vmem:[%s1640_s3 + $0x18] sm:$0xf] %vm880_vm0, %v1011_v32  ;;  %v1012_v40 = vpack.c.bf16 %v781_v33, %v781_v33  ;;  %v601_v41 = vadd.f32 %v1068_v34, %v1531_v16  ;;  %v1071_v42 = vadd.f32 %v1070_v39, %v1069_v36  ;;  %v1152_v43 = vpop.f32.mrb[19].mxu1 }
 0x11b   :  { %v1153_v44 = vadd.f32 %v1152_v43, %v1151_v38 }
 0x11c   :  { %888 = vst.msk [vmem:[%s1640_s3 + $0x1c] sm:$0xf] %vm880_vm0, %v1012_v40  ;;  %v721_v45 = vadd.f32 %v1150_v37, %v601_v41  ;;  %v604_v46 = vadd.f32 %v1071_v42, %v1531_v16 }
 0x11e   :  { %v782_v47 = vmax.f32 %v721_v45, 0.0  ;;  %v724_v48 = vadd.f32 %v1153_v44, %v604_v46  ;;  %v1072_v49 = vpop.f32.mrb[20].mxu0 }
 0x11f   :  { %v1154_v50 = vpop.f32.mrb[20].mxu1  ;;  %v1073_v51 = vpop.f32.mrb[21].mxu0 }
 0x120   :  { %v1013_v52 = vpack.c.bf16 %v782_v47, %v782_v47  ;;  %v783_v53 = vmax.f32 %v724_v48, 0.0  ;;  %v1074_v54 = vadd.f32 %v1073_v51, %v1072_v49  ;;  %v1155_v55 = vpop.f32.mrb[21].mxu1  ;;  %v1075_v56 = vpop.f32.mrb[22].mxu0 }
 0x121   :  { %v1156_v57 = vadd.f32 %v1155_v55, %v1154_v50  ;;  %v1157_v58 = vpop.f32.mrb[22].mxu1  ;;  %v1076_v59 = vpop.f32.mrb[23].mxu0 }
 0x122   :  { %889 = vst.msk [vmem:[%s1640_s3 + $0x20] sm:$0xf] %vm880_vm0, %v1013_v52  ;;  %v1014_v60 = vpack.c.bf16 %v783_v53, %v783_v53  ;;  %v609_v61 = vadd.f32 %v1074_v54, %v1531_v16  ;;  %v1077_v62 = vadd.f32 %v1076_v59, %v1075_v56  ;;  %v1158_v63 = vpop.f32.mrb[23].mxu1 }
 0x123   :  { %v1159_v0 = vadd.f32 %v1158_v63, %v1157_v58 }
 0x124   :  { %890 = vst.msk [vmem:[%s1640_s3 + $0x24] sm:$0xf] %vm880_vm0, %v1014_v60  ;;  %v729_v1 = vadd.f32 %v1156_v57, %v609_v61  ;;  %v612_v2 = vadd.f32 %v1077_v62, %v1531_v16 }
 0x126   :  { %v784_v3 = vmax.f32 %v729_v1, 0.0  ;;  %v732_v4 = vadd.f32 %v1159_v0, %v612_v2  ;;  %v1078_v5 = vpop.f32.mrb[24].mxu0 }
 0x127   :  { %v1160_v6 = vpop.f32.mrb[24].mxu1  ;;  %v1079_v7 = vpop.f32.mrb[25].mxu0 }
 0x128   :  { %v1015_v8 = vpack.c.bf16 %v784_v3, %v784_v3  ;;  %v785_v9 = vmax.f32 %v732_v4, 0.0  ;;  %v1080_v10 = vadd.f32 %v1079_v7, %v1078_v5  ;;  %v1161_v11 = vpop.f32.mrb[25].mxu1  ;;  %v1081_v12 = vpop.f32.mrb[26].mxu0 }
 0x129   :  { %v1162_v13 = vadd.f32 %v1161_v11, %v1160_v6  ;;  %v1163_v14 = vpop.f32.mrb[26].mxu1  ;;  %v1082_v15 = vpop.f32.mrb[27].mxu0 }
 0x12a   :  { %891 = vst.msk [vmem:[%s1640_s3 + $0x28] sm:$0xf] %vm880_vm0, %v1015_v8  ;;  %v1016_v17 = vpack.c.bf16 %v785_v9, %v785_v9  ;;  %v617_v18 = vadd.f32 %v1080_v10, %v1531_v16  ;;  %v1083_v19 = vadd.f32 %v1082_v15, %v1081_v12  ;;  %v1164_v20 = vpop.f32.mrb[27].mxu1 }
 0x12b   :  { %v1165_v21 = vadd.f32 %v1164_v20, %v1163_v14 }
 0x12c   :  { %892 = vst.msk [vmem:[%s1640_s3 + $0x2c] sm:$0xf] %vm880_vm0, %v1016_v17  ;;  %v737_v22 = vadd.f32 %v1162_v13, %v617_v18  ;;  %v620_v23 = vadd.f32 %v1083_v19, %v1531_v16 }
 0x12e   :  { %v786_v24 = vmax.f32 %v737_v22, 0.0  ;;  %v740_v25 = vadd.f32 %v1165_v21, %v620_v23  ;;  %v1084_v26 = vpop.f32.mrb[28].mxu0 }
 0x12f   :  { %v1166_v27 = vpop.f32.mrb[28].mxu1  ;;  %v1085_v28 = vpop.f32.mrb[29].mxu0 }
 0x130   :  { %v1017_v29 = vpack.c.bf16 %v786_v24, %v786_v24  ;;  %v787_v30 = vmax.f32 %v740_v25, 0.0  ;;  %v1086_v31 = vadd.f32 %v1085_v28, %v1084_v26  ;;  %v1167_v32 = vpop.f32.mrb[29].mxu1  ;;  %v1087_v33 = vpop.f32.mrb[30].mxu0 }
 0x131   :  { %v1168_v34 = vadd.f32 %v1167_v32, %v1166_v27  ;;  %v1169_v35 = vpop.f32.mrb[30].mxu1  ;;  %v1088_v36 = vpop.f32.mrb[31].mxu0 }
 0x132   :  { %893 = vst.msk [vmem:[%s1640_s3 + $0x30] sm:$0xf] %vm880_vm0, %v1017_v29  ;;  %v1018_v37 = vpack.c.bf16 %v787_v30, %v787_v30  ;;  %v625_v38 = vadd.f32 %v1086_v31, %v1531_v16  ;;  %v1089_v39 = vadd.f32 %v1088_v36, %v1087_v33  ;;  %v1170_v40 = vpop.f32.mrb[31].mxu1 }
 0x133   :  { %v1171_v41 = vadd.f32 %v1170_v40, %v1169_v35 }
 0x134   :  { %894 = vst.msk [vmem:[%s1640_s3 + $0x34] sm:$0xf] %vm880_vm0, %v1018_v37  ;;  %v745_v42 = vadd.f32 %v1168_v34, %v625_v38  ;;  %v628_v43 = vadd.f32 %v1089_v39, %v1531_v16 }
 0x136   :  { %v788_v44 = vmax.f32 %v745_v42, 0.0  ;;  %v748_v45 = vadd.f32 %v1171_v41, %v628_v43  ;;  %v1090_v46 = vpop.f32.mrb[32].mxu0 }
 0x137   :  { %v1172_v47 = vpop.f32.mrb[32].mxu1  ;;  %v1091_v48 = vpop.f32.mrb[33].mxu0 }
 0x138   :  { %v1019_v49 = vpack.c.bf16 %v788_v44, %v788_v44  ;;  %v789_v50 = vmax.f32 %v748_v45, 0.0  ;;  %v1092_v51 = vadd.f32 %v1091_v48, %v1090_v46  ;;  %v1173_v52 = vpop.f32.mrb[33].mxu1  ;;  %v1093_v53 = vpop.f32.mrb[34].mxu0 }
 0x139   :  { %v1174_v54 = vadd.f32 %v1173_v52, %v1172_v47  ;;  %v1175_v55 = vpop.f32.mrb[34].mxu1  ;;  %v1094_v56 = vpop.f32.mrb[35].mxu0 }
 0x13a   :  { %895 = vst.msk [vmem:[%s1640_s3 + $0x38] sm:$0xf] %vm880_vm0, %v1019_v49  ;;  %v1020_v57 = vpack.c.bf16 %v789_v50, %v789_v50  ;;  %v633_v58 = vadd.f32 %v1092_v51, %v1531_v16  ;;  %v1095_v59 = vadd.f32 %v1094_v56, %v1093_v53  ;;  %v1176_v60 = vpop.f32.mrb[35].mxu1 }
 0x13b   :  { %v1177_v61 = vadd.f32 %v1176_v60, %v1175_v55 }
 0x13c   :  { %896 = vst.msk [vmem:[%s1640_s3 + $0x3c] sm:$0xf] %vm880_vm0, %v1020_v57  ;;  %v753_v62 = vadd.f32 %v1174_v54, %v633_v58  ;;  %v636_v63 = vadd.f32 %v1095_v59, %v1531_v16 }
 0x13e   :  { %v790_v0 = vmax.f32 %v753_v62, 0.0  ;;  %v756_v1 = vadd.f32 %v1177_v61, %v636_v63  ;;  %v1096_v2 = vpop.f32.mrb[36].mxu0 }
 0x13f   :  { %v1178_v3 = vpop.f32.mrb[36].mxu1  ;;  %v1097_v4 = vpop.f32.mrb[37].mxu0 }
 0x140   :  { %v1021_v5 = vpack.c.bf16 %v790_v0, %v790_v0  ;;  %v791_v6 = vmax.f32 %v756_v1, 0.0  ;;  %v1098_v7 = vadd.f32 %v1097_v4, %v1096_v2  ;;  %v1179_v8 = vpop.f32.mrb[37].mxu1  ;;  %v1099_v9 = vpop.f32.mrb[38].mxu0 }
 0x141   :  { %v1180_v10 = vadd.f32 %v1179_v8, %v1178_v3  ;;  %v1181_v11 = vpop.f32.mrb[38].mxu1  ;;  %v1100_v12 = vpop.f32.mrb[39].mxu0 }
 0x142   :  { %897 = vst.msk [vmem:[%s1640_s3 + $0x40] sm:$0xf] %vm880_vm0, %v1021_v5  ;;  %v1022_v13 = vpack.c.bf16 %v791_v6, %v791_v6  ;;  %v641_v14 = vadd.f32 %v1098_v7, %v1531_v16  ;;  %v1101_v15 = vadd.f32 %v1100_v12, %v1099_v9  ;;  %v1182_v17 = vpop.f32.mrb[39].mxu1 }
 0x143   :  { %v1183_v18 = vadd.f32 %v1182_v17, %v1181_v11 }
 0x144   :  { %898 = vst.msk [vmem:[%s1640_s3 + $0x44] sm:$0xf] %vm880_vm0, %v1022_v13  ;;  %v761_v19 = vadd.f32 %v1180_v10, %v641_v14  ;;  %v644_v20 = vadd.f32 %v1101_v15, %v1531_v16 }
 0x146   :  { %v792_v21 = vmax.f32 %v761_v19, 0.0  ;;  %v764_v22 = vadd.f32 %v1183_v18, %v644_v20  ;;  %v1102_v23 = vpop.f32.mrb[40].mxu0 }
 0x147   :  { %v1184_v24 = vpop.f32.mrb[40].mxu1  ;;  %v1103_v25 = vpop.f32.mrb[41].mxu0 }
 0x148   :  { %v1023_v26 = vpack.c.bf16 %v792_v21, %v792_v21  ;;  %v793_v27 = vmax.f32 %v764_v22, 0.0  ;;  %v1104_v28 = vadd.f32 %v1103_v25, %v1102_v23  ;;  %v1185_v29 = vpop.f32.mrb[41].mxu1  ;;  %v1105_v30 = vpop.f32.mrb[42].mxu0 }
 0x149   :  { %v1186_v31 = vadd.f32 %v1185_v29, %v1184_v24  ;;  %v1187_v32 = vpop.f32.mrb[42].mxu1  ;;  %v1106_v33 = vpop.f32.mrb[43].mxu0 }
 0x14a   :  { %899 = vst.msk [vmem:[%s1640_s3 + $0x48] sm:$0xf] %vm880_vm0, %v1023_v26  ;;  %v1024_v34 = vpack.c.bf16 %v793_v27, %v793_v27  ;;  %v649_v35 = vadd.f32 %v1104_v28, %v1531_v16  ;;  %v1188_v36 = vpop.f32.mrb[43].mxu1 }
 0x14c   :  { %900 = vst.msk [vmem:[%s1640_s3 + $0x4c] sm:$0xf] %vm880_vm0, %v1024_v34  ;;  %v769_v37 = vadd.f32 %v1186_v31, %v649_v35 }
 0x14e   :  { %v794_v38 = vmax.f32 %v769_v37, 0.0 }
 0x150   :  { %v1025_v39 = vpack.c.bf16 %v794_v38, %v794_v38 }
 0x152   :  { %902 = vst.msk [vmem:[%s1640_s3 + $0x50] sm:$0x1] %vm901_vm1, %v1025_v39 }

// kernel: cnn_policy_forward.6
= control target key start
LH: loop header
LB: loop body
LE: loop exit
PB: predicated region body
PF: predicated region fallthrough
CT: control target
= control target key end

     0   :  { %v1248_v34 = vmov 0.0   ;;  %vm1249_vm0 = vmmov 0   ;;  %vm516_vm1 = vcmask 523264   ;;  %vm868_vm2 = vcmask 519168   ;;  %s1599_s1 = inlined_call_operand.vmem [shape: bf16[576,64], index: 1, kind: input, shape index: {}]   ;;  %s1600_s0 = inlined_call_operand.vmem [shape: bf16[98,576], index: 0, kind: input, shape index: {}]   ;;  %s1601_s2 = inlined_call_operand.vmem [shape: f32[1,64], index: 2, kind: input, shape index: {}]   ;;  %s1602_s3 = inlined_call_operand.vmem [shape: bf16[98,64], index: 3, kind: output, shape index: {}]  }
   0x1   :  { %v1165_v0 = vld [vmem:[%s1599_s1 + $0x40] sm:$0xff]   ;;  %v1169_v4 = vld [vmem:[%s1599_s1 + $0x48] sm:$0xff]   ;;  %v1173_v8 = vld [vmem:[%s1599_s1 + $0x50] sm:$0xff]   ;;  %vm881_vm3 = vcmask 516096  }
   0x2   :  { %v1166_v1 = vld [vmem:[%s1599_s1 + $0xc0] sm:$0xff]   ;;  %992 = vmatprep.subr.bf16.mxu0 %v1165_v0  ;;  %v1170_v5 = vld [vmem:[%s1599_s1 + $0xc8] sm:$0xff]   ;;  %v1174_v9 = vld [vmem:[%s1599_s1 + $0xd0] sm:$0xff]  }
   0x3   :  { %v1167_v2 = vld [vmem:[%s1599_s1] sm:$0xff]   ;;  %1050 = vmatprep.subr.bf16.mxu1 %v1166_v1  ;;  %v1171_v6 = vld [vmem:[%s1599_s1 + $0x8] sm:$0xff]   ;;  %v1175_v10 = vld [vmem:[%s1599_s1 + $0x10] sm:$0xff]  }
   0x4   :  { %v1168_v3 = vld [vmem:[%s1599_s1 + $0x80] sm:$0xff]   ;;  %993 = vmatpush3.bf16.msra.mxu0 %v1167_v2  ;;  %v1172_v7 = vld [vmem:[%s1599_s1 + $0x88] sm:$0xff]   ;;  %v1176_v11 = vld [vmem:[%s1599_s1 + $0x90] sm:$0xff]  }
   0x5   :  { %1051 = vmatpush3.bf16.msra.mxu1 %v1168_v3  ;;  %994 = vmatprep.subr.bf16.mxu0 %v1169_v4  ;;  %v1177_v12 = vld [vmem:[%s1599_s1 + $0x58] sm:$0xff]   ;;  %v1181_v16 = vld [vmem:[%s1599_s1 + $0x60] sm:$0xff]   ;;  %v1185_v20 = vld [vmem:[%s1599_s1 + $0x68] sm:$0xff]  }
   0x6   :  { %1052 = vmatprep.subr.bf16.mxu1 %v1170_v5  ;;  %v1178_v13 = vld [vmem:[%s1599_s1 + $0xd8] sm:$0xff]   ;;  %v1182_v17 = vld [vmem:[%s1599_s1 + $0xe0] sm:$0xff]   ;;  %v1186_v21 = vld [vmem:[%s1599_s1 + $0xe8] sm:$0xff]  }
   0x7   :  { %v1179_v14 = vld [vmem:[%s1599_s1 + $0x18] sm:$0xff]   ;;  %v1183_v18 = vld [vmem:[%s1599_s1 + $0x20] sm:$0xff]   ;;  %v1187_v22 = vld [vmem:[%s1599_s1 + $0x28] sm:$0xff]  }
   0x8   :  { %995 = vmatpush3.bf16.msra.mxu0 %v1171_v6  ;;  %v1180_v15 = vld [vmem:[%s1599_s1 + $0x98] sm:$0xff]   ;;  %v1184_v19 = vld [vmem:[%s1599_s1 + $0xa0] sm:$0xff]   ;;  %v1188_v23 = vld [vmem:[%s1599_s1 + $0xa8] sm:$0xff]  }
   0x9   :  { %1053 = vmatpush3.bf16.msra.mxu1 %v1172_v7  ;;  %996 = vmatprep.subr.bf16.mxu0 %v1173_v8  ;;  %v1189_v24 = vld [vmem:[%s1599_s1 + $0x70] sm:$0xff]   ;;  %v1193_v28 = vld [vmem:[%s1599_s1 + $0x78] sm:$0xff]   ;;  %v1202_v36 = vld [vmem:[%s1600_s0 + $0xc] ss:$20 sps:$4 sm:$0xff]  }
   0xa   :  { %1054 = vmatprep.subr.bf16.mxu1 %v1174_v9  ;;  %v1190_v25 = vld [vmem:[%s1599_s1 + $0xf0] sm:$0xff]   ;;  %v1194_v29 = vld [vmem:[%s1599_s1 + $0xf8] sm:$0xff]   ;;  %v1203_v37 = vld [vmem:[%s1599_s1 + $0x100] sm:$0xff]   ;;  %658 = vmatprep.mubr.bf16.mxu1 %v1202_v36 }
   0xb   :  { %v1191_v26 = vld [vmem:[%s1599_s1 + $0x30] sm:$0xff]   ;;  %v1195_v30 = vld [vmem:[%s1599_s1 + $0x38] sm:$0xff]   ;;  %v1204_v38 = vld [vmem:[%s1600_s0 + $0x2c] ss:$20 sps:$4 sm:$0xff]  }
   0xc   :  { %997 = vmatpush3.bf16.msra.mxu0 %v1175_v10  ;;  %v1192_v27 = vld [vmem:[%s1599_s1 + $0xb0] sm:$0xff]   ;;  %v1196_v31 = vld [vmem:[%s1599_s1 + $0xb8] sm:$0xff]   ;;  %v1214_v43 = vld [vmem:[%s1599_s1 + $0x108] sm:$0xff]  }
   0xd   :  { %1055 = vmatpush3.bf16.msra.mxu1 %v1176_v11  ;;  %998 = vmatprep.subr.bf16.mxu0 %v1177_v12  ;;  %v1197_v32 = vld [vmem:[%s1600_s0] ss:$20 sps:$4 sm:$0xff]   ;;  %v1199_v33 = vld [vmem:[%s1600_s0 + $0x4] ss:$20 sps:$4 sm:$0xff]   ;;  %v1200_v35 = vld [vmem:[%s1600_s0 + $0x8] ss:$20 sps:$4 sm:$0xff]  }
   0xe   :  { %1056 = vmatprep.subr.bf16.mxu1 %v1178_v13  ;;  %570 = vmatprep.mubr.bf16.mxu0 %v1199_v33  ;;  %v1206_v39 = vld [vmem:[%s1600_s0 + $0x34] ss:$20 sps:$4 sm:$0xff]   ;;  %v1209_v41 = vld [vmem:[%s1600_s0 + $0x30] ss:$20 sps:$4 sm:$0xff]   ;;  %v1216_v47 = vld [vmem:[%s1600_s0 + $0x58] ss:$20 sps:$4 sm:$0xff]  }
   0xf   :  { %v1208_v40 = vld [vmem:[%s1600_s0 + $0x28] ss:$20 sps:$4 sm:$0xff]   ;;  %v1223_v45 = vld [vmem:[%s1599_s1 + $0x110] sm:$0xff]   ;;  %v1219_v49 = vld [vmem:[%s1600_s0 + $0x84] ss:$20 sps:$4 sm:$0xff]  }
  0x10   :  { %999 = vmatpush3.bf16.msra.mxu0 %v1179_v14  ;;  %v1210_v42 = vld [vmem:[%s1600_s0 + $0x54] ss:$20 sps:$4 sm:$0xff]   ;;  %v1212_v44 = vld [vmem:[%s1600_s0 + $0x5c] ss:$20 sps:$4 sm:$0xff]   ;;  %v1221_v51 = vld [vmem:[%s1600_s0 + $0x78] ss:$20 sps:$4 sm:$0xff]  }
  0x11   :  { %1057 = vmatpush3.bf16.msra.mxu1 %v1180_v15  ;;  %1000 = vmatprep.subr.bf16.mxu0 %v1181_v16  ;;  %v1215_v46 = vld [vmem:[%s1600_s0 + $0x50] ss:$20 sps:$4 sm:$0xff]   ;;  %v1236_v50 = vld [vmem:[%s1599_s1 + $0x118] sm:$0xff]   ;;  %v1222_v52 = vld [vmem:[%s1600_s0 + $0x80] ss:$20 sps:$4 sm:$0xff]  }
  0x12   :  { %1058 = vmatprep.subr.bf16.mxu1 %v1182_v17  ;;  %v1217_v48 = vld [vmem:[%s1600_s0 + $0x7c] ss:$20 sps:$4 sm:$0xff]   ;;  %v1224_v53 = vld [vmem:[%s1600_s0 + $0xa4] ss:$20 sps:$4 sm:$0xff]   ;;  %v1226_v54 = vld [vmem:[%s1600_s0 + $0xac] ss:$20 sps:$4 sm:$0xff]  }
  0x13   :  { %v1228_v55 = vld [vmem:[%s1600_s0 + $0xa0] ss:$20 sps:$4 sm:$0xff]   ;;  %v1229_v56 = vld [vmem:[%s1600_s0 + $0xa8] ss:$20 sps:$4 sm:$0xff]   ;;  %v1235_v62 = vld [vmem:[%s1600_s0 + $0xd0] ss:$20 sps:$4 sm:$0xff]  }
  0x14   :  { %1001 = vmatpush3.bf16.msra.mxu0 %v1183_v18  ;;  %v1230_v57 = vld [vmem:[%s1600_s0 + $0xcc] ss:$20 sps:$4 sm:$0xff]   ;;  %v1232_v58 = vld [vmem:[%s1600_s0 + $0xd4] ss:$20 sps:$4 sm:$0xff]   ;;  %v52_v60 = vld [vmem:[%s1600_s0 + $0xf8] sm:$0x11] }
  0x15   :  { %1059 = vmatpush3.bf16.msra.mxu1 %v1184_v19  ;;  %1002 = vmatprep.subr.bf16.mxu0 %v1185_v20  ;;  %v51_v59 = vld [vmem:[%s1600_s0 + $0xf0] sm:$0x11]  ;;  %v1234_v61 = vld [vmem:[%s1600_s0 + $0xc8] ss:$20 sps:$4 sm:$0xff]   ;;  %v921_v0 = vcombine.high %v52_v60, %v52_v60  ;;  %v920_v2 = vcombine.low %v52_v60, %v52_v60  ;;  %v1243_v5 = vld [vmem:[%s1600_s0 + $0x38] ss:$20 sps:$4 sm:$0xff]  }
  0x16   :  { %1060 = vmatprep.subr.bf16.mxu1 %v1186_v21  ;;  %v919_v63 = vcombine.high %v51_v59, %v51_v59  ;;  %v918_v1 = vcombine.low %v51_v59, %v51_v59  ;;  %v1241_v3 = vld [vmem:[%s1600_s0 + $0x10] ss:$20 sps:$4 sm:$0xff]   ;;  %v1244_v6 = vld [vmem:[%s1600_s0 + $0xd8] ss:$20 sps:$4 sm:$0xff]   ;;  %v1245_v7 = vld [vmem:[%s1600_s0 + $0x60] ss:$20 sps:$4 sm:$0xff]  }
  0x17   :  { %v1242_v4 = vld [vmem:[%s1600_s0 + $0xb0] ss:$20 sps:$4 sm:$0xff]   ;;  %v1246_v8 = vld [vmem:[%s1600_s0 + $0x100] ss:$0 sps:$4 sm:$0x11]  }
  0x18   :  { %1003 = vmatpush3.bf16.msra.mxu0 %v1187_v22  ;;  %v1247_v9 = vld [vmem:[%s1600_s0 + $0x88] ss:$20 sps:$4 sm:$0xff]   ;;  %v1509_v11 = vld [vmem:[%s1601_s2] ss:$0 sm:$0xff] }
  0x19   :  { %1061 = vmatpush3.bf16.msra.mxu1 %v1188_v23  ;;  %1004 = vmatprep.subr.bf16.mxu0 %v1189_v24 }
  0x1a   :  { %1062 = vmatprep.subr.bf16.mxu1 %v1190_v25 }
  0x1c   :  { %1005 = vmatpush3.bf16.msra.mxu0 %v1191_v26 }
  0x1d   :  { %1063 = vmatpush3.bf16.msra.mxu1 %v1192_v27  ;;  %1006 = vmatprep.subr.bf16.mxu0 %v1193_v28 }
  0x1e   :  { %1064 = vmatprep.subr.bf16.mxu1 %v1194_v29 }
  0x20   :  { %1007 = vmatpush3.bf16.msra.mxu0 %v1195_v30 }
  0x21   :  { %1065 = vmatpush3.bf16.msra.mxu1 %v1196_v31  ;;  %1119 = vmatprep.subr.bf16.mxu0 %v1248_v34 }
  0x22   :  { %1155 = vmatprep.subr.bf16.mxu1 %v1248_v34 }
  0x23   :  { %571 = vmatmul.mubr.bf16.vlgmr.msra.gmra.mrb[0].mxu0 %v1197_v32 }
  0x24   :  { %659 = vmatmul.mubr.bf16.vlgmr.msra.gmra.mrb[0].mxu1 %v1200_v35  ;;  %1120 = vmatpush3.bf16.msra.mxu0 %v1203_v37 }
  0x25   :  { %578 = vmatprep.mubr.bf16.mxu0 %v1204_v38  ;;  %1159 = vmatpush3.bf16.msra.mxu1 %v1203_v37 }
  0x26   :  { %666 = vmatprep.mubr.bf16.mxu1 %v1206_v39  ;;  %1121 = vmatprep.subr.bf16.mxu0 %v1248_v34 }
  0x27   :  { %1156 = vmatprep.subr.bf16.mxu1 %v1248_v34 }
  0x28   :  { %1122 = vmatpush3.bf16.msra.mxu0 %v1214_v43 }
  0x29   :  { %1160 = vmatpush3.bf16.msra.mxu1 %v1214_v43  ;;  %1123 = vmatprep.subr.bf16.mxu0 %v1248_v34 }
  0x2a   :  { %1157 = vmatprep.subr.bf16.mxu1 %v1248_v34 }
  0x2b   :  { %579 = vmatmul.mubr.bf16.gmra.mrb[4].mxu0 %v1208_v40 }
  0x2c   :  { %667 = vmatmul.mubr.bf16.gmra.mrb[4].mxu1 %v1209_v41  ;;  %586 = vmatprep.mubr.bf16.mxu0 %v1210_v42 }
  0x2d   :  { %674 = vmatprep.mubr.bf16.mxu1 %v1212_v44  ;;  %1124 = vmatpush3.bf16.msra.mxu0 %v1223_v45 }
  0x2e   :  { %1161 = vmatpush3.bf16.msra.mxu1 %v1223_v45  ;;  %1125 = vmatprep.subr.bf16.mxu0 %v1248_v34 }
  0x2f   :  { %1158 = vmatprep.subr.bf16.mxu1 %v1248_v34 }
  0x31   :  { %1126 = vmatpush3.bf16.msra.mxu0 %v1236_v50 }
  0x32   :  { %1162 = vmatpush3.bf16.msra.mxu1 %v1236_v50 }
  0x33   :  { %587 = vmatmul.mubr.bf16.gmra.mrb[8].mxu0 %v1215_v46 }
  0x34   :  { %675 = vmatmul.mubr.bf16.gmra.mrb[8].mxu1 %v1216_v47  ;;  %594 = vmatprep.mubr.bf16.mxu0 %v1217_v48 }
  0x35   :  { %682 = vmatprep.mubr.bf16.mxu1 %v1219_v49 }
  0x3b   :  { %595 = vmatmul.mubr.bf16.gmra.mrb[12].mxu0 %v1221_v51 }
  0x3c   :  { %683 = vmatmul.mubr.bf16.gmra.mrb[12].mxu1 %v1222_v52  ;;  %602 = vmatprep.mubr.bf16.mxu0 %v1224_v53 }
  0x3d   :  { %690 = vmatprep.mubr.bf16.mxu1 %v1226_v54 }
  0x43   :  { %603 = vmatmul.mubr.bf16.gmra.mrb[16].mxu0 %v1228_v55 }
  0x44   :  { %691 = vmatmul.mubr.bf16.gmra.mrb[16].mxu1 %v1229_v56  ;;  %610 = vmatprep.mubr.bf16.mxu0 %v1230_v57 }
  0x45   :  { %698 = vmatprep.mubr.bf16.mxu1 %v1232_v58 }
  0x4b   :  { %611 = vmatmul.mubr.bf16.gmra.mrb[20].mxu0 %v1234_v61 }
  0x4c   :  { %699 = vmatmul.mubr.bf16.gmra.mrb[20].mxu1 %v1235_v62  ;;  %618 = vmatprep.mubr.bf16.mxu0 %v919_v63 }
  0x4d   :  { %706 = vmatprep.mubr.bf16.mxu1 %v921_v0 }
  0x53   :  { %619 = vmatmul.mubr.bf16.gmra.mrb[24].mxu0 %v918_v1 }
  0x54   :  { %707 = vmatmul.mubr.bf16.gmra.mrb[24].mxu1 %v920_v2  ;;  %1127 = vmatprep.mubr.msk.bf16.mxu0 %vm1249_vm0, %v1248_v34 }
  0x55   :  { %1143 = vmatprep.mubr.msk.bf16.mxu1 %vm1249_vm0, %v1248_v34 }
  0x5b   :  { %1128 = vmatmul.mubr.msk.bf16.vlgmr.msra.gmra.mrb[28].mxu0 %vm516_vm1, %v1241_v3 }
  0x5c   :  { %1144 = vmatmul.mubr.msk.bf16.vlgmr.msra.gmra.mrb[28].mxu1 %vm516_vm1, %v1242_v4  ;;  %1131 = vmatprep.mubr.msk.bf16.mxu0 %vm1249_vm0, %v1248_v34 }
  0x5d   :  { %1147 = vmatprep.mubr.msk.bf16.mxu1 %vm1249_vm0, %v1248_v34 }
  0x63   :  { %1132 = vmatmul.mubr.msk.bf16.gmra.mrb[32].mxu0 %vm516_vm1, %v1243_v5 }
  0x64   :  { %1148 = vmatmul.mubr.msk.bf16.gmra.mrb[32].mxu1 %vm516_vm1, %v1244_v6  ;;  %1135 = vmatprep.mubr.msk.bf16.mxu0 %vm1249_vm0, %v1248_v34 }
  0x65   :  { %1151 = vmatprep.mubr.msk.bf16.mxu1 %vm1249_vm0, %v1248_v34 }
  0x6b   :  { %1136 = vmatmul.mubr.msk.bf16.gmra.mrb[36].mxu0 %vm516_vm1, %v1245_v7 }
  0x6c   :  { %1152 = vmatmul.mubr.msk.bf16.gmra.mrb[36].mxu1 %vm516_vm1, %v1246_v8  ;;  %1139 = vmatprep.mubr.msk.bf16.mxu0 %vm1249_vm0, %v1248_v34 }
  0x73   :  { %1140 = vmatmul.mubr.msk.bf16.gmra.mrb[40].mxu0 %vm516_vm1, %v1247_v9 }
  0xf6   :  { %v1008_v10 = vpop.f32.mrb[0].mxu0 }
  0xf7   :  { %v1009_v12 = vpop.f32.mrb[1].mxu0  ;;  %v1066_v13 = vpop.f32.mrb[0].mxu1 }
  0xf8   :  { %v1010_v14 = vadd.f32 %v1009_v12, %v1008_v10  ;;  %v1011_v15 = vpop.f32.mrb[2].mxu0  ;;  %v1067_v16 = vpop.f32.mrb[1].mxu1 }
  0xf9   :  { %v1012_v17 = vpop.f32.mrb[3].mxu0  ;;  %v1068_v18 = vadd.f32 %v1067_v16, %v1066_v13  ;;  %v1069_v19 = vpop.f32.mrb[2].mxu1 }
  0xfa   :  { %v573_v20 = vadd.f32 %v1010_v14, %v1509_v11  ;;  %v1013_v21 = vadd.f32 %v1012_v17, %v1011_v15  ;;  %v1070_v22 = vpop.f32.mrb[3].mxu1 }
  0xfb   :  { %v1071_v23 = vadd.f32 %v1070_v22, %v1069_v19 }
  0xfc   :  { %v576_v24 = vadd.f32 %v1013_v21, %v1509_v11  ;;  %v1513_v25 = vadd.f32 %v1068_v18, %v573_v20 }
  0xfe   :  { %v1014_v26 = vpop.f32.mrb[4].mxu0  ;;  %v1515_v27 = vadd.f32 %v1071_v23, %v576_v24 }
  0xff   :  { %v1015_v28 = vpop.f32.mrb[5].mxu0  ;;  %v1072_v29 = vpop.f32.mrb[4].mxu1 }
 0x100   :  { %v1016_v30 = vadd.f32 %v1015_v28, %v1014_v26  ;;  %v1017_v31 = vpop.f32.mrb[6].mxu0  ;;  %v1073_v32 = vpop.f32.mrb[5].mxu1 }
 0x101   :  { %v1018_v33 = vpop.f32.mrb[7].mxu0  ;;  %v1074_v34 = vadd.f32 %v1073_v32, %v1072_v29  ;;  %v1075_v35 = vpop.f32.mrb[6].mxu1 }
 0x102   :  { %v581_v36 = vadd.f32 %v1016_v30, %v1509_v11  ;;  %v1019_v37 = vadd.f32 %v1018_v33, %v1017_v31  ;;  %v1076_v38 = vpop.f32.mrb[7].mxu1 }
 0x103   :  { %v1077_v39 = vadd.f32 %v1076_v38, %v1075_v35 }
 0x104   :  { %v584_v40 = vadd.f32 %v1019_v37, %v1509_v11  ;;  %v1519_v41 = vadd.f32 %v1074_v34, %v581_v36 }
 0x106   :  { %v1020_v42 = vpop.f32.mrb[8].mxu0  ;;  %v1521_v43 = vadd.f32 %v1077_v39, %v584_v40 }
 0x107   :  { %v1021_v44 = vpop.f32.mrb[9].mxu0  ;;  %v1078_v45 = vpop.f32.mrb[8].mxu1 }
 0x108   :  { %v1022_v46 = vadd.f32 %v1021_v44, %v1020_v42  ;;  %v1023_v47 = vpop.f32.mrb[10].mxu0  ;;  %v1079_v48 = vpop.f32.mrb[9].mxu1 }
 0x109   :  { %v1024_v49 = vpop.f32.mrb[11].mxu0  ;;  %v1080_v50 = vadd.f32 %v1079_v48, %v1078_v45  ;;  %v1081_v51 = vpop.f32.mrb[10].mxu1 }
 0x10a   :  { %v589_v52 = vadd.f32 %v1022_v46, %v1509_v11  ;;  %v1025_v53 = vadd.f32 %v1024_v49, %v1023_v47  ;;  %v1082_v54 = vpop.f32.mrb[11].mxu1 }
 0x10b   :  { %v1083_v55 = vadd.f32 %v1082_v54, %v1081_v51 }
 0x10c   :  { %v592_v56 = vadd.f32 %v1025_v53, %v1509_v11  ;;  %v1525_v57 = vadd.f32 %v1080_v50, %v589_v52 }
 0x10e   :  { %v1026_v58 = vpop.f32.mrb[12].mxu0  ;;  %v1527_v59 = vadd.f32 %v1083_v55, %v592_v56 }
 0x10f   :  { %v1027_v60 = vpop.f32.mrb[13].mxu0  ;;  %v1084_v61 = vpop.f32.mrb[12].mxu1 }
 0x110   :  { %v1028_v62 = vadd.f32 %v1027_v60, %v1026_v58  ;;  %v1029_v63 = vpop.f32.mrb[14].mxu0  ;;  %v1085_v0 = vpop.f32.mrb[13].mxu1 }
 0x111   :  { %v1030_v1 = vpop.f32.mrb[15].mxu0  ;;  %v1086_v2 = vadd.f32 %v1085_v0, %v1084_v61  ;;  %v1087_v3 = vpop.f32.mrb[14].mxu1 }
 0x112   :  { %v597_v4 = vadd.f32 %v1028_v62, %v1509_v11  ;;  %v1031_v5 = vadd.f32 %v1030_v1, %v1029_v63  ;;  %v1088_v6 = vpop.f32.mrb[15].mxu1 }
 0x113   :  { %v1089_v7 = vadd.f32 %v1088_v6, %v1087_v3 }
 0x114   :  { %v600_v8 = vadd.f32 %v1031_v5, %v1509_v11  ;;  %v1531_v9 = vadd.f32 %v1086_v2, %v597_v4 }
 0x116   :  { %v1032_v10 = vpop.f32.mrb[16].mxu0  ;;  %v1533_v12 = vadd.f32 %v1089_v7, %v600_v8 }
 0x117   :  { %v1033_v13 = vpop.f32.mrb[17].mxu0  ;;  %v1090_v14 = vpop.f32.mrb[16].mxu1 }
 0x118   :  { %v1034_v15 = vadd.f32 %v1033_v13, %v1032_v10  ;;  %v1035_v16 = vpop.f32.mrb[18].mxu0  ;;  %v1091_v17 = vpop.f32.mrb[17].mxu1 }
 0x119   :  { %v1036_v18 = vpop.f32.mrb[19].mxu0  ;;  %v1092_v19 = vadd.f32 %v1091_v17, %v1090_v14  ;;  %v1093_v20 = vpop.f32.mrb[18].mxu1 }
 0x11a   :  { %v605_v21 = vadd.f32 %v1034_v15, %v1509_v11  ;;  %v1037_v22 = vadd.f32 %v1036_v18, %v1035_v16  ;;  %v1094_v23 = vpop.f32.mrb[19].mxu1 }
 0x11b   :  { %v1095_v24 = vadd.f32 %v1094_v23, %v1093_v20 }
 0x11c   :  { %v608_v26 = vadd.f32 %v1037_v22, %v1509_v11  ;;  %v693_v28 = vadd.f32 %v1092_v19, %v605_v21 }
 0x11e   :  { %v1038_v29 = vpop.f32.mrb[20].mxu0  ;;  %v696_v30 = vadd.f32 %v1095_v24, %v608_v26 }
 0x11f   :  { %v1039_v31 = vpop.f32.mrb[21].mxu0  ;;  %v1096_v32 = vpop.f32.mrb[20].mxu1 }
 0x120   :  { %v1040_v33 = vadd.f32 %v1039_v31, %v1038_v29  ;;  %v1041_v34 = vpop.f32.mrb[22].mxu0  ;;  %v1097_v35 = vpop.f32.mrb[21].mxu1 }
 0x121   :  { %v1042_v36 = vpop.f32.mrb[23].mxu0  ;;  %v1098_v37 = vadd.f32 %v1097_v35, %v1096_v32  ;;  %v1099_v38 = vpop.f32.mrb[22].mxu1 }
 0x122   :  { %v613_v39 = vadd.f32 %v1040_v33, %v1509_v11  ;;  %v1043_v40 = vadd.f32 %v1042_v36, %v1041_v34  ;;  %v1100_v42 = vpop.f32.mrb[23].mxu1 }
 0x123   :  { %v1101_v44 = vadd.f32 %v1100_v42, %v1099_v38 }
 0x124   :  { %v616_v45 = vadd.f32 %v1043_v40, %v1509_v11  ;;  %v701_v46 = vadd.f32 %v1098_v37, %v613_v39 }
 0x126   :  { %v1044_v47 = vpop.f32.mrb[24].mxu0  ;;  %v704_v48 = vadd.f32 %v1101_v44, %v616_v45 }
 0x127   :  { %v1045_v49 = vpop.f32.mrb[25].mxu0  ;;  %v1102_v50 = vpop.f32.mrb[24].mxu1 }
 0x128   :  { %v1046_v51 = vadd.f32 %v1045_v49, %v1044_v47  ;;  %v1047_v52 = vpop.f32.mrb[26].mxu0  ;;  %v1103_v53 = vpop.f32.mrb[25].mxu1 }
 0x129   :  { %v1048_v54 = vpop.f32.mrb[27].mxu0  ;;  %v1104_v55 = vadd.f32 %v1103_v53, %v1102_v50  ;;  %v1105_v56 = vpop.f32.mrb[26].mxu1 }
 0x12a   :  { %v621_v58 = vadd.f32 %v1046_v51, %v1509_v11  ;;  %v1106_v60 = vpop.f32.mrb[27].mxu1 }
 0x12c   :  { %v709_v61 = vadd.f32 %v1104_v55, %v621_v58 }
 0x12e   :  { %v748_v62 = vpop.f32.mrb[28].mxu0 }
 0x12f   :  { %v749_v63 = vadd.f32 %v748_v62, %v1513_v25  ;;  %v780_v0 = vpop.f32.mrb[28].mxu1  ;;  %v1129_v1 = vpop.f32.mrb[29].mxu0 }
 0x130   :  { %v781_v2 = vadd.f32 %v780_v0, %v693_v28  ;;  %v1145_v3 = vpop.f32.mrb[29].mxu1  ;;  %v751_v4 = vpop.f32.mrb[30].mxu0 }
 0x131   :  { %v802_v5 = vmax.f32 %v749_v63, 0.0  ;;  %v752_v6 = vadd.f32 %v751_v4, %v1515_v27  ;;  %v783_v7 = vpop.f32.mrb[30].mxu1  ;;  %v1130_v8 = vpop.f32.mrb[31].mxu0 }
 0x132   :  { %v810_v10 = vmax.f32 %v781_v2, 0.0  ;;  %v784_v13 = vadd.f32 %v783_v7, %v696_v30  ;;  %v1146_v14 = vpop.f32.mrb[31].mxu1 }
 0x133   :  { %v979_v11 = vpack.c.bf16 %v802_v5, %v802_v5  ;;  %v803_v15 = vmax.f32 %v752_v6, 0.0 }
 0x134   :  { %v987_v16 = vpack.c.bf16 %v810_v10, %v810_v10  ;;  %v811_v17 = vmax.f32 %v784_v13, 0.0 }
 0x135   :  { %869 = vst.msk [vmem:[%s1602_s3] sm:$0xf] %vm868_vm2, %v979_v11  ;;  %v980_v25 = vpack.c.bf16 %v803_v15, %v803_v15 }
 0x136   :  { %877 = vst.msk [vmem:[%s1602_s3 + $0x20] sm:$0xf] %vm868_vm2, %v987_v16  ;;  %v988_v27 = vpack.c.bf16 %v811_v17, %v811_v17  ;;  %v756_v18 = vpop.f32.mrb[32].mxu0 }
 0x137   :  { %870 = vst.msk [vmem:[%s1602_s3 + $0x4] sm:$0xf] %vm868_vm2, %v980_v25  ;;  %v757_v19 = vadd.f32 %v756_v18, %v1519_v41  ;;  %v788_v20 = vpop.f32.mrb[32].mxu1  ;;  %v1133_v21 = vpop.f32.mrb[33].mxu0 }
 0x138   :  { %878 = vst.msk [vmem:[%s1602_s3 + $0x24] sm:$0xf] %vm868_vm2, %v988_v27  ;;  %v789_v22 = vadd.f32 %v788_v20, %v701_v46  ;;  %v1149_v23 = vpop.f32.mrb[33].mxu1  ;;  %v759_v24 = vpop.f32.mrb[34].mxu0 }
 0x139   :  { %v804_v26 = vmax.f32 %v757_v19, 0.0  ;;  %v760_v28 = vadd.f32 %v759_v24, %v1521_v43  ;;  %v791_v29 = vpop.f32.mrb[34].mxu1  ;;  %v1134_v30 = vpop.f32.mrb[35].mxu0 }
 0x13a   :  { %v812_v31 = vmax.f32 %v789_v22, 0.0  ;;  %v792_v32 = vadd.f32 %v791_v29, %v704_v48  ;;  %v1150_v33 = vpop.f32.mrb[35].mxu1 }
 0x13b   :  { %v981_v34 = vpack.c.bf16 %v804_v26, %v804_v26  ;;  %v805_v41 = vmax.f32 %v760_v28, 0.0 }
 0x13c   :  { %v989_v35 = vpack.c.bf16 %v812_v31, %v812_v31  ;;  %v813_v36 = vmax.f32 %v792_v32, 0.0 }
 0x13d   :  { %871 = vst.msk [vmem:[%s1602_s3 + $0x8] sm:$0xf] %vm868_vm2, %v981_v34  ;;  %v982_v37 = vpack.c.bf16 %v805_v41, %v805_v41 }
 0x13e   :  { %879 = vst.msk [vmem:[%s1602_s3 + $0x28] sm:$0xf] %vm868_vm2, %v989_v35  ;;  %v990_v43 = vpack.c.bf16 %v813_v36, %v813_v36  ;;  %v764_v38 = vpop.f32.mrb[36].mxu0 }
 0x13f   :  { %872 = vst.msk [vmem:[%s1602_s3 + $0xc] sm:$0xf] %vm868_vm2, %v982_v37  ;;  %v765_v39 = vadd.f32 %v764_v38, %v1525_v57  ;;  %v796_v40 = vpop.f32.mrb[36].mxu1  ;;  %v1137_v42 = vpop.f32.mrb[37].mxu0 }
 0x140   :  { %880 = vst.msk [vmem:[%s1602_s3 + $0x2c] sm:$0xf] %vm868_vm2, %v990_v43  ;;  %v797_v44 = vadd.f32 %v796_v40, %v709_v61  ;;  %v767_v45 = vpop.f32.mrb[38].mxu0  ;;  %v1153_v46 = vpop.f32.mrb[37].mxu1 }
 0x141   :  { %v806_v47 = vmax.f32 %v765_v39, 0.0  ;;  %v768_v48 = vadd.f32 %v767_v45, %v1527_v59  ;;  %v1138_v49 = vpop.f32.mrb[39].mxu0  ;;  %v799_v50 = vpop.f32.mrb[38].mxu1 }
 0x142   :  { %v814_v51 = vmax.f32 %v797_v44, 0.0  ;;  %v1154_v52 = vpop.f32.mrb[39].mxu1 }
 0x143   :  { %v983_v53 = vpack.c.bf16 %v806_v47, %v806_v47  ;;  %v807_v57 = vmax.f32 %v768_v48, 0.0 }
 0x144   :  { %v991_v54 = vpack.c.bf16 %v814_v51, %v814_v51 }
 0x145   :  { %873 = vst.msk [vmem:[%s1602_s3 + $0x10] sm:$0xf] %vm868_vm2, %v983_v53  ;;  %v984_v55 = vpack.c.bf16 %v807_v57, %v807_v57 }
 0x146   :  { %882 = vst.msk [vmem:[%s1602_s3 + $0x30] sm:$0x1] %vm881_vm3, %v991_v54  ;;  %v772_v56 = vpop.f32.mrb[40].mxu0 }
 0x147   :  { %874 = vst.msk [vmem:[%s1602_s3 + $0x14] sm:$0xf] %vm868_vm2, %v984_v55  ;;  %v773_v59 = vadd.f32 %v772_v56, %v1531_v9  ;;  %v1141_v58 = vpop.f32.mrb[41].mxu0 }
 0x148   :  { %v775_v60 = vpop.f32.mrb[42].mxu0 }
 0x149   :  { %v808_v61 = vmax.f32 %v773_v59, 0.0  ;;  %v776_v62 = vadd.f32 %v775_v60, %v1533_v12  ;;  %v1142_v63 = vpop.f32.mrb[43].mxu0 }
 0x14b   :  { %v985_v0 = vpack.c.bf16 %v808_v61, %v808_v61  ;;  %v809_v1 = vmax.f32 %v776_v62, 0.0 }
 0x14d   :  { %875 = vst.msk [vmem:[%s1602_s3 + $0x18] sm:$0xf] %vm868_vm2, %v985_v0  ;;  %v986_v2 = vpack.c.bf16 %v809_v1, %v809_v1 }
 0x14f   :  { %876 = vst.msk [vmem:[%s1602_s3 + $0x1c] sm:$0xf] %vm868_vm2, %v986_v2 }

// kernel: cnn_policy_forward.7
= control target key start
LH: loop header
LB: loop body
LE: loop exit
PB: predicated region body
PF: predicated region fallthrough
CT: control target
= control target key end

     0   :  { %s2558_s18 = smov 0   ;;  %s2882_s0 = inlined_call_operand.vmem [shape: bf16[2,3200], index: 0, kind: input, shape index: {}]   ;;  %s2883_s1 = inlined_call_operand.vmem [shape: bf16[3200,512], index: 1, kind: input, shape index: {}]   ;;  %s2884_s2 = inlined_call_operand.vmem [shape: f32[1,512], index: 2, kind: input, shape index: {}]   ;;  %s2885_s3 = inlined_call_operand.vmem [shape: bf16[512,128], index: 3, kind: input, shape index: {}]   ;;  %s2886_s4 = inlined_call_operand.vmem [shape: f32[1,128], index: 4, kind: input, shape index: {}]   ;;  %s2887_s5 = inlined_call_operand.vmem [shape: f32[2,128], index: 5, kind: output, shape index: {}]  }
   0x1 LB: > { %s2564_s19 = sadd.s32 4294967295, %s2522_s18   ;;  %p1970_p0 = scmp.ge.s32.totalorder %s2522_s18, 1  ;;  %s2522_s18 = sphi %s2558_s18, %s15_s18  }
   0x2   : > { %p194_p1 = scmp.lt.s32.totalorder %s2522_s18, 6 }
   0x4   : > { %p195_p2 = pnand %p1970_p0, %p194_p1 }
   0x5   : > { %s222_s20 = smul.u32 (!%p195_p2), 5, %s2564_s19  ;;  %p1973_p5 = scmp.ne.s32.totalorder (!%p195_p2), %s2564_s19, 0 }
   0x6   : > { %198 = sbr.rel (%p195_p2) target bundleno = 643 (0x283), region = 40 }
   0x7   : > { %s227_s21 = smul.u32 (!%p195_p2), 80, %s2564_s19  ;;  %p223_p3 = scmp.lt.s32.totalorder (!%p195_p2), %s222_s20, 24 }
   0x9   : > { %p228_p4 = scmp.lt.s32.totalorder (!%p195_p2), %s227_s21, 399 }
   0xd   : > { %s2889_s20 = smov (!%p223_p3, %s222_s20), 24  ;;  %s2891_s21 = smov (!%p228_p4, %s227_s21), 399 }
   0xe   : > { %s225_s24 = scalar_lea.vmem %s2882_s0, %s2889_s20  ;;  %s2170_s25 = sshll.u32 %s2891_s21, 4  ;;  %v2524_v0 = vmov (!%p1973_p5), 0.0  }
   0xf   : > { %s2579_s28 = scalar_lea.vmem %s2883_s1, %s2170_s25  ;;  %238 = sbr.rel (%p1973_p5) target bundleno = 22 (0x16), region = 44  ;;  %239 = vst [vmem:[#allocation2] sm:$0xff] (!%p1973_p5), %v2524_v0 }
  0x16 PF: > { %v2243_v1 = vld [vmem:[%s2579_s28 + $0x4] ss:$16 sps:$4 sm:$0xff]   ;;  %v2245_v2 = vld [vmem:[%s2579_s28 + $0xc] ss:$16 sps:$4 sm:$0xff]   ;;  %v2247_v3 = vld [vmem:[%s2579_s28] ss:$16 sps:$4 sm:$0xff]   ;;  %v407_v39 = vlaneseq }
  0x17   : > { %1247 = vmatprep.subr.bf16.mxu0 %v2243_v1  ;;  %v2248_v4 = vld [vmem:[%s2579_s28 + $0x8] ss:$16 sps:$4 sm:$0xff]   ;;  %1370 = vmatprep.subr.bf16.mxu1 %v2245_v2  ;;  %v2249_v5 = vld [vmem:[%s2579_s28 + $0x24] ss:$16 sps:$4 sm:$0xff]   ;;  %v2251_v6 = vld [vmem:[%s2579_s28 + $0x2c] ss:$16 sps:$4 sm:$0xff]  }
  0x18   : > { %1248 = vmatpush1.bf16.msra.mxu0 %v2247_v3  ;;  %1371 = vmatpush1.bf16.msra.mxu1 %v2248_v4  ;;  %v2253_v7 = vld [vmem:[%s2579_s28 + $0x20] ss:$16 sps:$4 sm:$0xff]   ;;  %v2254_v8 = vld [vmem:[%s2579_s28 + $0x28] ss:$16 sps:$4 sm:$0xff]   ;;  %v2255_v9 = vld [vmem:[%s2579_s28 + $0x44] ss:$16 sps:$4 sm:$0xff]  }
  0x19   : > { %1249 = vmatprep.subr.bf16.mxu0 %v2249_v5  ;;  %1372 = vmatprep.subr.bf16.mxu1 %v2251_v6  ;;  %v2257_v10 = vld [vmem:[%s2579_s28 + $0x4c] ss:$16 sps:$4 sm:$0xff]   ;;  %v2259_v11 = vld [vmem:[%s2579_s28 + $0x40] ss:$16 sps:$4 sm:$0xff]   ;;  %v2260_v12 = vld [vmem:[%s2579_s28 + $0x48] ss:$16 sps:$4 sm:$0xff]  }
  0x1a   : > { %v2261_v13 = vld [vmem:[%s2579_s28 + $0x64] ss:$16 sps:$4 sm:$0xff]   ;;  %v2263_v14 = vld [vmem:[%s2579_s28 + $0x6c] ss:$16 sps:$4 sm:$0xff]   ;;  %v2265_v15 = vld [vmem:[%s2579_s28 + $0x60] ss:$16 sps:$4 sm:$0xff]  }
  0x1b   : > { %v2266_v16 = vld [vmem:[%s2579_s28 + $0x68] ss:$16 sps:$4 sm:$0xff]   ;;  %v2267_v17 = vld [vmem:[%s2579_s28 + $0x84] ss:$16 sps:$4 sm:$0xff]   ;;  %v2269_v18 = vld [vmem:[%s2579_s28 + $0x8c] ss:$16 sps:$4 sm:$0xff]  }
  0x1c   : > { %1250 = vmatpush1.bf16.msra.mxu0 %v2253_v7  ;;  %1373 = vmatpush1.bf16.msra.mxu1 %v2254_v8  ;;  %v2271_v19 = vld [vmem:[%s2579_s28 + $0x80] ss:$16 sps:$4 sm:$0xff]   ;;  %v2272_v20 = vld [vmem:[%s2579_s28 + $0x88] ss:$16 sps:$4 sm:$0xff]   ;;  %v2273_v21 = vld [vmem:[%s2579_s28 + $0xa4] ss:$16 sps:$4 sm:$0xff]  }
  0x1d   : > { %1251 = vmatprep.subr.bf16.mxu0 %v2255_v9  ;;  %1374 = vmatprep.subr.bf16.mxu1 %v2257_v10  ;;  %v2275_v22 = vld [vmem:[%s2579_s28 + $0xac] ss:$16 sps:$4 sm:$0xff]   ;;  %v2277_v23 = vld [vmem:[%s2579_s28 + $0xa0] ss:$16 sps:$4 sm:$0xff]   ;;  %v2278_v24 = vld [vmem:[%s2579_s28 + $0xa8] ss:$16 sps:$4 sm:$0xff]  }
  0x1e   : > { %v2279_v25 = vld [vmem:[%s2579_s28 + $0xc4] ss:$16 sps:$4 sm:$0xff]   ;;  %v2281_v26 = vld [vmem:[%s2579_s28 + $0xcc] ss:$16 sps:$4 sm:$0xff]   ;;  %v2283_v27 = vld [vmem:[%s2579_s28 + $0xc0] ss:$16 sps:$4 sm:$0xff]  }
  0x1f   : > { %v2284_v28 = vld [vmem:[%s2579_s28 + $0xc8] ss:$16 sps:$4 sm:$0xff]   ;;  %v2285_v29 = vld [vmem:[%s2579_s28 + $0xe4] ss:$16 sps:$4 sm:$0xff]   ;;  %v2287_v30 = vld [vmem:[%s2579_s28 + $0xec] ss:$16 sps:$4 sm:$0xff]  }
  0x20   : > { %1252 = vmatpush1.bf16.msra.mxu0 %v2259_v11  ;;  %1375 = vmatpush1.bf16.msra.mxu1 %v2260_v12  ;;  %v2289_v31 = vld [vmem:[%s2579_s28 + $0xe0] ss:$16 sps:$4 sm:$0xff]   ;;  %v2290_v32 = vld [vmem:[%s2579_s28 + $0xe8] ss:$16 sps:$4 sm:$0xff]   ;;  %v2291_v33 = vld [vmem:[%s2579_s28 + $0x104] ss:$16 sps:$4 sm:$0xff]  }
  0x21   : > { %1253 = vmatprep.subr.bf16.mxu0 %v2261_v13  ;;  %1376 = vmatprep.subr.bf16.mxu1 %v2263_v14  ;;  %v2293_v34 = vld [vmem:[%s2579_s28 + $0x10c] ss:$16 sps:$4 sm:$0xff]   ;;  %v2295_v35 = vld [vmem:[%s2579_s28 + $0x100] ss:$16 sps:$4 sm:$0xff]   ;;  %v2296_v36 = vld [vmem:[%s2579_s28 + $0x108] ss:$16 sps:$4 sm:$0xff]  }
  0x22   : > { %v2525_v37 = vmov 1966171168   ;;  %v2297_v40 = vld [vmem:[%s2579_s28 + $0x124] ss:$16 sps:$4 sm:$0xff]   ;;  %v2299_v41 = vld [vmem:[%s2579_s28 + $0x12c] ss:$16 sps:$4 sm:$0xff]  }
  0x23   : > { %v405_v38 = vunpack.c.l.s4 %v2525_v37  ;;  %v2301_v42 = vld [vmem:[%s2579_s28 + $0x120] ss:$16 sps:$4 sm:$0xff]   ;;  %v2621_v44 = vshrl.u32 %v407_v39, 7  ;;  %v2302_v45 = vld [vmem:[%s2579_s28 + $0x128] ss:$16 sps:$4 sm:$0xff]   ;;  %p2134_p6 = scmp.ne.s32.totalorder %s2564_s19, 4 }
  0x24   : > { %1254 = vmatpush1.bf16.msra.mxu0 %v2265_v15  ;;  %1377 = vmatpush1.bf16.msra.mxu1 %v2266_v16  ;;  %v2303_v46 = vld [vmem:[%s2579_s28 + $0x144] ss:$16 sps:$4 sm:$0xff]   ;;  %v2305_v47 = vld [vmem:[%s2579_s28 + $0x14c] ss:$16 sps:$4 sm:$0xff]   ;;  %v2307_v48 = vld [vmem:[%s2579_s28 + $0x140] ss:$16 sps:$4 sm:$0xff]  }
  0x25   : > { %1255 = vmatprep.subr.bf16.mxu0 %v2267_v17  ;;  %1378 = vmatprep.subr.bf16.mxu1 %v2269_v18  ;;  %v406_v43 = vunpack.c.0.s8 %v405_v38  ;;  %v2308_v49 = vld [vmem:[%s2579_s28 + $0x148] ss:$16 sps:$4 sm:$0xff]   ;;  %v2309_v51 = vld [vmem:[%s2579_s28 + $0x164] ss:$16 sps:$4 sm:$0xff]   ;;  %v2311_v52 = vld [vmem:[%s2579_s28 + $0x16c] ss:$16 sps:$4 sm:$0xff]  }
  0x26   : > { %v241_v53 = vld [vmem:[%s225_s24] sm:$0x1f]  ;;  %v2314_v57 = vld [vmem:[%s2579_s28 + $0x168] ss:$16 sps:$4 sm:$0xff]   ;;  %v2317_v59 = vld [vmem:[%s2579_s28 + $0x18c] ss:$16 sps:$4 sm:$0xff]  }
  0x27   : > { %v409_v50 = vsub.s32 %v406_v43, %v2621_v44  ;;  %v2313_v54 = vld [vmem:[%s2579_s28 + $0x160] ss:$16 sps:$4 sm:$0xff]   ;;  %v403_v55 = vcombine.high %v241_v53, %v241_v53  ;;  %v2315_v58 = vld [vmem:[%s2579_s28 + $0x184] ss:$16 sps:$4 sm:$0xff]   ;;  %v2320_v1 = vld [vmem:[%s2579_s28 + $0x188] ss:$16 sps:$4 sm:$0xff]  }
  0x28   : > { %1256 = vmatpush1.bf16.msra.mxu0 %v2271_v19  ;;  %1379 = vmatpush1.bf16.msra.mxu1 %v2272_v20  ;;  %v2319_v62 = vld [vmem:[%s2579_s28 + $0x180] ss:$16 sps:$4 sm:$0xff]   ;;  %v2321_v2 = vld [vmem:[%s2579_s28 + $0x1a4] ss:$16 sps:$4 sm:$0xff]   ;;  %v2323_v3 = vld [vmem:[%s2579_s28 + $0x1ac] ss:$16 sps:$4 sm:$0xff]  }
  0x29   : > { %1257 = vmatprep.subr.bf16.mxu0 %v2273_v21  ;;  %1380 = vmatprep.subr.bf16.mxu1 %v2275_v22  ;;  %v410_v56 = vrot.slane %v241_v53, %v409_v50  ;;  %v417_v61 = vrot.slane %v403_v55, %v409_v50  ;;  %v2325_v4 = vld [vmem:[%s2579_s28 + $0x1a0] ss:$16 sps:$4 sm:$0xff]   ;;  %v2326_v5 = vld [vmem:[%s2579_s28 + $0x1a8] ss:$16 sps:$4 sm:$0xff]   ;;  %v2327_v6 = vld [vmem:[%s2579_s28 + $0x1c4] ss:$16 sps:$4 sm:$0xff]  }
  0x2a   : > { %v2329_v7 = vld [vmem:[%s2579_s28 + $0x1cc] ss:$16 sps:$4 sm:$0xff]   ;;  %v2331_v8 = vld [vmem:[%s2579_s28 + $0x1c0] ss:$16 sps:$4 sm:$0xff]   ;;  %v2332_v9 = vld [vmem:[%s2579_s28 + $0x1c8] ss:$16 sps:$4 sm:$0xff]  }
  0x2b   : > { %v418_v60 = vcombine.high %v410_v56, %v410_v56  ;;  %v2641_v0 = vrot.slane %v417_v61, %v409_v50  ;;  %v2333_v10 = vld [vmem:[%s2579_s28 + $0x1e4] ss:$16 sps:$4 sm:$0xff]   ;;  %v2335_v11 = vld [vmem:[%s2579_s28 + $0x1ec] ss:$16 sps:$4 sm:$0xff]   ;;  %v2337_v12 = vld [vmem:[%s2579_s28 + $0x1e0] ss:$16 sps:$4 sm:$0xff]   ;;  %v2659_v17 = vrot.slane %v410_v56, %v409_v50 }
  0x2c   : > { %1258 = vmatpush1.bf16.msra.mxu0 %v2277_v23  ;;  %1381 = vmatpush1.bf16.msra.mxu1 %v2278_v24  ;;  %v2338_v13 = vld [vmem:[%s2579_s28 + $0x1e8] ss:$16 sps:$4 sm:$0xff]   ;;  %v2342_v14 = vld [vmem:[%s2579_s28 + $0x204] ss:$16 sps:$4 sm:$0xff]   ;;  %v2345_v15 = vld [vmem:[%s2579_s28 + $0x20c] ss:$16 sps:$4 sm:$0xff]  }
  0x2d   : > { %1259 = vmatprep.subr.bf16.mxu0 %v2279_v25  ;;  %1382 = vmatprep.subr.bf16.mxu1 %v2281_v26  ;;  %v439_v63 = vrot.slane %v418_v60, %v409_v50  ;;  %v2340_v16 = vld [vmem:[%s2579_s28 + $0x200] ss:$16 sps:$4 sm:$0xff]   ;;  %v2343_v18 = vld [vmem:[%s2579_s28 + $0x208] ss:$16 sps:$4 sm:$0xff]   ;;  %v2348_v19 = vld [vmem:[%s2579_s28 + $0x224] ss:$16 sps:$4 sm:$0xff]  }
  0x2e   : > { %v2351_v20 = vld [vmem:[%s2579_s28 + $0x22c] ss:$16 sps:$4 sm:$0xff]   ;;  %v2346_v22 = vld [vmem:[%s2579_s28 + $0x220] ss:$16 sps:$4 sm:$0xff]   ;;  %v2349_v23 = vld [vmem:[%s2579_s28 + $0x228] ss:$16 sps:$4 sm:$0xff]  }
  0x2f   : > { %1279 = vmatprep.mubr.bf16.mxu0 %v439_v63  ;;  %1402 = vmatprep.mubr.bf16.mxu1 %v439_v63  ;;  %v441_v21 = vcombine.high %v439_v63, %v439_v63  ;;  %v2354_v24 = vld [vmem:[%s2579_s28 + $0x244] ss:$16 sps:$4 sm:$0xff]   ;;  %v2357_v25 = vld [vmem:[%s2579_s28 + $0x24c] ss:$16 sps:$4 sm:$0xff]   ;;  %v2352_v26 = vld [vmem:[%s2579_s28 + $0x240] ss:$16 sps:$4 sm:$0xff]  }
  0x30   : > { %1260 = vmatpush1.bf16.msra.mxu0 %v2283_v27  ;;  %1383 = vmatpush1.bf16.msra.mxu1 %v2284_v28  ;;  %v2355_v27 = vld [vmem:[%s2579_s28 + $0x248] ss:$16 sps:$4 sm:$0xff]   ;;  %v2360_v28 = vld [vmem:[%s2579_s28 + $0x264] ss:$16 sps:$4 sm:$0xff]   ;;  %v2375_v37 = vld [vmem:[%s2579_s28 + $0x2ac] ss:$16 sps:$4 sm:$0xff]  }
  0x31   : > { %1261 = vmatprep.subr.bf16.mxu0 %v2285_v29  ;;  %1384 = vmatprep.subr.bf16.mxu1 %v2287_v30  ;;  %v2363_v29 = vld [vmem:[%s2579_s28 + $0x26c] ss:$16 sps:$4 sm:$0xff]   ;;  %v2358_v30 = vld [vmem:[%s2579_s28 + $0x260] ss:$16 sps:$4 sm:$0xff]   ;;  %v2373_v39 = vld [vmem:[%s2579_s28 + $0x2a8] ss:$16 sps:$4 sm:$0xff]  }
  0x32   : > { %v2370_v38 = vld [vmem:[%s2579_s28 + $0x2a0] ss:$16 sps:$4 sm:$0xff]   ;;  %v2379_v43 = vld [vmem:[%s2579_s28 + $0x2c8] ss:$16 sps:$4 sm:$0xff]   ;;  %v2393_v50 = vld [vmem:[%s2579_s28 + $0x30c] ss:$16 sps:$4 sm:$0xff]  }
  0x33   : > { %v2396_v53 = vld [vmem:[%s2579_s28 + $0x324] ss:$16 sps:$4 sm:$0xff]   ;;  %v2394_v55 = vld [vmem:[%s2579_s28 + $0x320] ss:$16 sps:$4 sm:$0xff]   ;;  %v2397_v56 = vld [vmem:[%s2579_s28 + $0x328] ss:$16 sps:$4 sm:$0xff]  }
  0x34   : > { %1262 = vmatpush1.bf16.msra.mxu0 %v2289_v31  ;;  %1385 = vmatpush1.bf16.msra.mxu1 %v2290_v32  ;;  %v2361_v31 = vld [vmem:[%s2579_s28 + $0x268] ss:$16 sps:$4 sm:$0xff]   ;;  %v2366_v32 = vld [vmem:[%s2579_s28 + $0x284] ss:$16 sps:$4 sm:$0xff]   ;;  %v2406_v63 = vld [vmem:[%s2579_s28 + $0x360] ss:$16 sps:$4 sm:$0xff]  }
  0x35   : > { %1263 = vmatprep.subr.bf16.mxu0 %v2291_v33  ;;  %1386 = vmatprep.subr.bf16.mxu1 %v2293_v34  ;;  %v2369_v33 = vld [vmem:[%s2579_s28 + $0x28c] ss:$16 sps:$4 sm:$0xff]   ;;  %v2364_v34 = vld [vmem:[%s2579_s28 + $0x280] ss:$16 sps:$4 sm:$0xff]   ;;  %v2403_v60 = vld [vmem:[%s2579_s28 + $0x348] ss:$16 sps:$4 sm:$0xff]  }
  0x36   : > { %v2408_v61 = vld [vmem:[%s2579_s28 + $0x364] ss:$16 sps:$4 sm:$0xff]  }
  0x38   : > { %1264 = vmatpush1.bf16.msra.mxu0 %v2295_v35  ;;  %1387 = vmatpush1.bf16.msra.mxu1 %v2296_v36  ;;  %v2367_v35 = vld [vmem:[%s2579_s28 + $0x288] ss:$16 sps:$4 sm:$0xff]   ;;  %v2372_v36 = vld [vmem:[%s2579_s28 + $0x2a4] ss:$16 sps:$4 sm:$0xff]  }
  0x39   : > { %1265 = vmatprep.subr.bf16.mxu0 %v2297_v40  ;;  %1388 = vmatprep.subr.bf16.mxu1 %v2299_v41  ;;  %v2378_v40 = vld [vmem:[%s2579_s28 + $0x2c4] ss:$16 sps:$4 sm:$0xff]   ;;  %v2381_v41 = vld [vmem:[%s2579_s28 + $0x2cc] ss:$16 sps:$4 sm:$0xff]  }
  0x3c   : > { %1266 = vmatpush1.bf16.msra.mxu0 %v2301_v42  ;;  %1389 = vmatpush1.bf16.msra.mxu1 %v2302_v45  ;;  %v2376_v42 = vld [vmem:[%s2579_s28 + $0x2c0] ss:$16 sps:$4 sm:$0xff]   ;;  %v2384_v45 = vld [vmem:[%s2579_s28 + $0x2e4] ss:$16 sps:$4 sm:$0xff]  }
  0x3d   : > { %1267 = vmatprep.subr.bf16.mxu0 %v2303_v46  ;;  %1390 = vmatprep.subr.bf16.mxu1 %v2305_v47  ;;  %v2387_v46 = vld [vmem:[%s2579_s28 + $0x2ec] ss:$16 sps:$4 sm:$0xff]   ;;  %v2382_v47 = vld [vmem:[%s2579_s28 + $0x2e0] ss:$16 sps:$4 sm:$0xff]  }
  0x40   : > { %1268 = vmatpush1.bf16.msra.mxu0 %v2307_v48  ;;  %1391 = vmatpush1.bf16.msra.mxu1 %v2308_v49  ;;  %v2385_v48 = vld [vmem:[%s2579_s28 + $0x2e8] ss:$16 sps:$4 sm:$0xff]   ;;  %v2390_v49 = vld [vmem:[%s2579_s28 + $0x304] ss:$16 sps:$4 sm:$0xff]  }
  0x41   : > { %1269 = vmatprep.subr.bf16.mxu0 %v2309_v51  ;;  %1392 = vmatprep.subr.bf16.mxu1 %v2311_v52  ;;  %v2388_v51 = vld [vmem:[%s2579_s28 + $0x300] ss:$16 sps:$4 sm:$0xff]   ;;  %v2391_v52 = vld [vmem:[%s2579_s28 + $0x308] ss:$16 sps:$4 sm:$0xff]  }
  0x44   : > { %1270 = vmatpush1.bf16.msra.mxu0 %v2313_v54  ;;  %1393 = vmatpush1.bf16.msra.mxu1 %v2314_v57  ;;  %v2399_v54 = vld [vmem:[%s2579_s28 + $0x32c] ss:$16 sps:$4 sm:$0xff]   ;;  %v2402_v57 = vld [vmem:[%s2579_s28 + $0x344] ss:$16 sps:$4 sm:$0xff]  }
  0x45   : > { %1271 = vmatprep.subr.bf16.mxu0 %v2315_v58  ;;  %1394 = vmatprep.subr.bf16.mxu1 %v2317_v59  ;;  %v2405_v58 = vld [vmem:[%s2579_s28 + $0x34c] ss:$16 sps:$4 sm:$0xff]   ;;  %v2400_v59 = vld [vmem:[%s2579_s28 + $0x340] ss:$16 sps:$4 sm:$0xff]  }
  0x48   : > { %1272 = vmatpush1.bf16.msra.mxu0 %v2319_v62  ;;  %1395 = vmatpush1.bf16.msra.mxu1 %v2320_v1  ;;  %v2411_v62 = vld [vmem:[%s2579_s28 + $0x36c] ss:$16 sps:$4 sm:$0xff]   ;;  %v2409_v1 = vld [vmem:[%s2579_s28 + $0x368] ss:$16 sps:$4 sm:$0xff]  }
  0x49   : > { %1273 = vmatprep.subr.bf16.mxu0 %v2321_v2  ;;  %1396 = vmatprep.subr.bf16.mxu1 %v2323_v3  ;;  %v2414_v2 = vld [vmem:[%s2579_s28 + $0x384] ss:$16 sps:$4 sm:$0xff]   ;;  %v2417_v3 = vld [vmem:[%s2579_s28 + $0x38c] ss:$16 sps:$4 sm:$0xff]  }
  0x4c   : > { %1274 = vmatpush1.bf16.msra.mxu0 %v2325_v4  ;;  %1397 = vmatpush1.bf16.msra.mxu1 %v2326_v5  ;;  %v2412_v4 = vld [vmem:[%s2579_s28 + $0x380] ss:$16 sps:$4 sm:$0xff]   ;;  %v2415_v5 = vld [vmem:[%s2579_s28 + $0x388] ss:$16 sps:$4 sm:$0xff]  }
  0x4d   : > { %1275 = vmatprep.subr.bf16.mxu0 %v2327_v6  ;;  %1398 = vmatprep.subr.bf16.mxu1 %v2329_v7  ;;  %v2420_v6 = vld [vmem:[%s2579_s28 + $0x3a4] ss:$16 sps:$4 sm:$0xff]   ;;  %v2423_v7 = vld [vmem:[%s2579_s28 + $0x3ac] ss:$16 sps:$4 sm:$0xff]  }
  0x50   : > { %1276 = vmatpush1.bf16.msra.mxu0 %v2331_v8  ;;  %1399 = vmatpush1.bf16.msra.mxu1 %v2332_v9  ;;  %v2418_v8 = vld [vmem:[%s2579_s28 + $0x3a0] ss:$16 sps:$4 sm:$0xff]   ;;  %v2421_v9 = vld [vmem:[%s2579_s28 + $0x3a8] ss:$16 sps:$4 sm:$0xff]  }
  0x51   : > { %1277 = vmatprep.subr.bf16.mxu0 %v2333_v10  ;;  %1400 = vmatprep.subr.bf16.mxu1 %v2335_v11  ;;  %v2426_v10 = vld [vmem:[%s2579_s28 + $0x3c4] ss:$16 sps:$4 sm:$0xff]   ;;  %v2429_v11 = vld [vmem:[%s2579_s28 + $0x3cc] ss:$16 sps:$4 sm:$0xff]  }
  0x54   : > { %1278 = vmatpush1.bf16.msra.mxu0 %v2337_v12  ;;  %1401 = vmatpush1.bf16.msra.mxu1 %v2338_v13  ;;  %v2424_v12 = vld [vmem:[%s2579_s28 + $0x3c0] ss:$16 sps:$4 sm:$0xff]   ;;  %v2427_v13 = vld [vmem:[%s2579_s28 + $0x3c8] ss:$16 sps:$4 sm:$0xff]  }
  0x55   : > { %1288 = vmatprep.subr.bf16.mxu0 %v2342_v14  ;;  %1411 = vmatprep.subr.bf16.mxu1 %v2345_v15  ;;  %v2432_v14 = vld [vmem:[%s2579_s28 + $0x3e4] ss:$16 sps:$4 sm:$0xff]   ;;  %v2435_v15 = vld [vmem:[%s2579_s28 + $0x3ec] ss:$16 sps:$4 sm:$0xff]  }
  0x57   : > { %1280 = vmatmul.mubr.bf16.vlgmr.msra.gmra.mrb[0].mxu0 %v2659_v17  ;;  %1403 = vmatmul.mubr.bf16.vlgmr.msra.gmra.mrb[0].mxu1 %v2659_v17 }
  0x58   : > { %1289 = vmatpush1.bf16.msra.mxu0 %v2340_v16  ;;  %1412 = vmatpush1.bf16.msra.mxu1 %v2343_v18  ;;  %v2430_v16 = vld [vmem:[%s2579_s28 + $0x3e0] ss:$16 sps:$4 sm:$0xff]   ;;  %v2433_v18 = vld [vmem:[%s2579_s28 + $0x3e8] ss:$16 sps:$4 sm:$0xff]  }
  0x59   : > { %1290 = vmatprep.subr.bf16.mxu0 %v2348_v19  ;;  %1413 = vmatprep.subr.bf16.mxu1 %v2351_v20  ;;  %v2438_v19 = vld [vmem:[%s2579_s28 + $0x404] ss:$16 sps:$4 sm:$0xff]   ;;  %v2441_v20 = vld [vmem:[%s2579_s28 + $0x40c] ss:$16 sps:$4 sm:$0xff]  }
  0x5a   : > { %1320 = vmatprep.mubr.bf16.mxu0 %v441_v21  ;;  %1443 = vmatprep.mubr.bf16.mxu1 %v441_v21  ;;  %v440_v21 = vcombine.high %v2659_v17, %v2659_v17  ;;  %v2445_v17 = vld [vmem:[%s2579_s28 + $0x428] ss:$16 sps:$4 sm:$0xff]  }
  0x5c   : > { %1291 = vmatpush1.bf16.msra.mxu0 %v2346_v22  ;;  %1414 = vmatpush1.bf16.msra.mxu1 %v2349_v23  ;;  %v2436_v22 = vld [vmem:[%s2579_s28 + $0x400] ss:$16 sps:$4 sm:$0xff]   ;;  %v2439_v23 = vld [vmem:[%s2579_s28 + $0x408] ss:$16 sps:$4 sm:$0xff]  }
  0x5d   : > { %1292 = vmatprep.subr.bf16.mxu0 %v2354_v24  ;;  %1415 = vmatprep.subr.bf16.mxu1 %v2357_v25  ;;  %v2444_v24 = vld [vmem:[%s2579_s28 + $0x424] ss:$16 sps:$4 sm:$0xff]   ;;  %v2447_v25 = vld [vmem:[%s2579_s28 + $0x42c] ss:$16 sps:$4 sm:$0xff]  }
  0x60   : > { %1293 = vmatpush1.bf16.msra.mxu0 %v2352_v26  ;;  %1416 = vmatpush1.bf16.msra.mxu1 %v2355_v27  ;;  %v2442_v26 = vld [vmem:[%s2579_s28 + $0x420] ss:$16 sps:$4 sm:$0xff]   ;;  %v2450_v27 = vld [vmem:[%s2579_s28 + $0x444] ss:$16 sps:$4 sm:$0xff]  }
  0x61   : > { %1294 = vmatprep.subr.bf16.mxu0 %v2360_v28  ;;  %1417 = vmatprep.subr.bf16.mxu1 %v2363_v29  ;;  %v2453_v28 = vld [vmem:[%s2579_s28 + $0x44c] ss:$16 sps:$4 sm:$0xff]   ;;  %v2526_v29 = vmov 0  }
  0x64   : > { %1295 = vmatpush1.bf16.msra.mxu0 %v2358_v30  ;;  %1418 = vmatpush1.bf16.msra.mxu1 %v2361_v31  ;;  %v2448_v30 = vld [vmem:[%s2579_s28 + $0x440] ss:$16 sps:$4 sm:$0xff]   ;;  %v2451_v31 = vld [vmem:[%s2579_s28 + $0x448] ss:$16 sps:$4 sm:$0xff]  }
  0x65   : > { %1296 = vmatprep.subr.bf16.mxu0 %v2366_v32  ;;  %1419 = vmatprep.subr.bf16.mxu1 %v2369_v33  ;;  %v2456_v32 = vld [vmem:[%s2579_s28 + $0x464] ss:$16 sps:$4 sm:$0xff]   ;;  %v2459_v33 = vld [vmem:[%s2579_s28 + $0x46c] ss:$16 sps:$4 sm:$0xff]  }
  0x68   : > { %1297 = vmatpush1.bf16.msra.mxu0 %v2364_v34  ;;  %1420 = vmatpush1.bf16.msra.mxu1 %v2367_v35  ;;  %v2454_v34 = vld [vmem:[%s2579_s28 + $0x460] ss:$16 sps:$4 sm:$0xff]   ;;  %v2457_v35 = vld [vmem:[%s2579_s28 + $0x468] ss:$16 sps:$4 sm:$0xff]  }
  0x69   : > { %1298 = vmatprep.subr.bf16.mxu0 %v2372_v36  ;;  %1421 = vmatprep.subr.bf16.mxu1 %v2375_v37  ;;  %v2462_v36 = vld [vmem:[%s2579_s28 + $0x484] ss:$16 sps:$4 sm:$0xff]   ;;  %v2465_v37 = vld [vmem:[%s2579_s28 + $0x48c] ss:$16 sps:$4 sm:$0xff]  }
  0x6c   : > { %1299 = vmatpush1.bf16.msra.mxu0 %v2370_v38  ;;  %1422 = vmatpush1.bf16.msra.mxu1 %v2373_v39  ;;  %v2460_v38 = vld [vmem:[%s2579_s28 + $0x480] ss:$16 sps:$4 sm:$0xff]   ;;  %v2463_v39 = vld [vmem:[%s2579_s28 + $0x488] ss:$16 sps:$4 sm:$0xff]  }
  0x6d   : > { %1300 = vmatprep.subr.bf16.mxu0 %v2378_v40  ;;  %1423 = vmatprep.subr.bf16.mxu1 %v2381_v41  ;;  %v2468_v40 = vld [vmem:[%s2579_s28 + $0x4a4] ss:$16 sps:$4 sm:$0xff]   ;;  %v2471_v41 = vld [vmem:[%s2579_s28 + $0x4ac] ss:$16 sps:$4 sm:$0xff]  }
  0x70   : > { %1301 = vmatpush1.bf16.msra.mxu0 %v2376_v42  ;;  %1424 = vmatpush1.bf16.msra.mxu1 %v2379_v43  ;;  %v2466_v42 = vld [vmem:[%s2579_s28 + $0x4a0] ss:$16 sps:$4 sm:$0xff]   ;;  %v2469_v43 = vld [vmem:[%s2579_s28 + $0x4a8] ss:$16 sps:$4 sm:$0xff]  }
  0x71   : > { %1302 = vmatprep.subr.bf16.mxu0 %v2384_v45  ;;  %1425 = vmatprep.subr.bf16.mxu1 %v2387_v46  ;;  %v2474_v45 = vld [vmem:[%s2579_s28 + $0x4c4] ss:$16 sps:$4 sm:$0xff]   ;;  %v2477_v46 = vld [vmem:[%s2579_s28 + $0x4cc] ss:$16 sps:$4 sm:$0xff]  }
  0x74   : > { %1303 = vmatpush1.bf16.msra.mxu0 %v2382_v47  ;;  %1426 = vmatpush1.bf16.msra.mxu1 %v2385_v48  ;;  %v2472_v47 = vld [vmem:[%s2579_s28 + $0x4c0] ss:$16 sps:$4 sm:$0xff]   ;;  %v2475_v48 = vld [vmem:[%s2579_s28 + $0x4c8] ss:$16 sps:$4 sm:$0xff]  }
  0x75   : > { %1304 = vmatprep.subr.bf16.mxu0 %v2390_v49  ;;  %1427 = vmatprep.subr.bf16.mxu1 %v2393_v50  ;;  %v2480_v49 = vld [vmem:[%s2579_s28 + $0x4e4] ss:$16 sps:$4 sm:$0xff]   ;;  %v2483_v50 = vld [vmem:[%s2579_s28 + $0x4ec] ss:$16 sps:$4 sm:$0xff]  }
  0x78   : > { %1305 = vmatpush1.bf16.msra.mxu0 %v2388_v51  ;;  %1428 = vmatpush1.bf16.msra.mxu1 %v2391_v52  ;;  %v2478_v51 = vld [vmem:[%s2579_s28 + $0x4e0] ss:$16 sps:$4 sm:$0xff]   ;;  %v2481_v52 = vld [vmem:[%s2579_s28 + $0x4e8] ss:$16 sps:$4 sm:$0xff]  }
  0x79   : > { %1306 = vmatprep.subr.bf16.mxu0 %v2396_v53  ;;  %1429 = vmatprep.subr.bf16.mxu1 %v2399_v54  ;;  %v2527_v53 = vmov 1983009808  }
  0x7a   : > { %v1500_v54 = vunpack.c.l.s4 %v2527_v53 }
  0x7c   : > { %1307 = vmatpush1.bf16.msra.mxu0 %v2394_v55  ;;  %1430 = vmatpush1.bf16.msra.mxu1 %v2397_v56  ;;  %v1501_v55 = vunpack.c.0.s8 %v1500_v54 }
  0x7d   : > { %1308 = vmatprep.subr.bf16.mxu0 %v2402_v57  ;;  %1431 = vmatprep.subr.bf16.mxu1 %v2405_v58 }
  0x7e   : > { %v2761_v58 = vsub.s32 %v1501_v55, %v2621_v44 }
  0x80   : > { %1309 = vmatpush1.bf16.msra.mxu0 %v2400_v59  ;;  %1432 = vmatpush1.bf16.msra.mxu1 %v2403_v60 }
  0x81   : > { %1310 = vmatprep.subr.bf16.mxu0 %v2408_v61  ;;  %1433 = vmatprep.subr.bf16.mxu1 %v2411_v62 }
  0x84   : > { %1311 = vmatpush1.bf16.msra.mxu0 %v2406_v63  ;;  %1434 = vmatpush1.bf16.msra.mxu1 %v2409_v1 }
  0x85   : > { %1312 = vmatprep.subr.bf16.mxu0 %v2414_v2  ;;  %1435 = vmatprep.subr.bf16.mxu1 %v2417_v3 }
  0x88   : > { %1313 = vmatpush1.bf16.msra.mxu0 %v2412_v4  ;;  %1436 = vmatpush1.bf16.msra.mxu1 %v2415_v5  ;;  %v240_v5 = vld [vmem:[#allocation2] sm:$0xff] }
  0x89   : > { %1314 = vmatprep.subr.bf16.mxu0 %v2420_v6  ;;  %1437 = vmatprep.subr.bf16.mxu1 %v2423_v7 }
  0x8c   : > { %1315 = vmatpush1.bf16.msra.mxu0 %v2418_v8  ;;  %1438 = vmatpush1.bf16.msra.mxu1 %v2421_v9  ;;  %v2484_v8 = vld [vmem:[%s2885_s3 + $0x40] sm:$0xff] (!%p2134_p6)  }
  0x8d   : > { %1316 = vmatprep.subr.bf16.mxu0 %v2426_v10  ;;  %1439 = vmatprep.subr.bf16.mxu1 %v2429_v11  ;;  %v2485_v9 = vld [vmem:[%s2885_s3 + $0xc0] sm:$0xff] (!%p2134_p6)  }
  0x8e   : > { %v2486_v10 = vld [vmem:[%s2885_s3] sm:$0xff] (!%p2134_p6)  }
  0x8f   : > { %v2487_v11 = vld [vmem:[%s2885_s3 + $0x80] sm:$0xff] (!%p2134_p6)  }
  0x90   : > { %1317 = vmatpush1.bf16.msra.mxu0 %v2424_v12  ;;  %1440 = vmatpush1.bf16.msra.mxu1 %v2427_v13  ;;  %v2488_v12 = vld [vmem:[%s2885_s3 + $0x48] sm:$0xff] (!%p2134_p6)  }
  0x91   : > { %1318 = vmatprep.subr.bf16.mxu0 %v2432_v14  ;;  %1441 = vmatprep.subr.bf16.mxu1 %v2435_v15  ;;  %v2489_v13 = vld [vmem:[%s2885_s3 + $0xc8] sm:$0xff] (!%p2134_p6)  }
  0x92   : > { %v2490_v14 = vld [vmem:[%s2885_s3 + $0x8] sm:$0xff] (!%p2134_p6)  }
  0x93   : > { %v2491_v15 = vld [vmem:[%s2885_s3 + $0x88] sm:$0xff] (!%p2134_p6)  }
  0x94   : > { %1319 = vmatpush1.bf16.msra.mxu0 %v2430_v16  ;;  %1442 = vmatpush1.bf16.msra.mxu1 %v2433_v18  ;;  %v2492_v16 = vld [vmem:[%s2885_s3 + $0x50] sm:$0xff] (!%p2134_p6)  }
  0x95   : > { %1329 = vmatprep.subr.bf16.mxu0 %v2438_v19  ;;  %1452 = vmatprep.subr.bf16.mxu1 %v2441_v20  ;;  %v2493_v18 = vld [vmem:[%s2885_s3 + $0xd0] sm:$0xff] (!%p2134_p6)  }
  0x96   : > { %v2494_v19 = vld [vmem:[%s2885_s3 + $0x10] sm:$0xff] (!%p2134_p6)  }
  0x97   : > { %1321 = vmatmul.mubr.bf16.vlgmr.msra.gmra.mrb[0].mxu0 %v440_v21  ;;  %1444 = vmatmul.mubr.bf16.vlgmr.msra.gmra.mrb[0].mxu1 %v440_v21  ;;  %v2495_v20 = vld [vmem:[%s2885_s3 + $0x90] sm:$0xff] (!%p2134_p6)   ;;  %v2496_v21 = vld [vmem:[%s2885_s3 + $0x58] sm:$0xff] (!%p2134_p6)  }
  0x98   : > { %1330 = vmatpush1.bf16.msra.mxu0 %v2436_v22  ;;  %1453 = vmatpush1.bf16.msra.mxu1 %v2439_v23  ;;  %v2497_v22 = vld [vmem:[%s2885_s3 + $0xd8] sm:$0xff] (!%p2134_p6)  }
  0x99   : > { %1331 = vmatprep.subr.bf16.mxu0 %v2444_v24  ;;  %1454 = vmatprep.subr.bf16.mxu1 %v2447_v25  ;;  %v2498_v23 = vld [vmem:[%s2885_s3 + $0x18] sm:$0xff] (!%p2134_p6)   ;;  %v2500_v25 = vld [vmem:[%s2885_s3 + $0x60] sm:$0xff] (!%p2134_p6)  }
  0x9a   : > { %1361 = vmatprep.mubr.bf16.mxu0 %v2526_v29  ;;  %1484 = vmatprep.mubr.bf16.mxu1 %v2526_v29  ;;  %v2499_v24 = vld [vmem:[%s2885_s3 + $0x98] sm:$0xff] (!%p2134_p6)   ;;  %v2505_v29 = vld [vmem:[%s2885_s3 + $0xe8] sm:$0xff] (!%p2134_p6)  }
  0x9c   : > { %1332 = vmatpush1.bf16.msra.mxu0 %v2442_v26  ;;  %1455 = vmatpush1.bf16.msra.mxu1 %v2445_v17  ;;  %v2501_v26 = vld [vmem:[%s2885_s3 + $0xe0] sm:$0xff] (!%p2134_p6)  }
  0x9d   : > { %1333 = vmatprep.subr.bf16.mxu0 %v2450_v27  ;;  %1456 = vmatprep.subr.bf16.mxu1 %v2453_v28  ;;  %v2502_v17 = vld [vmem:[%s2885_s3 + $0x20] sm:$0xff] (!%p2134_p6)   ;;  %v2504_v28 = vld [vmem:[%s2885_s3 + $0x68] sm:$0xff] (!%p2134_p6)  }
  0x9e   : > { %v2503_v27 = vld [vmem:[%s2885_s3 + $0xa0] sm:$0xff] (!%p2134_p6)  }
  0xa0   : > { %1334 = vmatpush1.bf16.msra.mxu0 %v2448_v30  ;;  %1457 = vmatpush1.bf16.msra.mxu1 %v2451_v31  ;;  %v2506_v30 = vld [vmem:[%s2885_s3 + $0x28] sm:$0xff] (!%p2134_p6)  }
  0xa1   : > { %1335 = vmatprep.subr.bf16.mxu0 %v2456_v32  ;;  %1458 = vmatprep.subr.bf16.mxu1 %v2459_v33  ;;  %v2507_v31 = vld [vmem:[%s2885_s3 + $0xa8] sm:$0xff] (!%p2134_p6)   ;;  %v2508_v32 = vld [vmem:[%s2885_s3 + $0x70] sm:$0xff] (!%p2134_p6)  }
  0xa2   : > { %v2509_v33 = vld [vmem:[%s2885_s3 + $0xf0] sm:$0xff] (!%p2134_p6)  }
  0xa4   : > { %1336 = vmatpush1.bf16.msra.mxu0 %v2454_v34  ;;  %1459 = vmatpush1.bf16.msra.mxu1 %v2457_v35  ;;  %v2510_v34 = vld [vmem:[%s2885_s3 + $0x30] sm:$0xff] (!%p2134_p6)   ;;  %v1526_v35 = vsub.s32 (!%p2134_p6), 0, %v2621_v44 }
  0xa5   : > { %1337 = vmatprep.subr.bf16.mxu0 %v2462_v36  ;;  %1460 = vmatprep.subr.bf16.mxu1 %v2465_v37  ;;  %v2511_v36 = vld [vmem:[%s2885_s3 + $0xb0] sm:$0xff] (!%p2134_p6)   ;;  %v1530_v37 = vsub.s32 (!%p2134_p6), 1, %v2621_v44 }
  0xa8   : > { %1338 = vmatpush1.bf16.msra.mxu0 %v2460_v38  ;;  %1461 = vmatpush1.bf16.msra.mxu1 %v2463_v39  ;;  %v2512_v38 = vld [vmem:[%s2885_s3 + $0x78] sm:$0xff] (!%p2134_p6)   ;;  %v1534_v39 = vsub.s32 (!%p2134_p6), 2, %v2621_v44 }
  0xa9   : > { %1339 = vmatprep.subr.bf16.mxu0 %v2468_v40  ;;  %1462 = vmatprep.subr.bf16.mxu1 %v2471_v41  ;;  %v2513_v40 = vld [vmem:[%s2885_s3 + $0xf8] sm:$0xff] (!%p2134_p6)   ;;  %v1538_v41 = vsub.s32 (!%p2134_p6), 3, %v2621_v44 }
  0xac   : > { %1340 = vmatpush1.bf16.msra.mxu0 %v2466_v42  ;;  %1463 = vmatpush1.bf16.msra.mxu1 %v2469_v43  ;;  %v2514_v42 = vld [vmem:[%s2885_s3 + $0x38] sm:$0xff] (!%p2134_p6)  }
  0xad   : > { %1341 = vmatprep.subr.bf16.mxu0 %v2474_v45  ;;  %1464 = vmatprep.subr.bf16.mxu1 %v2477_v46  ;;  %v2515_v43 = vld [vmem:[%s2885_s3 + $0xb8] sm:$0xff] (!%p2134_p6)   ;;  %v1522_v45 = vld [vmem:[%s2884_s2] sm:$0xf] (!%p2134_p6) }
  0xae   : > { %v1527_v46 = vrot.slane (!%p2134_p6), %v1522_v45, %v1526_v35  ;;  %v1539_v44 = vrot.slane (!%p2134_p6), %v1522_v45, %v1538_v41 }
  0xb0   : > { %1342 = vmatpush1.bf16.msra.mxu0 %v2472_v47  ;;  %1465 = vmatpush1.bf16.msra.mxu1 %v2475_v48  ;;  %v1531_v47 = vrot.slane (!%p2134_p6), %v1522_v45, %v1530_v37  ;;  %v1535_v48 = vrot.slane (!%p2134_p6), %v1522_v45, %v1534_v39 }
  0xb1   : > { %1343 = vmatprep.subr.bf16.mxu0 %v2480_v49  ;;  %1466 = vmatprep.subr.bf16.mxu1 %v2483_v50 }
  0xb2   : > { %v1540_v49 = vcombine.low (!%p2134_p6), %v1527_v46, %v1531_v47  ;;  %v1541_v50 = vcombine.low (!%p2134_p6), %v1535_v48, %v1539_v44 }
  0xb4   : > { %1344 = vmatpush1.bf16.msra.mxu0 %v2478_v51  ;;  %1467 = vmatpush1.bf16.msra.mxu1 %v2481_v52  ;;  %v1548_v51 = vrot.slane (!%p2134_p6), %v1540_v49, %v2761_v58  ;;  %v1555_v52 = vrot.slane (!%p2134_p6), %v1541_v50, %v2761_v58 }
  0xb5   : > { %2171 = vmatprep.subr.bf16.mxu0 (!%p2134_p6), %v2484_v8  ;;  %2193 = vmatprep.subr.bf16.mxu1 (!%p2134_p6), %v2485_v9 }
  0xb6   : > { %v1556_v54 = vcombine.low (!%p2134_p6), %v1548_v51, %v1555_v52 }
  0xb7   : > { %1362 = vmatmul.mubr.bf16.vlgmr.msra.gmra.mrb[0].mxu0 %v2641_v0  ;;  %1485 = vmatmul.mubr.bf16.vlgmr.msra.gmra.mrb[0].mxu1 %v2641_v0 }
  0xb8   : > { %2172 = vmatpush3.bf16.msra.mxu0 (!%p2134_p6), %v2486_v10  ;;  %2194 = vmatpush3.bf16.msra.mxu1 (!%p2134_p6), %v2487_v11 }
  0xb9   : > { %2173 = vmatprep.subr.bf16.mxu0 (!%p2134_p6), %v2488_v12  ;;  %2195 = vmatprep.subr.bf16.mxu1 (!%p2134_p6), %v2489_v13 }
  0xbc   : > { %2174 = vmatpush3.bf16.msra.mxu0 (!%p2134_p6), %v2490_v14  ;;  %2196 = vmatpush3.bf16.msra.mxu1 (!%p2134_p6), %v2491_v15 }
  0xbd   : > { %2175 = vmatprep.subr.bf16.mxu0 (!%p2134_p6), %v2492_v16  ;;  %2197 = vmatprep.subr.bf16.mxu1 (!%p2134_p6), %v2493_v18 }
  0xc0   : > { %2176 = vmatpush3.bf16.msra.mxu0 (!%p2134_p6), %v2494_v19  ;;  %2198 = vmatpush3.bf16.msra.mxu1 (!%p2134_p6), %v2495_v20 }
  0xc1   : > { %2177 = vmatprep.subr.bf16.mxu0 (!%p2134_p6), %v2496_v21  ;;  %2199 = vmatprep.subr.bf16.mxu1 (!%p2134_p6), %v2497_v22 }
  0xc4   : > { %2178 = vmatpush3.bf16.msra.mxu0 (!%p2134_p6), %v2498_v23  ;;  %2200 = vmatpush3.bf16.msra.mxu1 (!%p2134_p6), %v2499_v24 }
  0xc5   : > { %2179 = vmatprep.subr.bf16.mxu0 (!%p2134_p6), %v2500_v25  ;;  %2201 = vmatprep.subr.bf16.mxu1 (!%p2134_p6), %v2501_v26 }
  0xc8   : > { %2180 = vmatpush3.bf16.msra.mxu0 (!%p2134_p6), %v2502_v17  ;;  %2202 = vmatpush3.bf16.msra.mxu1 (!%p2134_p6), %v2503_v27 }
  0xc9   : > { %2181 = vmatprep.subr.bf16.mxu0 (!%p2134_p6), %v2504_v28  ;;  %2203 = vmatprep.subr.bf16.mxu1 (!%p2134_p6), %v2505_v29 }
  0xcc   : > { %2182 = vmatpush3.bf16.msra.mxu0 (!%p2134_p6), %v2506_v30  ;;  %2204 = vmatpush3.bf16.msra.mxu1 (!%p2134_p6), %v2507_v31 }
  0xcd   : > { %2183 = vmatprep.subr.bf16.mxu0 (!%p2134_p6), %v2508_v32  ;;  %2205 = vmatprep.subr.bf16.mxu1 (!%p2134_p6), %v2509_v33 }
  0xd0   : > { %2184 = vmatpush3.bf16.msra.mxu0 (!%p2134_p6), %v2510_v34  ;;  %2206 = vmatpush3.bf16.msra.mxu1 (!%p2134_p6), %v2511_v36 }
  0xd1   : > { %2185 = vmatprep.subr.bf16.mxu0 (!%p2134_p6), %v2512_v38  ;;  %2207 = vmatprep.subr.bf16.mxu1 (!%p2134_p6), %v2513_v40 }
  0xd4   : > { %2186 = vmatpush3.bf16.msra.mxu0 (!%p2134_p6), %v2514_v42  ;;  %2208 = vmatpush3.bf16.msra.mxu1 (!%p2134_p6), %v2515_v43 }
 0x18a   : > { %v1363_v56 = vpop.f32.mrb[0].mxu0  ;;  %v1486_v57 = vpop.f32.mrb[0].mxu1 }
 0x18b   : > { %v1365_v59 = vpop.f32.mrb[1].mxu0  ;;  %v1488_v60 = vpop.f32.mrb[1].mxu1 }
 0x18c   : > { %v1497_v61 = vcombine.low %v1363_v56, %v1365_v59  ;;  %v1498_v62 = vcombine.low %v1486_v57, %v1488_v60  ;;  %v1367_v63 = vpop.f32.mrb[2].mxu0  ;;  %v1490_v1 = vpop.f32.mrb[2].mxu1 }
 0x18d   : > { %v1368_v2 = vpop.f32.mrb[3].mxu0  ;;  %v1491_v3 = vpop.f32.mrb[3].mxu1 }
 0x18e   : > { %v1505_v4 = vrot.slane %v1497_v61, %v2761_v58  ;;  %v1512_v0 = vrot.slane %v1498_v62, %v2761_v58  ;;  %1520 = sbr.rel (%p2134_p6) target bundleno = 643 (0x283), region = 48 }
 0x190   : > { %v1513_v6 = vcombine.low %v1505_v4, %v1512_v0  ;;  %v2135_v0 = vld [vmem:[%s2886_s4] ss:$0 sm:$0xff] (!%p2134_p6) }
 0x192   : > { %v1515_v7 = vadd.f32 %v1513_v6, %v240_v5 }
 0x194   : > { %1516 = vst [vmem:[#allocation2] sm:$0xff] %v1515_v7 }
 0x19b   : > { %v1521_v53 = vld [vmem:[#allocation2] sm:$0xff] }
 0x19c   : > { %v1558_v55 = vadd.f32 %v1556_v54, %v1521_v53 }
 0x19e   : > { %v1559_v56 = vmax.f32 %v1558_v55, 0.0 }
 0x1a0   : > { %v1568_v57 = vrot.slane %v1559_v56, %v2761_v58  ;;  %v1561_v59 = vcombine.high %v1559_v56, %v1559_v56 }
 0x1a2   : > { %v1576_v60 = vcombine.high %v1568_v57, %v1568_v57  ;;  %v1575_v61 = vrot.slane %v1561_v59, %v2761_v58  ;;  %v1582_v62 = vpack.c.bf16 %v1568_v57, %v1568_v57 }
 0x1a4   : > { %v1583_v63 = vpack.c.bf16 %v1576_v60, %v1576_v60  ;;  %v1577_v1 = vcombine.high %v1575_v61, %v1575_v61  ;;  %v1584_v2 = vpack.c.bf16 %v1575_v61, %v1575_v61 }
 0x1a6   : > { %1881 = vmatprep.mubr.bf16.mxu0 %v1583_v63  ;;  %v1585_v3 = vpack.c.bf16 %v1577_v1, %v1577_v1 }
 0x1a7   : > { %1882 = vmatmul.mubr.bf16.vlgmr.msra.gmra.mrb[0].mxu0 %v1582_v62 }
 0x1a8   : > { %1921 = vmatprep.mubr.bf16.mxu1 %v1585_v3 }
 0x1a9   : > { %1922 = vmatmul.mubr.bf16.vlgmr.msra.gmra.mrb[0].mxu1 %v1584_v2 }
 0x27a   : > { %v2187_v4 = vpop.f32.mrb[0].mxu0 }
 0x27b   : > { %v2188_v5 = vpop.f32.mrb[1].mxu0 }
 0x27c   : > { %v2209_v6 = vpop.f32.mrb[0].mxu1  ;;  %v2189_v7 = vadd.f32 %v2188_v5, %v2187_v4  ;;  %v2190_v8 = vpop.f32.mrb[2].mxu0 }
 0x27d   : > { %v2210_v9 = vpop.f32.mrb[1].mxu1  ;;  %v2191_v58 = vpop.f32.mrb[3].mxu0 }
 0x27e   : > { %v1884_v10 = vadd.f32 %v2189_v7, %v2135_v0  ;;  %v2211_v11 = vadd.f32 %v2210_v9, %v2209_v6  ;;  %v2212_v12 = vpop.f32.mrb[2].mxu1 }
 0x27f   : > { %v2213_v13 = vpop.f32.mrb[3].mxu1 }
 0x280   : > { %v1924_v14 = vadd.f32 %v2211_v11, %v1884_v10 }
 0x282   : > { %1929 = vst [vmem:[%s2887_s5] sm:$0x3] %v1924_v14 }
 0x283 PF: > { %s15_s18 = sadd.s32 1, %s2522_s18  }
 0x284   : > { %p12_p7 = scmp.ge.s32.totalorder %s15_s18, 7  }
 0x286   :  { %14 = sbr.rel (!%p12_p7) target bundleno = 1 (0x1), region = 77 }

</bundles_post_ra>
